<compile_context>
chip_gen: v7x
topology: tpu7x:2x2x1
jax: 0.10.0
libtpu: 0.0.40
codegen_flags: <defaults>
</compile_context>

<pallas_src>
import jax
import jax.numpy as jnp
from jax import lax
from jax.experimental import pallas as pl
from jax.experimental.pallas import tpu as pltpu


def _round_up(x, m):
    return ((x + m - 1) // m) * m


def _sigmoid(x):
    # Single EUP push per vreg (tanh), instead of exp + divide.
    return 0.5 * jnp.tanh(0.5 * x) + 0.5


# Torch gate order is [i, f, g, o]; we pack as [i, f, o, g] so the sigmoid gates
# are one contiguous slab and tanh(g) is the trailing slab.
_GATE_PERM = (0, 1, 3, 2)


# -----------------------------------------------------------------------------
# Pallas kernel: full 2-layer LSTM recurrence + final Linear, all in VMEM.
# -----------------------------------------------------------------------------
def _lstm_kernel(x_ref,      # (T, Bb, Ip)     time-major input block
                 wih0_ref,   # (Ip, 4*Hp)      layer-0 input weights (gate-padded)
                 whh0_ref,   # (Hp, 4*Hp)      layer-0 recurrent weights
                 b0_ref,     # (1, 4*Hp)       layer-0 bias (b_ih + b_hh)
                 w1_ref,     # (2*Hp, 4*Hp)    layer-1 [W_ih1; W_hh1] stacked on K
                 b1_ref,     # (1, 4*Hp)       layer-1 bias (b_ih + b_hh)
                 wlin_ref,   # (Hp, O)         linear head weight
                 blin_ref,   # (1, O)          linear head bias
                 out_ref):   # (Bb, O)
    T, Bb, Ip = x_ref.shape
    Hp = whh0_ref.shape[0]

    # ---- Hoisted layer-0 input projection (+ bias), one MXU call ------------
    x_flat = x_ref[...].reshape(T * Bb, Ip)                     # sublane-dim merge only
    xp0 = (jnp.dot(x_flat, wih0_ref[...],
                   preferred_element_type=jnp.float32)
           + b0_ref[...])                                       # (T*Bb, 4*Hp)

    # ---- Hoisted weight reads / bias broadcast -------------------------------
    whh0 = whh0_ref[...]
    w1 = w1_ref[...]
    b1 = jnp.broadcast_to(b1_ref[...], (Bb, 4 * Hp))

    # ---- Initial states (zeros, as in the PyTorch forward) -------------------
    h0 = jnp.zeros((Bb, Hp), jnp.float32)
    c0 = jnp.zeros((Bb, Hp), jnp.float32)
    h1 = jnp.zeros((Bb, Hp), jnp.float32)
    c1 = jnp.zeros((Bb, Hp), jnp.float32)

    def gate_math(gates, c_prev):
        # Packed gate order [i, f, o, g]; every slice is a 128-lane-aligned slab.
        sig = _sigmoid(gates[:, :3 * Hp])                       # i | f | o at once
        i_g = sig[:, 0 * Hp:1 * Hp]
        f_g = sig[:, 1 * Hp:2 * Hp]
        o_g = sig[:, 2 * Hp:3 * Hp]
        g_g = jnp.tanh(gates[:, 3 * Hp:4 * Hp])
        c_new = f_g * c_prev + i_g * g_g
        h_new = o_g * jnp.tanh(c_new)
        return h_new, c_new

    # ---- Recurrence, fully unrolled (T is static) -----------------------------
    for t in range(T):
        # Layer 0: only the recurrent matmul is on the per-step critical path.
        gates0 = (xp0[t * Bb:(t + 1) * Bb, :]
                  + jnp.dot(h0, whh0, preferred_element_type=jnp.float32))
        h0, c0 = gate_math(gates0, c0)

        # Layer 1: single fused matmul  [h0_new | h1] @ [W_ih1; W_hh1].
        gates1 = (jnp.dot(jnp.concatenate([h0, h1], axis=1), w1,
                          preferred_element_type=jnp.float32)
                  + b1)
        h1, c1 = gate_math(gates1, c1)

    # ---- Linear head on the last timestep's top-layer hidden state -----------
    out_ref[...] = (jnp.dot(h1, wlin_ref[...],
                            preferred_element_type=jnp.float32)
                    + blin_ref[...]).astype(out_ref.dtype)


# -----------------------------------------------------------------------------
# Parameter packing: gate reorder + lane padding (H -> Hp) + layer-1 K-stacking.
# -----------------------------------------------------------------------------
def _pack_params(params, H, Hp, Ip):
    def pack_gate_cols(w):                      # (K, 4H) -> (K, 4Hp) packed order
        K = w.shape[0]
        w4 = w.reshape(K, 4, H)[:, _GATE_PERM, :]
        w4 = jnp.pad(w4, ((0, 0), (0, 0), (0, Hp - H)))
        return w4.reshape(K, 4 * Hp)

    def pad_rows(w, Kp):                        # (K, N) -> (Kp, N)
        return jnp.pad(w, ((0, Kp - w.shape[0]), (0, 0)))

    wih0 = pad_rows(pack_gate_cols(params["wih0"]), Ip)         # (Ip, 4Hp)
    whh0 = pad_rows(pack_gate_cols(params["whh0"]), Hp)         # (Hp, 4Hp)
    b0 = pack_gate_cols(params["b0"])                           # (1, 4Hp)
    wih1 = pad_rows(pack_gate_cols(params["wih1"]), Hp)         # (Hp, 4Hp)
    whh1 = pad_rows(pack_gate_cols(params["whh1"]), Hp)         # (Hp, 4Hp)
    w1 = jnp.concatenate([wih1, whh1], axis=0)                  # (2Hp, 4Hp)
    b1 = pack_gate_cols(params["b1"])                           # (1, 4Hp)
    wlin = pad_rows(params["wlin"], Hp)                         # (Hp, O)
    blin = params["blin"]                                       # (1, O)
    return dict(wih0=wih0, whh0=whh0, b0=b0, w1=w1, b1=b1, wlin=wlin, blin=blin)


# -----------------------------------------------------------------------------
# Wrapper (plain JAX glue: layout conversion, padding, pallas_call)
# -----------------------------------------------------------------------------
def lstm_model_forward(x, params):
    """x: (B, T, I) batch_first, as in the PyTorch module. Returns (B, O)."""
    B, T, I = x.shape
    H = params["whh0"].shape[0]
    O = params["wlin"].shape[1]
    Hp = _round_up(H, 128)                      # lane-aligned per-gate width
    Ip = _round_up(I, 8)                        # sublane-aligned feature dim

    # Pad batch to a sublane multiple; block it for cross-core parallelism.
    Bp = _round_up(B, 8)
    block_b = Bp if Bp <= 128 else 128
    Bp = _round_up(Bp, block_b)

    packed = _pack_params(params, H, Hp, Ip)

    x_tm = jnp.transpose(x, (1, 0, 2)).astype(jnp.float32)      # (T, B, I)
    x_tm = jnp.pad(x_tm, ((0, 0), (0, Bp - B), (0, Ip - I)))    # (T, Bp, Ip)

    out = pl.pallas_call(
        _lstm_kernel,
        out_shape=jax.ShapeDtypeStruct((Bp, O), jnp.float32),
        grid=(Bp // block_b,),
        in_specs=[
            pl.BlockSpec((T, block_b, Ip), lambda i: (0, i, 0)),
            pl.BlockSpec((Ip, 4 * Hp), lambda i: (0, 0)),
            pl.BlockSpec((Hp, 4 * Hp), lambda i: (0, 0)),
            pl.BlockSpec((1, 4 * Hp), lambda i: (0, 0)),
            pl.BlockSpec((2 * Hp, 4 * Hp), lambda i: (0, 0)),
            pl.BlockSpec((1, 4 * Hp), lambda i: (0, 0)),
            pl.BlockSpec((Hp, O), lambda i: (0, 0)),
            pl.BlockSpec((1, O), lambda i: (0, 0)),
        ],
        out_specs=pl.BlockSpec((block_b, O), lambda i: (i, 0)),
        compiler_params=pltpu.CompilerParams(
            dimension_semantics=("parallel",)),
    )(x_tm, packed["wih0"], packed["whh0"], packed["b0"],
      packed["w1"], packed["b1"], packed["wlin"], packed["blin"])

    return out[:B]


# -----------------------------------------------------------------------------
# Deterministic parameter init (PyTorch-style uniform(-1/sqrt(H), 1/sqrt(H)))
# -----------------------------------------------------------------------------
def init_params(key, input_size, hidden_size, output_size):
    H = hidden_size
    bound = 1.0 / jnp.sqrt(jnp.float32(H))
    ks = jax.random.split(key, 10)

    def u(k, shape):
        return jax.random.uniform(k, shape, jnp.float32, -bound, bound)

    # Layer 0: weight_ih (4H, I), weight_hh (4H, H), biases (4H,) -> pre-transposed.
    wih0 = u(ks[0], (4 * H, input_size)).T          # (I, 4H)
    whh0 = u(ks[1], (4 * H, H)).T                   # (H, 4H)
    b0 = (u(ks[2], (4 * H,)) + u(ks[3], (4 * H,))).reshape(1, 4 * H)
    # Layer 1: input is layer-0 hidden state (size H).
    wih1 = u(ks[4], (4 * H, H)).T                   # (H, 4H)
    whh1 = u(ks[5], (4 * H, H)).T                   # (H, 4H)
    b1 = (u(ks[6], (4 * H,)) + u(ks[7], (4 * H,))).reshape(1, 4 * H)
    # Linear head.
    wlin = jax.random.uniform(ks[8], (output_size, H), jnp.float32,
                              -bound, bound).T      # (H, O)
    blin = jax.random.uniform(ks[9], (output_size,), jnp.float32,
                              -bound, bound).reshape(1, output_size)

    return dict(wih0=wih0, whh0=whh0, b0=b0,
                wih1=wih1, whh1=whh1, b1=b1,
                wlin=wlin, blin=blin)


# -----------------------------------------------------------------------------
# Pure-JAX reference (mirrors torch.nn.LSTM + Linear semantics) for validation
# -----------------------------------------------------------------------------
def reference_forward(x, params):
    B, T, I = x.shape
    H = params["whh0"].shape[0]

    def cell(x_t, h, c, wih, whh, b):
        gates = x_t @ wih + h @ whh + b
        i_g = jax.nn.sigmoid(gates[:, 0 * H:1 * H])
        f_g = jax.nn.sigmoid(gates[:, 1 * H:2 * H])
        g_g = jnp.tanh(gates[:, 2 * H:3 * H])
        o_g = jax.nn.sigmoid(gates[:, 3 * H:4 * H])
        c_new = f_g * c + i_g * g_g
        h_new = o_g * jnp.tanh(c_new)
        return h_new, c_new

    def scan_fn(carry, x_t):
        h0, c0, h1, c1 = carry
        h0, c0 = cell(x_t, h0, c0, params["wih0"], params["whh0"], params["b0"])
        h1, c1 = cell(h0, h1, c1, params["wih1"], params["whh1"], params["b1"])
        return (h0, c0, h1, c1), None

    zeros = jnp.zeros((B, H), jnp.float32)
    (_, _, h1, _), _ = lax.scan(scan_fn, (zeros, zeros, zeros, zeros),
                                jnp.transpose(x, (1, 0, 2)).astype(jnp.float32))
    return h1 @ params["wlin"] + params["blin"]


if __name__ == "__main__":
    # Module defaults: input_size=1, hidden_layer_size=100, output_size=1, num_layers=2.
    # Small batch/seq: batch=2, seq=8.
    B, T, I, H, O = 2, 8, 1, 100, 1

    key = jax.random.PRNGKey(0)
    kx, kp = jax.random.split(key)
    x = jax.random.normal(kx, (B, T, I), jnp.float32)
    params = init_params(kp, I, H, O)

    out = jax.block_until_ready(lstm_model_forward(x, params))
    ref = reference_forward(x, params)

    assert out.shape == (B, O), out.shape
    assert jnp.allclose(out, ref, atol=2e-4, rtol=2e-4), (out, ref)

    print("KERNEL_OK")
</pallas_src>

<mosaic_0001>
module attributes {stable_mosaic.version = 11 : i64} {
  func.func @_lstm_kernel(%arg0: i32, %arg1: memref<8x8x8xf32, #tpu.memory_space<vmem>>, %arg2: memref<8x512xf32, #tpu.memory_space<vmem>>, %arg3: memref<128x512xf32, #tpu.memory_space<vmem>>, %arg4: memref<1x512xf32, #tpu.memory_space<vmem>>, %arg5: memref<256x512xf32, #tpu.memory_space<vmem>>, %arg6: memref<1x512xf32, #tpu.memory_space<vmem>>, %arg7: memref<128x1xf32, #tpu.memory_space<vmem>>, %arg8: memref<1x1xf32, #tpu.memory_space<vmem>>, %arg9: memref<8x1xf32, #tpu.memory_space<vmem>>) attributes {dimension_semantics = [#tpu.dimension_semantics<parallel>], iteration_bounds = array<i64: 1>, scalar_prefetch = 0 : i64, scratch_operands = 0 : i64, tpu.core_type = #tpu.core_type<tc>, window_params = [{transform_indices = @transform_0, window_bounds = array<i64: 8, 8, 8>}, {pipeline_mode = #tpu.pipeline_mode<synchronous>, transform_indices = @transform_1, window_bounds = array<i64: 8, 512>}, {pipeline_mode = #tpu.pipeline_mode<synchronous>, transform_indices = @transform_2, window_bounds = array<i64: 128, 512>}, {pipeline_mode = #tpu.pipeline_mode<synchronous>, transform_indices = @transform_3, window_bounds = array<i64: 1, 512>}, {pipeline_mode = #tpu.pipeline_mode<synchronous>, transform_indices = @transform_4, window_bounds = array<i64: 256, 512>}, {pipeline_mode = #tpu.pipeline_mode<synchronous>, transform_indices = @transform_5, window_bounds = array<i64: 1, 512>}, {pipeline_mode = #tpu.pipeline_mode<synchronous>, transform_indices = @transform_6, window_bounds = array<i64: 128, 1>}, {pipeline_mode = #tpu.pipeline_mode<synchronous>, transform_indices = @transform_7, window_bounds = array<i64: 1, 1>}, {transform_indices = @transform_8, window_bounds = array<i64: 8, 1>}]} {
    %c0 = arith.constant 0 : index
    %c0_0 = arith.constant 0 : index
    %c0_1 = arith.constant 0 : index
    %0 = vector.load %arg1[%c0, %c0_0, %c0_1] : memref<8x8x8xf32, #tpu.memory_space<vmem>>, vector<8x8x8xf32>
    %1 = vector.shape_cast %0 : vector<8x8x8xf32> to vector<64x8xf32>
    %c0_2 = arith.constant 0 : index
    %c0_3 = arith.constant 0 : index
    %2 = vector.load %arg2[%c0_2, %c0_3] : memref<8x512xf32, #tpu.memory_space<vmem>>, vector<8x512xf32>
    %cst = arith.constant dense<0.000000e+00> : vector<64x512xf32>
    %3 = tpu.matmul %1, %2, %cst {dimension_numbers = #tpu.dot_dimension_numbers<[1], [0], [0], [1], [0, 0, 1, 1], [], []>} : vector<64x8xf32>, vector<8x512xf32>, vector<64x512xf32> -> vector<64x512xf32>
    %c0_4 = arith.constant 0 : index
    %c0_5 = arith.constant 0 : index
    %4 = vector.load %arg4[%c0_4, %c0_5] : memref<1x512xf32, #tpu.memory_space<vmem>>, vector<1x512xf32>
    %5 = vector.broadcast %4 : vector<1x512xf32> to vector<64x512xf32>
    %6 = arith.addf %3, %5 : vector<64x512xf32>
    %c0_6 = arith.constant 0 : index
    %c0_7 = arith.constant 0 : index
    %7 = vector.load %arg3[%c0_6, %c0_7] : memref<128x512xf32, #tpu.memory_space<vmem>>, vector<128x512xf32>
    %c0_8 = arith.constant 0 : index
    %c0_9 = arith.constant 0 : index
    %8 = vector.load %arg5[%c0_8, %c0_9] : memref<256x512xf32, #tpu.memory_space<vmem>>, vector<256x512xf32>
    %c0_10 = arith.constant 0 : index
    %c0_11 = arith.constant 0 : index
    %9 = vector.load %arg6[%c0_10, %c0_11] : memref<1x512xf32, #tpu.memory_space<vmem>>, vector<1x512xf32>
    %10 = vector.shape_cast %9 : vector<1x512xf32> to vector<1x512xf32>
    %11 = vector.broadcast %10 : vector<1x512xf32> to vector<8x512xf32>
    %cst_12 = arith.constant 0.000000e+00 : f32
    %12 = vector.broadcast %cst_12 : f32 to vector<8x128xf32>
    %cst_13 = arith.constant 0.000000e+00 : f32
    %13 = vector.broadcast %cst_13 : f32 to vector<8x128xf32>
    %cst_14 = arith.constant 0.000000e+00 : f32
    %14 = vector.broadcast %cst_14 : f32 to vector<8x128xf32>
    %cst_15 = arith.constant 0.000000e+00 : f32
    %15 = vector.broadcast %cst_15 : f32 to vector<8x128xf32>
    %16 = vector.extract_strided_slice %6 {offsets = [0, 0], sizes = [8, 512], strides = [1, 1]} : vector<64x512xf32> to vector<8x512xf32>
    %cst_16 = arith.constant dense<0.000000e+00> : vector<8x512xf32>
    %17 = tpu.matmul %12, %7, %cst_16 {dimension_numbers = #tpu.dot_dimension_numbers<[1], [0], [0], [1], [0, 0, 1, 1], [], []>} : vector<8x128xf32>, vector<128x512xf32>, vector<8x512xf32> -> vector<8x512xf32>
    %18 = arith.addf %16, %17 : vector<8x512xf32>
    %19 = vector.extract_strided_slice %18 {offsets = [0, 0], sizes = [8, 384], strides = [1, 1]} : vector<8x512xf32> to vector<8x384xf32>
    %cst_17 = arith.constant 5.000000e-01 : f32
    %20 = vector.broadcast %cst_17 : f32 to vector<8x384xf32>
    %21 = arith.mulf %20, %19 : vector<8x384xf32>
    %22 = math.tanh %21 : vector<8x384xf32>
    %cst_18 = arith.constant 5.000000e-01 : f32
    %23 = vector.broadcast %cst_18 : f32 to vector<8x384xf32>
    %24 = arith.mulf %23, %22 : vector<8x384xf32>
    %cst_19 = arith.constant 5.000000e-01 : f32
    %25 = vector.broadcast %cst_19 : f32 to vector<8x384xf32>
    %26 = arith.addf %24, %25 : vector<8x384xf32>
    %27 = vector.extract_strided_slice %26 {offsets = [0, 0], sizes = [8, 128], strides = [1, 1]} : vector<8x384xf32> to vector<8x128xf32>
    %28 = vector.extract_strided_slice %26 {offsets = [0, 128], sizes = [8, 128], strides = [1, 1]} : vector<8x384xf32> to vector<8x128xf32>
    %29 = vector.extract_strided_slice %26 {offsets = [0, 256], sizes = [8, 128], strides = [1, 1]} : vector<8x384xf32> to vector<8x128xf32>
    %30 = vector.extract_strided_slice %18 {offsets = [0, 384], sizes = [8, 128], strides = [1, 1]} : vector<8x512xf32> to vector<8x128xf32>
    %31 = math.tanh %30 : vector<8x128xf32>
    %32 = arith.mulf %28, %13 : vector<8x128xf32>
    %33 = arith.mulf %27, %31 : vector<8x128xf32>
    %34 = arith.addf %32, %33 : vector<8x128xf32>
    %35 = math.tanh %34 : vector<8x128xf32>
    %36 = arith.mulf %29, %35 : vector<8x128xf32>
    %37 = tpu.concatenate %36, %14 in 1 : vector<8x128xf32>, vector<8x128xf32> -> vector<8x256xf32>
    %cst_20 = arith.constant dense<0.000000e+00> : vector<8x512xf32>
    %38 = tpu.matmul %37, %8, %cst_20 {dimension_numbers = #tpu.dot_dimension_numbers<[1], [0], [0], [1], [0, 0, 1, 1], [], []>} : vector<8x256xf32>, vector<256x512xf32>, vector<8x512xf32> -> vector<8x512xf32>
    %39 = arith.addf %38, %11 : vector<8x512xf32>
    %40 = vector.extract_strided_slice %39 {offsets = [0, 0], sizes = [8, 384], strides = [1, 1]} : vector<8x512xf32> to vector<8x384xf32>
    %cst_21 = arith.constant 5.000000e-01 : f32
    %41 = vector.broadcast %cst_21 : f32 to vector<8x384xf32>
    %42 = arith.mulf %41, %40 : vector<8x384xf32>
    %43 = math.tanh %42 : vector<8x384xf32>
    %cst_22 = arith.constant 5.000000e-01 : f32
    %44 = vector.broadcast %cst_22 : f32 to vector<8x384xf32>
    %45 = arith.mulf %44, %43 : vector<8x384xf32>
    %cst_23 = arith.constant 5.000000e-01 : f32
    %46 = vector.broadcast %cst_23 : f32 to vector<8x384xf32>
    %47 = arith.addf %45, %46 : vector<8x384xf32>
    %48 = vector.extract_strided_slice %47 {offsets = [0, 0], sizes = [8, 128], strides = [1, 1]} : vector<8x384xf32> to vector<8x128xf32>
    %49 = vector.extract_strided_slice %47 {offsets = [0, 128], sizes = [8, 128], strides = [1, 1]} : vector<8x384xf32> to vector<8x128xf32>
    %50 = vector.extract_strided_slice %47 {offsets = [0, 256], sizes = [8, 128], strides = [1, 1]} : vector<8x384xf32> to vector<8x128xf32>
    %51 = vector.extract_strided_slice %39 {offsets = [0, 384], sizes = [8, 128], strides = [1, 1]} : vector<8x512xf32> to vector<8x128xf32>
    %52 = math.tanh %51 : vector<8x128xf32>
    %53 = arith.mulf %49, %15 : vector<8x128xf32>
    %54 = arith.mulf %48, %52 : vector<8x128xf32>
    %55 = arith.addf %53, %54 : vector<8x128xf32>
    %56 = math.tanh %55 : vector<8x128xf32>
    %57 = arith.mulf %50, %56 : vector<8x128xf32>
    %58 = vector.extract_strided_slice %6 {offsets = [8, 0], sizes = [8, 512], strides = [1, 1]} : vector<64x512xf32> to vector<8x512xf32>
    %cst_24 = arith.constant dense<0.000000e+00> : vector<8x512xf32>
    %59 = tpu.matmul %36, %7, %cst_24 {dimension_numbers = #tpu.dot_dimension_numbers<[1], [0], [0], [1], [0, 0, 1, 1], [], []>} : vector<8x128xf32>, vector<128x512xf32>, vector<8x512xf32> -> vector<8x512xf32>
    %60 = arith.addf %58, %59 : vector<8x512xf32>
    %61 = vector.extract_strided_slice %60 {offsets = [0, 0], sizes = [8, 384], strides = [1, 1]} : vector<8x512xf32> to vector<8x384xf32>
    %cst_25 = arith.constant 5.000000e-01 : f32
    %62 = vector.broadcast %cst_25 : f32 to vector<8x384xf32>
    %63 = arith.mulf %62, %61 : vector<8x384xf32>
    %64 = math.tanh %63 : vector<8x384xf32>
    %cst_26 = arith.constant 5.000000e-01 : f32
    %65 = vector.broadcast %cst_26 : f32 to vector<8x384xf32>
    %66 = arith.mulf %65, %64 : vector<8x384xf32>
    %cst_27 = arith.constant 5.000000e-01 : f32
    %67 = vector.broadcast %cst_27 : f32 to vector<8x384xf32>
    %68 = arith.addf %66, %67 : vector<8x384xf32>
    %69 = vector.extract_strided_slice %68 {offsets = [0, 0], sizes = [8, 128], strides = [1, 1]} : vector<8x384xf32> to vector<8x128xf32>
    %70 = vector.extract_strided_slice %68 {offsets = [0, 128], sizes = [8, 128], strides = [1, 1]} : vector<8x384xf32> to vector<8x128xf32>
    %71 = vector.extract_strided_slice %68 {offsets = [0, 256], sizes = [8, 128], strides = [1, 1]} : vector<8x384xf32> to vector<8x128xf32>
    %72 = vector.extract_strided_slice %60 {offsets = [0, 384], sizes = [8, 128], strides = [1, 1]} : vector<8x512xf32> to vector<8x128xf32>
    %73 = math.tanh %72 : vector<8x128xf32>
    %74 = arith.mulf %70, %34 : vector<8x128xf32>
    %75 = arith.mulf %69, %73 : vector<8x128xf32>
    %76 = arith.addf %74, %75 : vector<8x128xf32>
    %77 = math.tanh %76 : vector<8x128xf32>
    %78 = arith.mulf %71, %77 : vector<8x128xf32>
    %79 = tpu.concatenate %78, %57 in 1 : vector<8x128xf32>, vector<8x128xf32> -> vector<8x256xf32>
    %cst_28 = arith.constant dense<0.000000e+00> : vector<8x512xf32>
    %80 = tpu.matmul %79, %8, %cst_28 {dimension_numbers = #tpu.dot_dimension_numbers<[1], [0], [0], [1], [0, 0, 1, 1], [], []>} : vector<8x256xf32>, vector<256x512xf32>, vector<8x512xf32> -> vector<8x512xf32>
    %81 = arith.addf %80, %11 : vector<8x512xf32>
    %82 = vector.extract_strided_slice %81 {offsets = [0, 0], sizes = [8, 384], strides = [1, 1]} : vector<8x512xf32> to vector<8x384xf32>
    %cst_29 = arith.constant 5.000000e-01 : f32
    %83 = vector.broadcast %cst_29 : f32 to vector<8x384xf32>
    %84 = arith.mulf %83, %82 : vector<8x384xf32>
    %85 = math.tanh %84 : vector<8x384xf32>
    %cst_30 = arith.constant 5.000000e-01 : f32
    %86 = vector.broadcast %cst_30 : f32 to vector<8x384xf32>
    %87 = arith.mulf %86, %85 : vector<8x384xf32>
    %cst_31 = arith.constant 5.000000e-01 : f32
    %88 = vector.broadcast %cst_31 : f32 to vector<8x384xf32>
    %89 = arith.addf %87, %88 : vector<8x384xf32>
    %90 = vector.extract_strided_slice %89 {offsets = [0, 0], sizes = [8, 128], strides = [1, 1]} : vector<8x384xf32> to vector<8x128xf32>
    %91 = vector.extract_strided_slice %89 {offsets = [0, 128], sizes = [8, 128], strides = [1, 1]} : vector<8x384xf32> to vector<8x128xf32>
    %92 = vector.extract_strided_slice %89 {offsets = [0, 256], sizes = [8, 128], strides = [1, 1]} : vector<8x384xf32> to vector<8x128xf32>
    %93 = vector.extract_strided_slice %81 {offsets = [0, 384], sizes = [8, 128], strides = [1, 1]} : vector<8x512xf32> to vector<8x128xf32>
    %94 = math.tanh %93 : vector<8x128xf32>
    %95 = arith.mulf %91, %55 : vector<8x128xf32>
    %96 = arith.mulf %90, %94 : vector<8x128xf32>
    %97 = arith.addf %95, %96 : vector<8x128xf32>
    %98 = math.tanh %97 : vector<8x128xf32>
    %99 = arith.mulf %92, %98 : vector<8x128xf32>
    %100 = vector.extract_strided_slice %6 {offsets = [16, 0], sizes = [8, 512], strides = [1, 1]} : vector<64x512xf32> to vector<8x512xf32>
    %cst_32 = arith.constant dense<0.000000e+00> : vector<8x512xf32>
    %101 = tpu.matmul %78, %7, %cst_32 {dimension_numbers = #tpu.dot_dimension_numbers<[1], [0], [0], [1], [0, 0, 1, 1], [], []>} : vector<8x128xf32>, vector<128x512xf32>, vector<8x512xf32> -> vector<8x512xf32>
    %102 = arith.addf %100, %101 : vector<8x512xf32>
    %103 = vector.extract_strided_slice %102 {offsets = [0, 0], sizes = [8, 384], strides = [1, 1]} : vector<8x512xf32> to vector<8x384xf32>
    %cst_33 = arith.constant 5.000000e-01 : f32
    %104 = vector.broadcast %cst_33 : f32 to vector<8x384xf32>
    %105 = arith.mulf %104, %103 : vector<8x384xf32>
    %106 = math.tanh %105 : vector<8x384xf32>
    %cst_34 = arith.constant 5.000000e-01 : f32
    %107 = vector.broadcast %cst_34 : f32 to vector<8x384xf32>
    %108 = arith.mulf %107, %106 : vector<8x384xf32>
    %cst_35 = arith.constant 5.000000e-01 : f32
    %109 = vector.broadcast %cst_35 : f32 to vector<8x384xf32>
    %110 = arith.addf %108, %109 : vector<8x384xf32>
    %111 = vector.extract_strided_slice %110 {offsets = [0, 0], sizes = [8, 128], strides = [1, 1]} : vector<8x384xf32> to vector<8x128xf32>
    %112 = vector.extract_strided_slice %110 {offsets = [0, 128], sizes = [8, 128], strides = [1, 1]} : vector<8x384xf32> to vector<8x128xf32>
    %113 = vector.extract_strided_slice %110 {offsets = [0, 256], sizes = [8, 128], strides = [1, 1]} : vector<8x384xf32> to vector<8x128xf32>
    %114 = vector.extract_strided_slice %102 {offsets = [0, 384], sizes = [8, 128], strides = [1, 1]} : vector<8x512xf32> to vector<8x128xf32>
    %115 = math.tanh %114 : vector<8x128xf32>
    %116 = arith.mulf %112, %76 : vector<8x128xf32>
    %117 = arith.mulf %111, %115 : vector<8x128xf32>
    %118 = arith.addf %116, %117 : vector<8x128xf32>
    %119 = math.tanh %118 : vector<8x128xf32>
    %120 = arith.mulf %113, %119 : vector<8x128xf32>
    %121 = tpu.concatenate %120, %99 in 1 : vector<8x128xf32>, vector<8x128xf32> -> vector<8x256xf32>
    %cst_36 = arith.constant dense<0.000000e+00> : vector<8x512xf32>
    %122 = tpu.matmul %121, %8, %cst_36 {dimension_numbers = #tpu.dot_dimension_numbers<[1], [0], [0], [1], [0, 0, 1, 1], [], []>} : vector<8x256xf32>, vector<256x512xf32>, vector<8x512xf32> -> vector<8x512xf32>
    %123 = arith.addf %122, %11 : vector<8x512xf32>
    %124 = vector.extract_strided_slice %123 {offsets = [0, 0], sizes = [8, 384], strides = [1, 1]} : vector<8x512xf32> to vector<8x384xf32>
    %cst_37 = arith.constant 5.000000e-01 : f32
    %125 = vector.broadcast %cst_37 : f32 to vector<8x384xf32>
    %126 = arith.mulf %125, %124 : vector<8x384xf32>
    %127 = math.tanh %126 : vector<8x384xf32>
    %cst_38 = arith.constant 5.000000e-01 : f32
    %128 = vector.broadcast %cst_38 : f32 to vector<8x384xf32>
    %129 = arith.mulf %128, %127 : vector<8x384xf32>
    %cst_39 = arith.constant 5.000000e-01 : f32
    %130 = vector.broadcast %cst_39 : f32 to vector<8x384xf32>
    %131 = arith.addf %129, %130 : vector<8x384xf32>
    %132 = vector.extract_strided_slice %131 {offsets = [0, 0], sizes = [8, 128], strides = [1, 1]} : vector<8x384xf32> to vector<8x128xf32>
    %133 = vector.extract_strided_slice %131 {offsets = [0, 128], sizes = [8, 128], strides = [1, 1]} : vector<8x384xf32> to vector<8x128xf32>
    %134 = vector.extract_strided_slice %131 {offsets = [0, 256], sizes = [8, 128], strides = [1, 1]} : vector<8x384xf32> to vector<8x128xf32>
    %135 = vector.extract_strided_slice %123 {offsets = [0, 384], sizes = [8, 128], strides = [1, 1]} : vector<8x512xf32> to vector<8x128xf32>
    %136 = math.tanh %135 : vector<8x128xf32>
    %137 = arith.mulf %133, %97 : vector<8x128xf32>
    %138 = arith.mulf %132, %136 : vector<8x128xf32>
    %139 = arith.addf %137, %138 : vector<8x128xf32>
    %140 = math.tanh %139 : vector<8x128xf32>
    %141 = arith.mulf %134, %140 : vector<8x128xf32>
    %142 = vector.extract_strided_slice %6 {offsets = [24, 0], sizes = [8, 512], strides = [1, 1]} : vector<64x512xf32> to vector<8x512xf32>
    %cst_40 = arith.constant dense<0.000000e+00> : vector<8x512xf32>
    %143 = tpu.matmul %120, %7, %cst_40 {dimension_numbers = #tpu.dot_dimension_numbers<[1], [0], [0], [1], [0, 0, 1, 1], [], []>} : vector<8x128xf32>, vector<128x512xf32>, vector<8x512xf32> -> vector<8x512xf32>
    %144 = arith.addf %142, %143 : vector<8x512xf32>
    %145 = vector.extract_strided_slice %144 {offsets = [0, 0], sizes = [8, 384], strides = [1, 1]} : vector<8x512xf32> to vector<8x384xf32>
    %cst_41 = arith.constant 5.000000e-01 : f32
    %146 = vector.broadcast %cst_41 : f32 to vector<8x384xf32>
    %147 = arith.mulf %146, %145 : vector<8x384xf32>
    %148 = math.tanh %147 : vector<8x384xf32>
    %cst_42 = arith.constant 5.000000e-01 : f32
    %149 = vector.broadcast %cst_42 : f32 to vector<8x384xf32>
    %150 = arith.mulf %149, %148 : vector<8x384xf32>
    %cst_43 = arith.constant 5.000000e-01 : f32
    %151 = vector.broadcast %cst_43 : f32 to vector<8x384xf32>
    %152 = arith.addf %150, %151 : vector<8x384xf32>
    %153 = vector.extract_strided_slice %152 {offsets = [0, 0], sizes = [8, 128], strides = [1, 1]} : vector<8x384xf32> to vector<8x128xf32>
    %154 = vector.extract_strided_slice %152 {offsets = [0, 128], sizes = [8, 128], strides = [1, 1]} : vector<8x384xf32> to vector<8x128xf32>
    %155 = vector.extract_strided_slice %152 {offsets = [0, 256], sizes = [8, 128], strides = [1, 1]} : vector<8x384xf32> to vector<8x128xf32>
    %156 = vector.extract_strided_slice %144 {offsets = [0, 384], sizes = [8, 128], strides = [1, 1]} : vector<8x512xf32> to vector<8x128xf32>
    %157 = math.tanh %156 : vector<8x128xf32>
    %158 = arith.mulf %154, %118 : vector<8x128xf32>
    %159 = arith.mulf %153, %157 : vector<8x128xf32>
    %160 = arith.addf %158, %159 : vector<8x128xf32>
    %161 = math.tanh %160 : vector<8x128xf32>
    %162 = arith.mulf %155, %161 : vector<8x128xf32>
    %163 = tpu.concatenate %162, %141 in 1 : vector<8x128xf32>, vector<8x128xf32> -> vector<8x256xf32>
    %cst_44 = arith.constant dense<0.000000e+00> : vector<8x512xf32>
    %164 = tpu.matmul %163, %8, %cst_44 {dimension_numbers = #tpu.dot_dimension_numbers<[1], [0], [0], [1], [0, 0, 1, 1], [], []>} : vector<8x256xf32>, vector<256x512xf32>, vector<8x512xf32> -> vector<8x512xf32>
    %165 = arith.addf %164, %11 : vector<8x512xf32>
    %166 = vector.extract_strided_slice %165 {offsets = [0, 0], sizes = [8, 384], strides = [1, 1]} : vector<8x512xf32> to vector<8x384xf32>
    %cst_45 = arith.constant 5.000000e-01 : f32
    %167 = vector.broadcast %cst_45 : f32 to vector<8x384xf32>
    %168 = arith.mulf %167, %166 : vector<8x384xf32>
    %169 = math.tanh %168 : vector<8x384xf32>
    %cst_46 = arith.constant 5.000000e-01 : f32
    %170 = vector.broadcast %cst_46 : f32 to vector<8x384xf32>
    %171 = arith.mulf %170, %169 : vector<8x384xf32>
    %cst_47 = arith.constant 5.000000e-01 : f32
    %172 = vector.broadcast %cst_47 : f32 to vector<8x384xf32>
    %173 = arith.addf %171, %172 : vector<8x384xf32>
    %174 = vector.extract_strided_slice %173 {offsets = [0, 0], sizes = [8, 128], strides = [1, 1]} : vector<8x384xf32> to vector<8x128xf32>
    %175 = vector.extract_strided_slice %173 {offsets = [0, 128], sizes = [8, 128], strides = [1, 1]} : vector<8x384xf32> to vector<8x128xf32>
    %176 = vector.extract_strided_slice %173 {offsets = [0, 256], sizes = [8, 128], strides = [1, 1]} : vector<8x384xf32> to vector<8x128xf32>
    %177 = vector.extract_strided_slice %165 {offsets = [0, 384], sizes = [8, 128], strides = [1, 1]} : vector<8x512xf32> to vector<8x128xf32>
    %178 = math.tanh %177 : vector<8x128xf32>
    %179 = arith.mulf %175, %139 : vector<8x128xf32>
    %180 = arith.mulf %174, %178 : vector<8x128xf32>
    %181 = arith.addf %179, %180 : vector<8x128xf32>
    %182 = math.tanh %181 : vector<8x128xf32>
    %183 = arith.mulf %176, %182 : vector<8x128xf32>
    %184 = vector.extract_strided_slice %6 {offsets = [32, 0], sizes = [8, 512], strides = [1, 1]} : vector<64x512xf32> to vector<8x512xf32>
    %cst_48 = arith.constant dense<0.000000e+00> : vector<8x512xf32>
    %185 = tpu.matmul %162, %7, %cst_48 {dimension_numbers = #tpu.dot_dimension_numbers<[1], [0], [0], [1], [0, 0, 1, 1], [], []>} : vector<8x128xf32>, vector<128x512xf32>, vector<8x512xf32> -> vector<8x512xf32>
    %186 = arith.addf %184, %185 : vector<8x512xf32>
    %187 = vector.extract_strided_slice %186 {offsets = [0, 0], sizes = [8, 384], strides = [1, 1]} : vector<8x512xf32> to vector<8x384xf32>
    %cst_49 = arith.constant 5.000000e-01 : f32
    %188 = vector.broadcast %cst_49 : f32 to vector<8x384xf32>
    %189 = arith.mulf %188, %187 : vector<8x384xf32>
    %190 = math.tanh %189 : vector<8x384xf32>
    %cst_50 = arith.constant 5.000000e-01 : f32
    %191 = vector.broadcast %cst_50 : f32 to vector<8x384xf32>
    %192 = arith.mulf %191, %190 : vector<8x384xf32>
    %cst_51 = arith.constant 5.000000e-01 : f32
    %193 = vector.broadcast %cst_51 : f32 to vector<8x384xf32>
    %194 = arith.addf %192, %193 : vector<8x384xf32>
    %195 = vector.extract_strided_slice %194 {offsets = [0, 0], sizes = [8, 128], strides = [1, 1]} : vector<8x384xf32> to vector<8x128xf32>
    %196 = vector.extract_strided_slice %194 {offsets = [0, 128], sizes = [8, 128], strides = [1, 1]} : vector<8x384xf32> to vector<8x128xf32>
    %197 = vector.extract_strided_slice %194 {offsets = [0, 256], sizes = [8, 128], strides = [1, 1]} : vector<8x384xf32> to vector<8x128xf32>
    %198 = vector.extract_strided_slice %186 {offsets = [0, 384], sizes = [8, 128], strides = [1, 1]} : vector<8x512xf32> to vector<8x128xf32>
    %199 = math.tanh %198 : vector<8x128xf32>
    %200 = arith.mulf %196, %160 : vector<8x128xf32>
    %201 = arith.mulf %195, %199 : vector<8x128xf32>
    %202 = arith.addf %200, %201 : vector<8x128xf32>
    %203 = math.tanh %202 : vector<8x128xf32>
    %204 = arith.mulf %197, %203 : vector<8x128xf32>
    %205 = tpu.concatenate %204, %183 in 1 : vector<8x128xf32>, vector<8x128xf32> -> vector<8x256xf32>
    %cst_52 = arith.constant dense<0.000000e+00> : vector<8x512xf32>
    %206 = tpu.matmul %205, %8, %cst_52 {dimension_numbers = #tpu.dot_dimension_numbers<[1], [0], [0], [1], [0, 0, 1, 1], [], []>} : vector<8x256xf32>, vector<256x512xf32>, vector<8x512xf32> -> vector<8x512xf32>
    %207 = arith.addf %206, %11 : vector<8x512xf32>
    %208 = vector.extract_strided_slice %207 {offsets = [0, 0], sizes = [8, 384], strides = [1, 1]} : vector<8x512xf32> to vector<8x384xf32>
    %cst_53 = arith.constant 5.000000e-01 : f32
    %209 = vector.broadcast %cst_53 : f32 to vector<8x384xf32>
    %210 = arith.mulf %209, %208 : vector<8x384xf32>
    %211 = math.tanh %210 : vector<8x384xf32>
    %cst_54 = arith.constant 5.000000e-01 : f32
    %212 = vector.broadcast %cst_54 : f32 to vector<8x384xf32>
    %213 = arith.mulf %212, %211 : vector<8x384xf32>
    %cst_55 = arith.constant 5.000000e-01 : f32
    %214 = vector.broadcast %cst_55 : f32 to vector<8x384xf32>
    %215 = arith.addf %213, %214 : vector<8x384xf32>
    %216 = vector.extract_strided_slice %215 {offsets = [0, 0], sizes = [8, 128], strides = [1, 1]} : vector<8x384xf32> to vector<8x128xf32>
    %217 = vector.extract_strided_slice %215 {offsets = [0, 128], sizes = [8, 128], strides = [1, 1]} : vector<8x384xf32> to vector<8x128xf32>
    %218 = vector.extract_strided_slice %215 {offsets = [0, 256], sizes = [8, 128], strides = [1, 1]} : vector<8x384xf32> to vector<8x128xf32>
    %219 = vector.extract_strided_slice %207 {offsets = [0, 384], sizes = [8, 128], strides = [1, 1]} : vector<8x512xf32> to vector<8x128xf32>
    %220 = math.tanh %219 : vector<8x128xf32>
    %221 = arith.mulf %217, %181 : vector<8x128xf32>
    %222 = arith.mulf %216, %220 : vector<8x128xf32>
    %223 = arith.addf %221, %222 : vector<8x128xf32>
    %224 = math.tanh %223 : vector<8x128xf32>
    %225 = arith.mulf %218, %224 : vector<8x128xf32>
    %226 = vector.extract_strided_slice %6 {offsets = [40, 0], sizes = [8, 512], strides = [1, 1]} : vector<64x512xf32> to vector<8x512xf32>
    %cst_56 = arith.constant dense<0.000000e+00> : vector<8x512xf32>
    %227 = tpu.matmul %204, %7, %cst_56 {dimension_numbers = #tpu.dot_dimension_numbers<[1], [0], [0], [1], [0, 0, 1, 1], [], []>} : vector<8x128xf32>, vector<128x512xf32>, vector<8x512xf32> -> vector<8x512xf32>
    %228 = arith.addf %226, %227 : vector<8x512xf32>
    %229 = vector.extract_strided_slice %228 {offsets = [0, 0], sizes = [8, 384], strides = [1, 1]} : vector<8x512xf32> to vector<8x384xf32>
    %cst_57 = arith.constant 5.000000e-01 : f32
    %230 = vector.broadcast %cst_57 : f32 to vector<8x384xf32>
    %231 = arith.mulf %230, %229 : vector<8x384xf32>
    %232 = math.tanh %231 : vector<8x384xf32>
    %cst_58 = arith.constant 5.000000e-01 : f32
    %233 = vector.broadcast %cst_58 : f32 to vector<8x384xf32>
    %234 = arith.mulf %233, %232 : vector<8x384xf32>
    %cst_59 = arith.constant 5.000000e-01 : f32
    %235 = vector.broadcast %cst_59 : f32 to vector<8x384xf32>
    %236 = arith.addf %234, %235 : vector<8x384xf32>
    %237 = vector.extract_strided_slice %236 {offsets = [0, 0], sizes = [8, 128], strides = [1, 1]} : vector<8x384xf32> to vector<8x128xf32>
    %238 = vector.extract_strided_slice %236 {offsets = [0, 128], sizes = [8, 128], strides = [1, 1]} : vector<8x384xf32> to vector<8x128xf32>
    %239 = vector.extract_strided_slice %236 {offsets = [0, 256], sizes = [8, 128], strides = [1, 1]} : vector<8x384xf32> to vector<8x128xf32>
    %240 = vector.extract_strided_slice %228 {offsets = [0, 384], sizes = [8, 128], strides = [1, 1]} : vector<8x512xf32> to vector<8x128xf32>
    %241 = math.tanh %240 : vector<8x128xf32>
    %242 = arith.mulf %238, %202 : vector<8x128xf32>
    %243 = arith.mulf %237, %241 : vector<8x128xf32>
    %244 = arith.addf %242, %243 : vector<8x128xf32>
    %245 = math.tanh %244 : vector<8x128xf32>
    %246 = arith.mulf %239, %245 : vector<8x128xf32>
    %247 = tpu.concatenate %246, %225 in 1 : vector<8x128xf32>, vector<8x128xf32> -> vector<8x256xf32>
    %cst_60 = arith.constant dense<0.000000e+00> : vector<8x512xf32>
    %248 = tpu.matmul %247, %8, %cst_60 {dimension_numbers = #tpu.dot_dimension_numbers<[1], [0], [0], [1], [0, 0, 1, 1], [], []>} : vector<8x256xf32>, vector<256x512xf32>, vector<8x512xf32> -> vector<8x512xf32>
    %249 = arith.addf %248, %11 : vector<8x512xf32>
    %250 = vector.extract_strided_slice %249 {offsets = [0, 0], sizes = [8, 384], strides = [1, 1]} : vector<8x512xf32> to vector<8x384xf32>
    %cst_61 = arith.constant 5.000000e-01 : f32
    %251 = vector.broadcast %cst_61 : f32 to vector<8x384xf32>
    %252 = arith.mulf %251, %250 : vector<8x384xf32>
    %253 = math.tanh %252 : vector<8x384xf32>
    %cst_62 = arith.constant 5.000000e-01 : f32
    %254 = vector.broadcast %cst_62 : f32 to vector<8x384xf32>
    %255 = arith.mulf %254, %253 : vector<8x384xf32>
    %cst_63 = arith.constant 5.000000e-01 : f32
    %256 = vector.broadcast %cst_63 : f32 to vector<8x384xf32>
    %257 = arith.addf %255, %256 : vector<8x384xf32>
    %258 = vector.extract_strided_slice %257 {offsets = [0, 0], sizes = [8, 128], strides = [1, 1]} : vector<8x384xf32> to vector<8x128xf32>
    %259 = vector.extract_strided_slice %257 {offsets = [0, 128], sizes = [8, 128], strides = [1, 1]} : vector<8x384xf32> to vector<8x128xf32>
    %260 = vector.extract_strided_slice %257 {offsets = [0, 256], sizes = [8, 128], strides = [1, 1]} : vector<8x384xf32> to vector<8x128xf32>
    %261 = vector.extract_strided_slice %249 {offsets = [0, 384], sizes = [8, 128], strides = [1, 1]} : vector<8x512xf32> to vector<8x128xf32>
    %262 = math.tanh %261 : vector<8x128xf32>
    %263 = arith.mulf %259, %223 : vector<8x128xf32>
    %264 = arith.mulf %258, %262 : vector<8x128xf32>
    %265 = arith.addf %263, %264 : vector<8x128xf32>
    %266 = math.tanh %265 : vector<8x128xf32>
    %267 = arith.mulf %260, %266 : vector<8x128xf32>
    %268 = vector.extract_strided_slice %6 {offsets = [48, 0], sizes = [8, 512], strides = [1, 1]} : vector<64x512xf32> to vector<8x512xf32>
    %cst_64 = arith.constant dense<0.000000e+00> : vector<8x512xf32>
    %269 = tpu.matmul %246, %7, %cst_64 {dimension_numbers = #tpu.dot_dimension_numbers<[1], [0], [0], [1], [0, 0, 1, 1], [], []>} : vector<8x128xf32>, vector<128x512xf32>, vector<8x512xf32> -> vector<8x512xf32>
    %270 = arith.addf %268, %269 : vector<8x512xf32>
    %271 = vector.extract_strided_slice %270 {offsets = [0, 0], sizes = [8, 384], strides = [1, 1]} : vector<8x512xf32> to vector<8x384xf32>
    %cst_65 = arith.constant 5.000000e-01 : f32
    %272 = vector.broadcast %cst_65 : f32 to vector<8x384xf32>
    %273 = arith.mulf %272, %271 : vector<8x384xf32>
    %274 = math.tanh %273 : vector<8x384xf32>
    %cst_66 = arith.constant 5.000000e-01 : f32
    %275 = vector.broadcast %cst_66 : f32 to vector<8x384xf32>
    %276 = arith.mulf %275, %274 : vector<8x384xf32>
    %cst_67 = arith.constant 5.000000e-01 : f32
    %277 = vector.broadcast %cst_67 : f32 to vector<8x384xf32>
    %278 = arith.addf %276, %277 : vector<8x384xf32>
    %279 = vector.extract_strided_slice %278 {offsets = [0, 0], sizes = [8, 128], strides = [1, 1]} : vector<8x384xf32> to vector<8x128xf32>
    %280 = vector.extract_strided_slice %278 {offsets = [0, 128], sizes = [8, 128], strides = [1, 1]} : vector<8x384xf32> to vector<8x128xf32>
    %281 = vector.extract_strided_slice %278 {offsets = [0, 256], sizes = [8, 128], strides = [1, 1]} : vector<8x384xf32> to vector<8x128xf32>
    %282 = vector.extract_strided_slice %270 {offsets = [0, 384], sizes = [8, 128], strides = [1, 1]} : vector<8x512xf32> to vector<8x128xf32>
    %283 = math.tanh %282 : vector<8x128xf32>
    %284 = arith.mulf %280, %244 : vector<8x128xf32>
    %285 = arith.mulf %279, %283 : vector<8x128xf32>
    %286 = arith.addf %284, %285 : vector<8x128xf32>
    %287 = math.tanh %286 : vector<8x128xf32>
    %288 = arith.mulf %281, %287 : vector<8x128xf32>
    %289 = tpu.concatenate %288, %267 in 1 : vector<8x128xf32>, vector<8x128xf32> -> vector<8x256xf32>
    %cst_68 = arith.constant dense<0.000000e+00> : vector<8x512xf32>
    %290 = tpu.matmul %289, %8, %cst_68 {dimension_numbers = #tpu.dot_dimension_numbers<[1], [0], [0], [1], [0, 0, 1, 1], [], []>} : vector<8x256xf32>, vector<256x512xf32>, vector<8x512xf32> -> vector<8x512xf32>
    %291 = arith.addf %290, %11 : vector<8x512xf32>
    %292 = vector.extract_strided_slice %291 {offsets = [0, 0], sizes = [8, 384], strides = [1, 1]} : vector<8x512xf32> to vector<8x384xf32>
    %cst_69 = arith.constant 5.000000e-01 : f32
    %293 = vector.broadcast %cst_69 : f32 to vector<8x384xf32>
    %294 = arith.mulf %293, %292 : vector<8x384xf32>
    %295 = math.tanh %294 : vector<8x384xf32>
    %cst_70 = arith.constant 5.000000e-01 : f32
    %296 = vector.broadcast %cst_70 : f32 to vector<8x384xf32>
    %297 = arith.mulf %296, %295 : vector<8x384xf32>
    %cst_71 = arith.constant 5.000000e-01 : f32
    %298 = vector.broadcast %cst_71 : f32 to vector<8x384xf32>
    %299 = arith.addf %297, %298 : vector<8x384xf32>
    %300 = vector.extract_strided_slice %299 {offsets = [0, 0], sizes = [8, 128], strides = [1, 1]} : vector<8x384xf32> to vector<8x128xf32>
    %301 = vector.extract_strided_slice %299 {offsets = [0, 128], sizes = [8, 128], strides = [1, 1]} : vector<8x384xf32> to vector<8x128xf32>
    %302 = vector.extract_strided_slice %299 {offsets = [0, 256], sizes = [8, 128], strides = [1, 1]} : vector<8x384xf32> to vector<8x128xf32>
    %303 = vector.extract_strided_slice %291 {offsets = [0, 384], sizes = [8, 128], strides = [1, 1]} : vector<8x512xf32> to vector<8x128xf32>
    %304 = math.tanh %303 : vector<8x128xf32>
    %305 = arith.mulf %301, %265 : vector<8x128xf32>
    %306 = arith.mulf %300, %304 : vector<8x128xf32>
    %307 = arith.addf %305, %306 : vector<8x128xf32>
    %308 = math.tanh %307 : vector<8x128xf32>
    %309 = arith.mulf %302, %308 : vector<8x128xf32>
    %310 = vector.extract_strided_slice %6 {offsets = [56, 0], sizes = [8, 512], strides = [1, 1]} : vector<64x512xf32> to vector<8x512xf32>
    %cst_72 = arith.constant dense<0.000000e+00> : vector<8x512xf32>
    %311 = tpu.matmul %288, %7, %cst_72 {dimension_numbers = #tpu.dot_dimension_numbers<[1], [0], [0], [1], [0, 0, 1, 1], [], []>} : vector<8x128xf32>, vector<128x512xf32>, vector<8x512xf32> -> vector<8x512xf32>
    %312 = arith.addf %310, %311 : vector<8x512xf32>
    %313 = vector.extract_strided_slice %312 {offsets = [0, 0], sizes = [8, 384], strides = [1, 1]} : vector<8x512xf32> to vector<8x384xf32>
    %cst_73 = arith.constant 5.000000e-01 : f32
    %314 = vector.broadcast %cst_73 : f32 to vector<8x384xf32>
    %315 = arith.mulf %314, %313 : vector<8x384xf32>
    %316 = math.tanh %315 : vector<8x384xf32>
    %cst_74 = arith.constant 5.000000e-01 : f32
    %317 = vector.broadcast %cst_74 : f32 to vector<8x384xf32>
    %318 = arith.mulf %317, %316 : vector<8x384xf32>
    %cst_75 = arith.constant 5.000000e-01 : f32
    %319 = vector.broadcast %cst_75 : f32 to vector<8x384xf32>
    %320 = arith.addf %318, %319 : vector<8x384xf32>
    %321 = vector.extract_strided_slice %320 {offsets = [0, 0], sizes = [8, 128], strides = [1, 1]} : vector<8x384xf32> to vector<8x128xf32>
    %322 = vector.extract_strided_slice %320 {offsets = [0, 128], sizes = [8, 128], strides = [1, 1]} : vector<8x384xf32> to vector<8x128xf32>
    %323 = vector.extract_strided_slice %320 {offsets = [0, 256], sizes = [8, 128], strides = [1, 1]} : vector<8x384xf32> to vector<8x128xf32>
    %324 = vector.extract_strided_slice %312 {offsets = [0, 384], sizes = [8, 128], strides = [1, 1]} : vector<8x512xf32> to vector<8x128xf32>
    %325 = math.tanh %324 : vector<8x128xf32>
    %326 = arith.mulf %322, %286 : vector<8x128xf32>
    %327 = arith.mulf %321, %325 : vector<8x128xf32>
    %328 = arith.addf %326, %327 : vector<8x128xf32>
    %329 = math.tanh %328 : vector<8x128xf32>
    %330 = arith.mulf %323, %329 : vector<8x128xf32>
    %331 = tpu.concatenate %330, %309 in 1 : vector<8x128xf32>, vector<8x128xf32> -> vector<8x256xf32>
    %cst_76 = arith.constant dense<0.000000e+00> : vector<8x512xf32>
    %332 = tpu.matmul %331, %8, %cst_76 {dimension_numbers = #tpu.dot_dimension_numbers<[1], [0], [0], [1], [0, 0, 1, 1], [], []>} : vector<8x256xf32>, vector<256x512xf32>, vector<8x512xf32> -> vector<8x512xf32>
    %333 = arith.addf %332, %11 : vector<8x512xf32>
    %334 = vector.extract_strided_slice %333 {offsets = [0, 0], sizes = [8, 384], strides = [1, 1]} : vector<8x512xf32> to vector<8x384xf32>
    %cst_77 = arith.constant 5.000000e-01 : f32
    %335 = vector.broadcast %cst_77 : f32 to vector<8x384xf32>
    %336 = arith.mulf %335, %334 : vector<8x384xf32>
    %337 = math.tanh %336 : vector<8x384xf32>
    %cst_78 = arith.constant 5.000000e-01 : f32
    %338 = vector.broadcast %cst_78 : f32 to vector<8x384xf32>
    %339 = arith.mulf %338, %337 : vector<8x384xf32>
    %cst_79 = arith.constant 5.000000e-01 : f32
    %340 = vector.broadcast %cst_79 : f32 to vector<8x384xf32>
    %341 = arith.addf %339, %340 : vector<8x384xf32>
    %342 = vector.extract_strided_slice %341 {offsets = [0, 0], sizes = [8, 128], strides = [1, 1]} : vector<8x384xf32> to vector<8x128xf32>
    %343 = vector.extract_strided_slice %341 {offsets = [0, 128], sizes = [8, 128], strides = [1, 1]} : vector<8x384xf32> to vector<8x128xf32>
    %344 = vector.extract_strided_slice %341 {offsets = [0, 256], sizes = [8, 128], strides = [1, 1]} : vector<8x384xf32> to vector<8x128xf32>
    %345 = vector.extract_strided_slice %333 {offsets = [0, 384], sizes = [8, 128], strides = [1, 1]} : vector<8x512xf32> to vector<8x128xf32>
    %346 = math.tanh %345 : vector<8x128xf32>
    %347 = arith.mulf %343, %307 : vector<8x128xf32>
    %348 = arith.mulf %342, %346 : vector<8x128xf32>
    %349 = arith.addf %347, %348 : vector<8x128xf32>
    %350 = math.tanh %349 : vector<8x128xf32>
    %351 = arith.mulf %344, %350 : vector<8x128xf32>
    %c0_80 = arith.constant 0 : index
    %c0_81 = arith.constant 0 : index
    %352 = vector.load %arg7[%c0_80, %c0_81] : memref<128x1xf32, #tpu.memory_space<vmem>>, vector<128x1xf32>
    %cst_82 = arith.constant dense<0.000000e+00> : vector<8x1xf32>
    %353 = tpu.matmul %351, %352, %cst_82 {dimension_numbers = #tpu.dot_dimension_numbers<[1], [0], [0], [1], [0, 0, 1, 1], [], []>} : vector<8x128xf32>, vector<128x1xf32>, vector<8x1xf32> -> vector<8x1xf32>
    %c0_83 = arith.constant 0 : index
    %c0_84 = arith.constant 0 : index
    %354 = vector.load %arg8[%c0_83, %c0_84] : memref<1x1xf32, #tpu.memory_space<vmem>>, vector<1x1xf32>
    %355 = vector.broadcast %354 : vector<1x1xf32> to vector<8x1xf32>
    %356 = arith.addf %353, %355 : vector<8x1xf32>
    %c0_85 = arith.constant 0 : index
    %c0_86 = arith.constant 0 : index
    %357 = vector.load %arg9[%c0_85, %c0_86] : memref<8x1xf32, #tpu.memory_space<vmem>>, vector<8x1xf32>
    tpu.vector_store %arg9[%c0_85, %c0_86], %356 {strides = array<i32>} : memref<8x1xf32, #tpu.memory_space<vmem>>, vector<8x1xf32>,
    return
  }
  func.func @transform_0(%arg0: i32) -> (i32, i32, i32) {
    %c0_i32 = arith.constant 0 : i32
    %c0_i32_0 = arith.constant 0 : i32
    %c0_i32_1 = arith.constant 0 : i32
    return %c0_i32, %arg0, %c0_i32_0 : i32, i32, i32
  }
  func.func @transform_1(%arg0: i32) -> (i32, i32) {
    %c0_i32 = arith.constant 0 : i32
    %c0_i32_0 = arith.constant 0 : i32
    %c0_i32_1 = arith.constant 0 : i32
    return %c0_i32, %c0_i32_0 : i32, i32
  }
  func.func @transform_2(%arg0: i32) -> (i32, i32) {
    %c0_i32 = arith.constant 0 : i32
    %c0_i32_0 = arith.constant 0 : i32
    %c0_i32_1 = arith.constant 0 : i32
    return %c0_i32, %c0_i32_0 : i32, i32
  }
  func.func @transform_3(%arg0: i32) -> (i32, i32) {
    %c0_i32 = arith.constant 0 : i32
    %c0_i32_0 = arith.constant 0 : i32
    %c0_i32_1 = arith.constant 0 : i32
    return %c0_i32, %c0_i32_0 : i32, i32
  }
  func.func @transform_4(%arg0: i32) -> (i32, i32) {
    %c0_i32 = arith.constant 0 : i32
    %c0_i32_0 = arith.constant 0 : i32
    %c0_i32_1 = arith.constant 0 : i32
    return %c0_i32, %c0_i32_0 : i32, i32
  }
  func.func @transform_5(%arg0: i32) -> (i32, i32) {
    %c0_i32 = arith.constant 0 : i32
    %c0_i32_0 = arith.constant 0 : i32
    %c0_i32_1 = arith.constant 0 : i32
    return %c0_i32, %c0_i32_0 : i32, i32
  }
  func.func @transform_6(%arg0: i32) -> (i32, i32) {
    %c0_i32 = arith.constant 0 : i32
    %c0_i32_0 = arith.constant 0 : i32
    %c0_i32_1 = arith.constant 0 : i32
    return %c0_i32, %c0_i32_0 : i32, i32
  }
  func.func @transform_7(%arg0: i32) -> (i32, i32) {
    %c0_i32 = arith.constant 0 : i32
    %c0_i32_0 = arith.constant 0 : i32
    %c0_i32_1 = arith.constant 0 : i32
    return %c0_i32, %c0_i32_0 : i32, i32
  }
  func.func @transform_8(%arg0: i32) -> (i32, i32) {
    %c0_i32 = arith.constant 0 : i32
    %c0_i32_0 = arith.constant 0 : i32
    return %arg0, %c0_i32 : i32, i32
  }
}

</mosaic_0001>

<bundles_post_ra>
// kernel: tpu_custom_call.1
= control target key start
LH: loop header
LB: loop body
LE: loop exit
PB: predicated region body
PF: predicated region fallthrough
CT: control target
= control target key end

     0   :  { %s6502_s0 = inlined_call_operand.vmem [shape: f32[8,8,8], index: 0, kind: input, shape index: {}]   ;;  %s6503_s1 = inlined_call_operand.vmem [shape: f32[8,512], index: 1, kind: input, shape index: {}]   ;;  %s6504_s2 = inlined_call_operand.hbm [shape: f32[128,512], index: 2, kind: input, shape index: {}]   ;;  %s6505_s3 = inlined_call_operand.vmem [shape: f32[1,512], index: 3, kind: input, shape index: {}]   ;;  %s6506_s4 = inlined_call_operand.hbm [shape: f32[256,512], index: 4, kind: input, shape index: {}]   ;;  %s6507_s5 = inlined_call_operand.vmem [shape: f32[1,512], index: 5, kind: input, shape index: {}]   ;;  %s6508_s6 = inlined_call_operand.vmem [shape: f32[128,1], index: 6, kind: input, shape index: {}]   ;;  %s6509_s7 = inlined_call_operand.<no memory space> [shape: f32[1,1], index: 7, kind: input, shape index: {}]   ;;  %s6510_s8 = inlined_call_operand.vmem [shape: f32[8,1], index: 8, kind: output, shape index: {}]  }
   0x1   :  { %v13_v0 = vstv %s6509_s7 }
   0x2   :  { %14 = vst [vmem:[#allocation2] sm:$0x1] %v13_v0 }
   0x3   :  { %15 = vsyncpa [#allocation4], 0 }
   0x4   :  { %16 = vsyncpa [#allocation6], 0  ;;  %s5159_s29 = smov [#allocation3]   ;;  %s5111_s11 = scalar_lea.hbm %s6504_s2, 8192 }
   0x5   :  { %s26_s30 = sshll.u32 %s5159_s29, 4  ;;  %p5112_p0 = scmp.ne.s32.totalorder %s6504_s2, %s5111_s11  ;;  %s27_s30 = int_to_ptr.vmem [resolvable:$true] %s26_s30 }
   0x6   :  { %p5115_p1 = scmp.lt.u32.totalorder %s5111_s11, %s6504_s2 }
   0x8   :  { %p5117_p2 = pnand %p5115_p1, %p5112_p0 }
   0xa   :  { %5120 = shalt.err (!%p5117_p2)
}
   0xb   :  { %s5121_s7 = scalar_lea.vmem %s27_s30, 8192  ;;  %p5126_p4 = scmp.lt.s32.totalorder %s27_s30, %s27_s30 }
   0xc   :  { %p5122_p3 = scmp.ne.s32.totalorder %s27_s30, %s5121_s7  ;;  %p5127_p5 = scmp.lt.s32.totalorder %s5121_s7, %s5121_s7 }
   0xe   :  { %p5128_p6 = por %p5127_p5, %p5126_p4 }
  0x10   :  { %p5129_p7 = pnand %p5128_p6, %p5122_p3 }
  0x12   :  { %5132 = shalt.err (!%p5129_p7)
}
  0x13   :  { %s5160_s16 = smov 512   ;;  %s5161_s17 = smov 32  }
  0x14   :  { %32 = dma.hbm_to_vmem [thread:$0]  %s6504_s2, 8192, %s27_s30, [#allocation4], %s5160_s16, %s5160_s16, %s5161_s17  }
  0x15   :  { %s5162_s20 = smov [#allocation5]   ;;  %s5133_s24 = scalar_lea.hbm %s6506_s4, 16384 }
  0x16   :  { %s40_s21 = sshll.u32 %s5162_s20, 4  ;;  %p5134_p8 = scmp.ne.s32.totalorder %s6506_s4, %s5133_s24  ;;  %s41_s21 = int_to_ptr.vmem [resolvable:$true] %s40_s21 }
  0x17   :  { %p5137_p9 = scmp.lt.u32.totalorder %s5133_s24, %s6506_s4 }
  0x19   :  { %p5139_p10 = pnand %p5137_p9, %p5134_p8 }
  0x1b   :  { %5142 = shalt.err (!%p5139_p10)
}
  0x1c   :  { %s5143_s29 = scalar_lea.vmem %s41_s21, 16384  ;;  %p5148_p12 = scmp.lt.s32.totalorder %s41_s21, %s41_s21 }
  0x1d   :  { %p5144_p11 = scmp.ne.s32.totalorder %s41_s21, %s5143_s29  ;;  %p5149_p13 = scmp.lt.s32.totalorder %s5143_s29, %s5143_s29 }
  0x1f   :  { %p5150_p0 = por %p5149_p13, %p5148_p12 }
  0x21   :  { %p5151_p1 = pnand %p5150_p0, %p5144_p11 }
  0x23   :  { %5154 = shalt.err (!%p5151_p1)
}
  0x24   :  { %46 = dma.hbm_to_vmem [thread:$0]  %s6506_s4, 16384, %s41_s21, [#allocation6], %s5160_s16, %s5160_s16, %s5161_s17  }
  0x25   :  { %5155 = dma.done.wait [#allocation4], 8192  }
  0x26   :  { %5156 = vsyncadd [#allocation4], 4294959104 }
  0x27   :  { %5157 = dma.done.wait [#allocation6], 16384  }
  0x28   :  { %5158 = vsyncadd [#allocation6], 4294950912  ;;  %v6511_v1 = vmov 0.0   ;;  %v68_v2 = vld [vmem:[%s6503_s1 + $0x8] sm:$0xff]  ;;  %v70_v3 = vld [vmem:[%s6503_s1 + $0x18] sm:$0xff]  ;;  %vm93_vm0 = vcmask 64512  }
  0x29   :  { %182 = vmatprep.mubr.f32.mxu0 %v6511_v1  ;;  %295 = vmatprep.mubr.f32.mxu1 %v6511_v1  ;;  %v67_v4 = vld [vmem:[%s6503_s1] sm:$0xff]  ;;  %v69_v5 = vld [vmem:[%s6503_s1 + $0x10] sm:$0xff]  ;;  %v60_v18 = vld [vmem:[%s6502_s0 + $0x8] sm:$0xff]  ;;  %vm5165_vm1 = vmmov 0   ;;  %vm3243_vm2 = vcmask 7168  }
  0x2a   :  { %118 = vmatprep.subr.mxu0 %v68_v2  ;;  %231 = vmatprep.subr.mxu1 %v70_v3  ;;  %v59_v6 = vld [vmem:[%s6502_s0] sm:$0xff]  ;;  %v345_v7 = vld [vmem:[#allocation3 + $0x8] sm:$0xff]  ;;  %v346_v15 = vld [vmem:[#allocation3 + $0x10] sm:$0xff] }
  0x2b   :  { %119 = vmatpush1.msra.mxu0 %v67_v4  ;;  %232 = vmatpush1.msra.mxu1 %v69_v5  ;;  %v349_v8 = vld [vmem:[#allocation3 + $0x28] sm:$0xff]  ;;  %v347_v9 = vld [vmem:[#allocation3 + $0x18] sm:$0xff]  ;;  %v344_v13 = vld [vmem:[#allocation3] sm:$0xff] }
  0x2c   :  { %v351_v10 = vld [vmem:[#allocation3 + $0x38] sm:$0xff]  ;;  %3251 = vmatmul.mubr.msk.f32.vlgmr.msra.gmra.mrb[0].mxu0 %vm93_vm0, %v59_v6  ;;  %3259 = vmatmul.mubr.msk.f32.vlgmr.msra.gmra.mrb[0].mxu1 %vm93_vm0, %v59_v6  ;;  %v5257_v11 = vpack.c.bf16 %v349_v8, %v345_v7  ;;  %v348_v14 = vld [vmem:[#allocation3 + $0x20] sm:$0xff]  ;;  %v350_v17 = vld [vmem:[#allocation3 + $0x30] sm:$0xff] }
  0x2d   :  { %v5259_v12 = vpack.c.bf16 %v351_v10, %v347_v9  ;;  %v5261_v16 = vpack.c.bf16 %v348_v14, %v344_v13  ;;  %188 = vmatprep.mubr.f32.mxu0 %v6511_v1  ;;  %301 = vmatprep.mubr.f32.mxu1 %v6511_v1  ;;  %v353_v19 = vld [vmem:[#allocation3 + $0x48] sm:$0xff]  ;;  %v5270_v20 = vpack.c.bf16 %v350_v17, %v346_v15  ;;  %v355_v22 = vld [vmem:[#allocation3 + $0x58] sm:$0xff]  ;;  %v352_v26 = vld [vmem:[#allocation3 + $0x40] sm:$0xff] }
  0x2e   :  { %6647 = vst [vmem:[#allocation9_spill] sm:$0xff] %v5257_v11  ;;  %3321 = vmatprep.subr.bf16.mxu0 %v5257_v11  ;;  %v357_v21 = vld [vmem:[#allocation3 + $0x68] sm:$0xff]  ;;  %v359_v23 = vld [vmem:[#allocation3 + $0x78] sm:$0xff]  ;;  %v356_v27 = vld [vmem:[#allocation3 + $0x60] sm:$0xff] }
  0x2f   :  { %6648 = vst [vmem:[#allocation10_spill] sm:$0xff] %v5259_v12  ;;  %3353 = vmatprep.subr.bf16.mxu1 %v5259_v12  ;;  %3323 = vmatpush1.bf16.msra.mxu0 %v5261_v16  ;;  %v5273_v24 = vpack.c.bf16 %v357_v21, %v353_v19  ;;  %v5275_v25 = vpack.c.bf16 %v359_v23, %v355_v22  ;;  %v354_v28 = vld [vmem:[#allocation3 + $0x50] sm:$0xff]  ;;  %v361_v32 = vld [vmem:[#allocation3 + $0x88] sm:$0xff]  ;;  %v363_v35 = vld [vmem:[#allocation3 + $0x98] sm:$0xff] }
  0x30   :  { %3355 = vmatpush1.bf16.msra.mxu1 %v5270_v20  ;;  %3252 = vmatmul.mubr.msk.f32.gmra.mrb[2].mxu0 %vm93_vm0, %v60_v18  ;;  %v5279_v29 = vpack.c.bf16 %v356_v27, %v352_v26  ;;  %v358_v30 = vld [vmem:[#allocation3 + $0x70] sm:$0xff]  ;;  %v365_v34 = vld [vmem:[#allocation3 + $0xa8] sm:$0xff]  ;;  %v367_v36 = vld [vmem:[#allocation3 + $0xb8] sm:$0xff] }
  0x31   :  { %v61_v31 = vld [vmem:[%s6502_s0 + $0x10] sm:$0xff]  ;;  %3260 = vmatmul.mubr.msk.f32.gmra.mrb[2].mxu1 %vm93_vm0, %v60_v18  ;;  %3325 = vmatprep.subr.bf16.mxu0 %v5273_v24  ;;  %v5286_v33 = vpack.c.bf16 %v358_v30, %v354_v28  ;;  %v5290_v37 = vpack.c.bf16 %v365_v34, %v361_v32  ;;  %v5292_v38 = vpack.c.bf16 %v367_v36, %v363_v35  ;;  %v360_v39 = vld [vmem:[#allocation3 + $0x80] sm:$0xff]  ;;  %v62_v44 = vld [vmem:[%s6502_s0 + $0x18] sm:$0xff] }
  0x32   :  { %3357 = vmatprep.subr.bf16.mxu1 %v5275_v25  ;;  %194 = vmatprep.mubr.f32.mxu0 %v6511_v1  ;;  %v364_v40 = vld [vmem:[#allocation3 + $0xa0] sm:$0xff]  ;;  %v362_v41 = vld [vmem:[#allocation3 + $0x90] sm:$0xff]  ;;  %v369_v45 = vld [vmem:[#allocation3 + $0xc8] sm:$0xff] }
  0x33   :  { %3327 = vmatpush1.bf16.msra.mxu0 %v5279_v29  ;;  %307 = vmatprep.mubr.f32.mxu1 %v6511_v1  ;;  %v5296_v42 = vpack.c.bf16 %v364_v40, %v360_v39  ;;  %v366_v43 = vld [vmem:[#allocation3 + $0xb0] sm:$0xff]  ;;  %v373_v47 = vld [vmem:[#allocation3 + $0xe8] sm:$0xff]  ;;  %v371_v48 = vld [vmem:[#allocation3 + $0xd8] sm:$0xff] }
  0x34   :  { %3359 = vmatpush1.bf16.msra.mxu1 %v5286_v33  ;;  %3253 = vmatmul.mubr.msk.f32.gmra.mrb[4].mxu0 %vm93_vm0, %v61_v31  ;;  %v5303_v46 = vpack.c.bf16 %v366_v43, %v362_v41  ;;  %v375_v49 = vld [vmem:[#allocation3 + $0xf8] sm:$0xff]  ;;  %v5307_v50 = vpack.c.bf16 %v373_v47, %v369_v45  ;;  %v368_v51 = vld [vmem:[#allocation3 + $0xc0] sm:$0xff]  ;;  %v370_v53 = vld [vmem:[#allocation3 + $0xd0] sm:$0xff] }
  0x35   :  { %3261 = vmatmul.mubr.msk.f32.gmra.mrb[4].mxu1 %vm93_vm0, %v61_v31  ;;  %3329 = vmatprep.subr.bf16.mxu0 %v5290_v37  ;;  %v372_v52 = vld [vmem:[#allocation3 + $0xe0] sm:$0xff]  ;;  %v5311_v54 = vpack.c.bf16 %v375_v49, %v371_v48  ;;  %v374_v55 = vld [vmem:[#allocation3 + $0xf0] sm:$0xff]  ;;  %v377_v56 = vld [vmem:[#allocation3 + $0x108] sm:$0xff] }
  0x36   :  { %3361 = vmatprep.subr.bf16.mxu1 %v5292_v38  ;;  %200 = vmatprep.mubr.f32.mxu0 %v6511_v1  ;;  %v5315_v57 = vpack.c.bf16 %v372_v52, %v368_v51  ;;  %v381_v58 = vld [vmem:[#allocation3 + $0x128] sm:$0xff]  ;;  %v379_v59 = vld [vmem:[#allocation3 + $0x118] sm:$0xff]  ;;  %v5319_v61 = vpack.c.bf16 %v374_v55, %v370_v53  ;;  %v376_v62 = vld [vmem:[#allocation3 + $0x100] sm:$0xff] }
  0x37   :  { %3331 = vmatpush1.bf16.msra.mxu0 %v5296_v42  ;;  %313 = vmatprep.mubr.f32.mxu1 %v6511_v1  ;;  %v383_v60 = vld [vmem:[#allocation3 + $0x138] sm:$0xff]  ;;  %v380_v63 = vld [vmem:[#allocation3 + $0x120] sm:$0xff]  ;;  %v5326_v2 = vpack.c.bf16 %v381_v58, %v377_v56  ;;  %v378_v3 = vld [vmem:[#allocation3 + $0x110] sm:$0xff] }
  0x38   :  { %3363 = vmatpush1.bf16.msra.mxu1 %v5303_v46  ;;  %3254 = vmatmul.mubr.msk.f32.gmra.mrb[6].mxu0 %vm93_vm0, %v62_v44  ;;  %v63_v0 = vld [vmem:[%s6502_s0 + $0x20] sm:$0xff]  ;;  %v382_v4 = vld [vmem:[#allocation3 + $0x130] sm:$0xff]  ;;  %v5330_v5 = vpack.c.bf16 %v383_v60, %v379_v59  ;;  %v385_v6 = vld [vmem:[#allocation3 + $0x148] sm:$0xff]  ;;  %v5334_v8 = vpack.c.bf16 %v380_v63, %v376_v62 }
  0x39   :  { %3262 = vmatmul.mubr.msk.f32.gmra.mrb[6].mxu1 %vm93_vm0, %v62_v44  ;;  %3333 = vmatprep.subr.bf16.mxu0 %v5307_v50  ;;  %v389_v7 = vld [vmem:[#allocation3 + $0x168] sm:$0xff]  ;;  %v387_v9 = vld [vmem:[#allocation3 + $0x158] sm:$0xff]  ;;  %v5338_v13 = vpack.c.bf16 %v382_v4, %v378_v3  ;;  %v384_v14 = vld [vmem:[#allocation3 + $0x140] sm:$0xff] }
  0x3a   :  { %3365 = vmatprep.subr.bf16.mxu1 %v5311_v54  ;;  %206 = vmatprep.mubr.f32.mxu0 %v6511_v1  ;;  %v391_v10 = vld [vmem:[#allocation3 + $0x178] sm:$0xff]  ;;  %v388_v15 = vld [vmem:[#allocation3 + $0x160] sm:$0xff]  ;;  %v5345_v18 = vpack.c.bf16 %v389_v7, %v385_v6  ;;  %v386_v19 = vld [vmem:[#allocation3 + $0x150] sm:$0xff] }
  0x3b   :  { %3335 = vmatpush1.bf16.msra.mxu0 %v5315_v57  ;;  %319 = vmatprep.mubr.f32.mxu1 %v6511_v1  ;;  %v64_v17 = vld [vmem:[%s6502_s0 + $0x28] sm:$0xff]  ;;  %v390_v21 = vld [vmem:[#allocation3 + $0x170] sm:$0xff]  ;;  %v5349_v22 = vpack.c.bf16 %v391_v10, %v387_v9  ;;  %v5353_v27 = vpack.c.bf16 %v388_v15, %v384_v14  ;;  %v395_v28 = vld [vmem:[#allocation3 + $0x198] sm:$0xff] }
  0x3c   :  { %3367 = vmatpush1.bf16.msra.mxu1 %v5319_v61  ;;  %3255 = vmatmul.mubr.msk.f32.gmra.mrb[8].mxu0 %vm93_vm0, %v63_v0  ;;  %v393_v23 = vld [vmem:[#allocation3 + $0x188] sm:$0xff]  ;;  %v399_v30 = vld [vmem:[#allocation3 + $0x1b8] sm:$0xff]  ;;  %v5357_v31 = vpack.c.bf16 %v390_v21, %v386_v19  ;;  %v392_v32 = vld [vmem:[#allocation3 + $0x180] sm:$0xff] }
  0x3d   :  { %3263 = vmatmul.mubr.msk.f32.gmra.mrb[8].mxu1 %vm93_vm0, %v63_v0  ;;  %3337 = vmatprep.subr.bf16.mxu0 %v5326_v2  ;;  %v397_v26 = vld [vmem:[#allocation3 + $0x1a8] sm:$0xff]  ;;  %v396_v34 = vld [vmem:[#allocation3 + $0x1a0] sm:$0xff]  ;;  %v394_v39 = vld [vmem:[#allocation3 + $0x190] sm:$0xff]  ;;  %v5368_v41 = vpack.c.bf16 %v399_v30, %v395_v28 }
  0x3e   :  { %3369 = vmatprep.subr.bf16.mxu1 %v5330_v5  ;;  %212 = vmatprep.mubr.f32.mxu0 %v6511_v1  ;;  %v65_v35 = vld [vmem:[%s6502_s0 + $0x30] sm:$0xff]  ;;  %v5364_v36 = vpack.c.bf16 %v397_v26, %v393_v23  ;;  %v5372_v45 = vpack.c.bf16 %v396_v34, %v392_v32  ;;  %v66_v47 = vld [vmem:[%s6502_s0 + $0x38] sm:$0xff]  ;;  %v400_v52 = vld [vmem:[#allocation3 + $0x1c0] sm:$0xff] }
  0x3f   :  { %3339 = vmatpush1.bf16.msra.mxu0 %v5334_v8  ;;  %325 = vmatprep.mubr.f32.mxu1 %v6511_v1  ;;  %v398_v40 = vld [vmem:[#allocation3 + $0x1b0] sm:$0xff]  ;;  %v401_v43 = vld [vmem:[#allocation3 + $0x1c8] sm:$0xff]  ;;  %v403_v48 = vld [vmem:[#allocation3 + $0x1d8] sm:$0xff] }
  0x40   :  { %3371 = vmatpush1.bf16.msra.mxu1 %v5338_v13  ;;  %3256 = vmatmul.mubr.msk.f32.gmra.mrb[10].mxu0 %vm93_vm0, %v64_v17  ;;  %v405_v44 = vld [vmem:[#allocation3 + $0x1e8] sm:$0xff]  ;;  %v407_v49 = vld [vmem:[#allocation3 + $0x1f8] sm:$0xff]  ;;  %v5379_v51 = vpack.c.bf16 %v398_v40, %v394_v39  ;;  %v404_v53 = vld [vmem:[#allocation3 + $0x1e0] sm:$0xff] }
  0x41   :  { %3264 = vmatmul.mubr.msk.f32.gmra.mrb[10].mxu1 %vm93_vm0, %v64_v17  ;;  %3341 = vmatprep.subr.bf16.mxu0 %v5345_v18  ;;  %v402_v55 = vld [vmem:[#allocation3 + $0x1d0] sm:$0xff]  ;;  %v5383_v56 = vpack.c.bf16 %v405_v44, %v401_v43  ;;  %v409_v59 = vld [vmem:[#allocation5 + $0x8] sm:$0xff]  ;;  %v5387_v62 = vpack.c.bf16 %v407_v49, %v403_v48  ;;  %v411_v63 = vld [vmem:[#allocation5 + $0x18] sm:$0xff]  ;;  %v5391_v3 = vpack.c.bf16 %v404_v53, %v400_v52 }
  0x42   :  { %3373 = vmatprep.subr.bf16.mxu1 %v5349_v22  ;;  %218 = vmatprep.mubr.f32.mxu0 %v6511_v1  ;;  %v406_v58 = vld [vmem:[#allocation3 + $0x1f0] sm:$0xff]  ;;  %v413_v60 = vld [vmem:[#allocation5 + $0x28] sm:$0xff]  ;;  %v415_v0 = vld [vmem:[#allocation5 + $0x38] sm:$0xff] }
  0x43   :  { %3343 = vmatpush1.bf16.msra.mxu0 %v5353_v27  ;;  %331 = vmatprep.mubr.f32.mxu1 %v6511_v1  ;;  %v5395_v4 = vpack.c.bf16 %v406_v58, %v402_v55  ;;  %v5397_v6 = vpack.c.bf16 %v413_v60, %v409_v59  ;;  %v408_v7 = vld [vmem:[#allocation5] sm:$0xff]  ;;  %v410_v10 = vld [vmem:[#allocation5 + $0x10] sm:$0xff]  ;;  %v5401_v14 = vpack.c.bf16 %v415_v0, %v411_v63  ;;  %v417_v17 = vld [vmem:[#allocation5 + $0x48] sm:$0xff] }
  0x44   :  { %3375 = vmatpush1.bf16.msra.mxu1 %v5357_v31  ;;  %3257 = vmatmul.mubr.msk.f32.gmra.mrb[12].mxu0 %vm93_vm0, %v65_v35  ;;  %v412_v9 = vld [vmem:[#allocation5 + $0x20] sm:$0xff]  ;;  %v414_v15 = vld [vmem:[#allocation5 + $0x30] sm:$0xff]  ;;  %v421_v19 = vld [vmem:[#allocation5 + $0x68] sm:$0xff] }
  0x45   :  { %3265 = vmatmul.mubr.msk.f32.gmra.mrb[12].mxu1 %vm93_vm0, %v65_v35  ;;  %3345 = vmatprep.subr.bf16.mxu0 %v5364_v36  ;;  %v419_v21 = vld [vmem:[#allocation5 + $0x58] sm:$0xff]  ;;  %v5407_v26 = vpack.c.bf16 %v412_v9, %v408_v7  ;;  %v5411_v28 = vpack.c.bf16 %v414_v15, %v410_v10  ;;  %v5413_v30 = vpack.c.bf16 %v421_v19, %v417_v17  ;;  %v416_v32 = vld [vmem:[#allocation5 + $0x40] sm:$0xff]  ;;  %v418_v35 = vld [vmem:[#allocation5 + $0x50] sm:$0xff] }
  0x46   :  { %3377 = vmatprep.subr.bf16.mxu1 %v5368_v41  ;;  %224 = vmatprep.mubr.f32.mxu0 %v6511_v1  ;;  %v423_v23 = vld [vmem:[#allocation5 + $0x78] sm:$0xff]  ;;  %v420_v34 = vld [vmem:[#allocation5 + $0x60] sm:$0xff]  ;;  %v422_v40 = vld [vmem:[#allocation5 + $0x70] sm:$0xff] }
  0x47   :  { %3347 = vmatpush1.bf16.msra.mxu0 %v5372_v45  ;;  %337 = vmatprep.mubr.f32.mxu1 %v6511_v1  ;;  %v5416_v39 = vpack.c.bf16 %v423_v23, %v419_v21  ;;  %v425_v43 = vld [vmem:[#allocation5 + $0x88] sm:$0xff]  ;;  %v431_v48 = vld [vmem:[#allocation5 + $0xb8] sm:$0xff]  ;;  %v5421_v49 = vpack.c.bf16 %v420_v34, %v416_v32  ;;  %v5425_v52 = vpack.c.bf16 %v422_v40, %v418_v35  ;;  %v424_v55 = vld [vmem:[#allocation5 + $0x80] sm:$0xff] }
  0x48   :  { %3379 = vmatpush1.bf16.msra.mxu1 %v5379_v51  ;;  %3258 = vmatmul.mubr.msk.f32.gmra.mrb[14].mxu0 %vm93_vm0, %v66_v47  ;;  %v429_v44 = vld [vmem:[#allocation5 + $0xa8] sm:$0xff]  ;;  %v428_v58 = vld [vmem:[#allocation5 + $0xa0] sm:$0xff]  ;;  %v426_v59 = vld [vmem:[#allocation5 + $0x90] sm:$0xff] }
  0x49   :  { %3266 = vmatmul.mubr.msk.f32.gmra.mrb[14].mxu1 %vm93_vm0, %v66_v47  ;;  %3349 = vmatprep.subr.bf16.mxu0 %v5383_v56  ;;  %v427_v47 = vld [vmem:[#allocation5 + $0x98] sm:$0xff]  ;;  %6649 = vst [vmem:[#allocation11_spill] sm:$0xff] %v5425_v52  ;;  %v5427_v53 = vpack.c.bf16 %v429_v44, %v425_v43  ;;  %v430_v63 = vld [vmem:[#allocation5 + $0xb0] sm:$0xff]  ;;  %v433_v0 = vld [vmem:[#allocation5 + $0xc8] sm:$0xff]  ;;  %v5435_v15 = vpack.c.bf16 %v428_v58, %v424_v55 }
  0x4a   :  { %3381 = vmatprep.subr.bf16.mxu1 %v5387_v62  ;;  %622 = vmatprep.mubr.f32.mxu0 %v6511_v1  ;;  %v5430_v60 = vpack.c.bf16 %v431_v48, %v427_v47  ;;  %v437_v7 = vld [vmem:[#allocation5 + $0xe8] sm:$0xff]  ;;  %v435_v9 = vld [vmem:[#allocation5 + $0xd8] sm:$0xff]  ;;  %v5439_v17 = vpack.c.bf16 %v430_v63, %v426_v59  ;;  %v432_v21 = vld [vmem:[#allocation5 + $0xc0] sm:$0xff] }
  0x4b   :  { %3351 = vmatpush1.bf16.msra.mxu0 %v5391_v3  ;;  %693 = vmatprep.mubr.f32.mxu1 %v6511_v1  ;;  %6650 = vst [vmem:[#allocation12_spill] sm:$0xff] %v5427_v53  ;;  %v439_v10 = vld [vmem:[#allocation5 + $0xf8] sm:$0xff]  ;;  %6652 = vst [vmem:[#allocation14_spill] sm:$0xff] %v5435_v15  ;;  %v5441_v19 = vpack.c.bf16 %v437_v7, %v433_v0  ;;  %v436_v23 = vld [vmem:[#allocation5 + $0xe0] sm:$0xff] }
  0x4c   :  { %3383 = vmatpush1.bf16.msra.mxu1 %v5395_v4  ;;  %3385 = vmatprep.subr.bf16.mxu0 %v5397_v6  ;;  %6651 = vst [vmem:[#allocation13_spill] sm:$0xff] %v5430_v60  ;;  %6653 = vst [vmem:[#allocation15_spill] sm:$0xff] %v5439_v17  ;;  %v434_v32 = vld [vmem:[#allocation5 + $0xd0] sm:$0xff]  ;;  %v5444_v34 = vpack.c.bf16 %v439_v10, %v435_v9  ;;  %v441_v40 = vld [vmem:[#allocation5 + $0x108] sm:$0xff]  ;;  %v5447_v48 = vpack.c.bf16 %v436_v23, %v432_v21 }
  0x4d   :  { %3449 = vmatprep.subr.bf16.mxu1 %v5401_v14  ;;  %6654 = vst [vmem:[#allocation16_spill] sm:$0xff] %v5441_v19  ;;  %v438_v35 = vld [vmem:[#allocation5 + $0xf0] sm:$0xff]  ;;  %v445_v43 = vld [vmem:[#allocation5 + $0x128] sm:$0xff]  ;;  %v443_v44 = vld [vmem:[#allocation5 + $0x118] sm:$0xff] }
  0x4e   :  { %623 = vmatmul.mubr.f32.vlgmr.msra.gmra.mrb[0].mxu0 %v6511_v1  ;;  %6655 = vst [vmem:[#allocation17_spill] sm:$0xff] %v5444_v34  ;;  %v447_v47 = vld [vmem:[#allocation5 + $0x138] sm:$0xff]  ;;  %6656 = vst [vmem:[#allocation18_spill] sm:$0xff] %v5447_v48  ;;  %v5451_v55 = vpack.c.bf16 %v438_v35, %v434_v32  ;;  %v5453_v58 = vpack.c.bf16 %v445_v43, %v441_v40  ;;  %v440_v59 = vld [vmem:[#allocation5 + $0x100] sm:$0xff] }
  0x4f   :  { %694 = vmatmul.mubr.f32.vlgmr.msra.gmra.mrb[0].mxu1 %v6511_v1  ;;  %3387 = vmatpush1.bf16.msra.mxu0 %v5407_v26  ;;  %v444_v63 = vld [vmem:[#allocation5 + $0x120] sm:$0xff]  ;;  %v442_v0 = vld [vmem:[#allocation5 + $0x110] sm:$0xff]  ;;  %v5456_v7 = vpack.c.bf16 %v447_v47, %v443_v44  ;;  %v449_v10 = vld [vmem:[#allocation5 + $0x148] sm:$0xff] }
  0x50   :  { %3451 = vmatpush1.bf16.msra.mxu1 %v5411_v28  ;;  %3389 = vmatprep.subr.bf16.mxu0 %v5413_v30  ;;  %6657 = vst [vmem:[#allocation19_spill] sm:$0xff] %v5451_v55  ;;  %6658 = vst [vmem:[#allocation20_spill] sm:$0xff] %v5453_v58  ;;  %v446_v9 = vld [vmem:[#allocation5 + $0x130] sm:$0xff]  ;;  %v451_v21 = vld [vmem:[#allocation5 + $0x158] sm:$0xff] }
  0x51   :  { %3453 = vmatprep.subr.bf16.mxu1 %v5416_v39  ;;  %786 = vmatprep.mubr.f32.mxu0 %v6511_v1  ;;  %6659 = vst [vmem:[#allocation21_spill] sm:$0xff] %v5456_v7  ;;  %v455_v23 = vld [vmem:[#allocation5 + $0x178] sm:$0xff]  ;;  %v5463_v32 = vpack.c.bf16 %v446_v9, %v442_v0  ;;  %v448_v40 = vld [vmem:[#allocation5 + $0x140] sm:$0xff]  ;;  %v450_v44 = vld [vmem:[#allocation5 + $0x150] sm:$0xff] }
  0x52   :  { %857 = vmatprep.mubr.f32.mxu1 %v6511_v1  ;;  %v453_v1 = vld [vmem:[#allocation5 + $0x168] sm:$0xff]  ;;  %v452_v43 = vld [vmem:[#allocation5 + $0x160] sm:$0xff]  ;;  %v5468_v47 = vpack.c.bf16 %v455_v23, %v451_v21  ;;  %v458_v23 = vld [vmem:[#allocation5 + $0x190] sm:$0xff] }
  0x53   :  { %3391 = vmatpush1.bf16.msra.mxu0 %v5421_v49  ;;  %6661 = vst [vmem:[#allocation23_spill] sm:$0xff] %v5463_v32  ;;  %v5465_v35 = vpack.c.bf16 %v453_v1, %v449_v10  ;;  %v456_v9 = vld [vmem:[#allocation5 + $0x180] sm:$0xff] }
  0x54   :  { %3455 = vmatpush1.bf16.msra.mxu1 %v5425_v52  ;;  %3393 = vmatprep.subr.bf16.mxu0 %v5427_v53  ;;  %6663 = vst [vmem:[#allocation25_spill] sm:$0xff] %v5468_v47  ;;  %v460_v10 = vld [vmem:[#allocation5 + $0x1a0] sm:$0xff] }
  0x55   :  { %3457 = vmatprep.subr.bf16.mxu1 %v5430_v60  ;;  %6662 = vst [vmem:[#allocation24_spill] sm:$0xff] %v5465_v35 }
  0x57   :  { %3395 = vmatpush1.bf16.msra.mxu0 %v5435_v15 }
  0x58   :  { %3459 = vmatpush1.bf16.msra.mxu1 %v5439_v17  ;;  %3397 = vmatprep.subr.bf16.mxu0 %v5441_v19  ;;  %v5459_v17 = vpack.c.bf16 %v444_v63, %v440_v59  ;;  %v457_v19 = vld [vmem:[#allocation5 + $0x188] sm:$0xff]  ;;  %v459_v59 = vld [vmem:[#allocation5 + $0x198] sm:$0xff] }
  0x59   :  { %3461 = vmatprep.subr.bf16.mxu1 %v5444_v34  ;;  %v454_v34 = vld [vmem:[#allocation5 + $0x170] sm:$0xff]  ;;  %v463_v63 = vld [vmem:[#allocation5 + $0x1b8] sm:$0xff] }
  0x5a   :  { %6660 = vst [vmem:[#allocation22_spill] sm:$0xff] %v5459_v17  ;;  %v5475_v1 = vpack.c.bf16 %v454_v34, %v450_v44  ;;  %v5480_v21 = vpack.c.bf16 %v463_v63, %v459_v59  ;;  %v471_v59 = vld [vmem:[#allocation5 + $0x1f8] sm:$0xff]  ;;  %v464_v63 = vld [vmem:[#allocation5 + $0x1c0] sm:$0xff] }
  0x5b   :  { %3399 = vmatpush1.bf16.msra.mxu0 %v5447_v48  ;;  %v461_v48 = vld [vmem:[#allocation5 + $0x1a8] sm:$0xff] }
  0x5c   :  { %3463 = vmatpush1.bf16.msra.mxu1 %v5451_v55  ;;  %3401 = vmatprep.subr.bf16.mxu0 %v5453_v58  ;;  %v5471_v55 = vpack.c.bf16 %v452_v43, %v448_v40  ;;  %6665 = vst [vmem:[#allocation27_spill] sm:$0xff] %v5475_v1  ;;  %v5477_v0 = vpack.c.bf16 %v461_v48, %v457_v19  ;;  %6667 = vst [vmem:[#allocation29_spill] sm:$0xff] %v5480_v21  ;;  %v465_v19 = vld [vmem:[#allocation5 + $0x1c8] sm:$0xff]  ;;  %v467_v43 = vld [vmem:[#allocation5 + $0x1d8] sm:$0xff] }
  0x5d   :  { %3465 = vmatprep.subr.bf16.mxu1 %v5456_v7  ;;  %v462_v7 = vld [vmem:[#allocation5 + $0x1b0] sm:$0xff]  ;;  %v5483_v40 = vpack.c.bf16 %v460_v10, %v456_v9  ;;  %v469_v48 = vld [vmem:[#allocation5 + $0x1e8] sm:$0xff]  ;;  %v468_v9 = vld [vmem:[#allocation5 + $0x1e0] sm:$0xff]  ;;  %v5494_v10 = vpack.c.bf16 %v471_v59, %v467_v43 }
  0x5e   :  { %6664 = vst [vmem:[#allocation26_spill] sm:$0xff] %v5471_v55  ;;  %6666 = vst [vmem:[#allocation28_spill] sm:$0xff] %v5477_v0  ;;  %v5487_v34 = vpack.c.bf16 %v462_v7, %v458_v23  ;;  %v5492_v44 = vpack.c.bf16 %v469_v48, %v465_v19  ;;  %v466_v7 = vld [vmem:[#allocation5 + $0x1d0] sm:$0xff]  ;;  %v477_v19 = vld [vmem:[#allocation5 + $0x228] sm:$0xff] }
  0x5f   :  { %3403 = vmatpush1.bf16.msra.mxu0 %v5459_v17  ;;  %6668 = vst [vmem:[#allocation30_spill] sm:$0xff] %v5483_v40  ;;  %6671 = vst [vmem:[#allocation33_spill] sm:$0xff] %v5494_v10  ;;  %v470_v23 = vld [vmem:[#allocation5 + $0x1f0] sm:$0xff]  ;;  %v475_v48 = vld [vmem:[#allocation5 + $0x218] sm:$0xff] }
  0x60   :  { %3467 = vmatpush1.bf16.msra.mxu1 %v5463_v32  ;;  %3405 = vmatprep.subr.bf16.mxu0 %v5465_v35  ;;  %6669 = vst [vmem:[#allocation31_spill] sm:$0xff] %v5487_v34  ;;  %6670 = vst [vmem:[#allocation32_spill] sm:$0xff] %v5492_v44  ;;  %v479_v43 = vld [vmem:[#allocation5 + $0x238] sm:$0xff]  ;;  %v472_v59 = vld [vmem:[#allocation5 + $0x200] sm:$0xff] }
  0x61   :  { %3469 = vmatprep.subr.bf16.mxu1 %v5468_v47  ;;  %v527_v47 = vld [vmem:[#allocation5 + $0x3b8] sm:$0xff] }
  0x63   :  { %3407 = vmatpush1.bf16.msra.mxu0 %v5471_v55  ;;  %v523_v55 = vld [vmem:[#allocation5 + $0x398] sm:$0xff] }
  0x64   :  { %3471 = vmatpush1.bf16.msra.mxu1 %v5475_v1  ;;  %3409 = vmatprep.subr.bf16.mxu0 %v5477_v0  ;;  %v5496_v1 = vpack.c.bf16 %v468_v9, %v464_v63  ;;  %v476_v63 = vld [vmem:[#allocation5 + $0x220] sm:$0xff]  ;;  %v5506_v9 = vpack.c.bf16 %v479_v43, %v475_v48  ;;  %v487_v48 = vld [vmem:[#allocation5 + $0x278] sm:$0xff] }
  0x65   :  { %3473 = vmatprep.subr.bf16.mxu1 %v5480_v21  ;;  %v5499_v21 = vpack.c.bf16 %v470_v23, %v466_v7  ;;  %v5508_v0 = vpack.c.bf16 %v476_v63, %v472_v59  ;;  %v474_v7 = vld [vmem:[#allocation5 + $0x210] sm:$0xff]  ;;  %v480_v43 = vld [vmem:[#allocation5 + $0x240] sm:$0xff] }
  0x66   :  { %6672 = vst [vmem:[#allocation34_spill] sm:$0xff] %v5496_v1  ;;  %6675 = vst [vmem:[#allocation37_spill] sm:$0xff] %v5506_v9  ;;  %v478_v23 = vld [vmem:[#allocation5 + $0x230] sm:$0xff]  ;;  %v484_v59 = vld [vmem:[#allocation5 + $0x260] sm:$0xff] }
  0x67   :  { %3411 = vmatpush1.bf16.msra.mxu0 %v5483_v40  ;;  %6673 = vst [vmem:[#allocation35_spill] sm:$0xff] %v5499_v21  ;;  %6676 = vst [vmem:[#allocation38_spill] sm:$0xff] %v5508_v0 }
  0x68   :  { %3475 = vmatpush1.bf16.msra.mxu1 %v5487_v34  ;;  %3413 = vmatprep.subr.bf16.mxu0 %v5492_v44  ;;  %v473_v34 = vld [vmem:[#allocation5 + $0x208] sm:$0xff]  ;;  %v5520_v44 = vpack.c.bf16 %v484_v59, %v480_v43  ;;  %v492_v43 = vld [vmem:[#allocation5 + $0x2a0] sm:$0xff] }
  0x69   :  { %3477 = vmatprep.subr.bf16.mxu1 %v5494_v10  ;;  %v5504_v40 = vpack.c.bf16 %v477_v19, %v473_v34  ;;  %v5511_v10 = vpack.c.bf16 %v478_v23, %v474_v7  ;;  %v485_v34 = vld [vmem:[#allocation5 + $0x268] sm:$0xff]  ;;  %v483_v19 = vld [vmem:[#allocation5 + $0x258] sm:$0xff]  ;;  %v482_v7 = vld [vmem:[#allocation5 + $0x250] sm:$0xff] }
  0x6a   :  { %v5518_v63 = vpack.c.bf16 %v487_v48, %v483_v19  ;;  %6680 = vst [vmem:[#allocation42_spill] sm:$0xff] %v5520_v44  ;;  %v486_v23 = vld [vmem:[#allocation5 + $0x270] sm:$0xff]  ;;  %v495_v19 = vld [vmem:[#allocation5 + $0x2b8] sm:$0xff]  ;;  %v488_v48 = vld [vmem:[#allocation5 + $0x280] sm:$0xff] }
  0x6b   :  { %3415 = vmatpush1.bf16.msra.mxu0 %v5496_v1  ;;  %6674 = vst [vmem:[#allocation36_spill] sm:$0xff] %v5504_v40  ;;  %6677 = vst [vmem:[#allocation39_spill] sm:$0xff] %v5511_v10 }
  0x6c   :  { %3479 = vmatpush1.bf16.msra.mxu1 %v5499_v21  ;;  %3417 = vmatprep.subr.bf16.mxu0 %v5504_v40  ;;  %v481_v21 = vld [vmem:[#allocation5 + $0x248] sm:$0xff]  ;;  %6679 = vst [vmem:[#allocation41_spill] sm:$0xff] %v5518_v63  ;;  %v5532_v40 = vpack.c.bf16 %v492_v43, %v488_v48  ;;  %v500_v48 = vld [vmem:[#allocation5 + $0x2e0] sm:$0xff] }
  0x6d   :  { %3481 = vmatprep.subr.bf16.mxu1 %v5506_v9  ;;  %v5516_v1 = vpack.c.bf16 %v485_v34, %v481_v21  ;;  %v5523_v9 = vpack.c.bf16 %v486_v23, %v482_v7  ;;  %v493_v21 = vld [vmem:[#allocation5 + $0x2a8] sm:$0xff]  ;;  %v491_v34 = vld [vmem:[#allocation5 + $0x298] sm:$0xff]  ;;  %v490_v7 = vld [vmem:[#allocation5 + $0x290] sm:$0xff] }
  0x6e   :  { %v5530_v59 = vpack.c.bf16 %v495_v19, %v491_v34  ;;  %6684 = vst [vmem:[#allocation46_spill] sm:$0xff] %v5532_v40  ;;  %v494_v23 = vld [vmem:[#allocation5 + $0x2b0] sm:$0xff]  ;;  %v503_v34 = vld [vmem:[#allocation5 + $0x2f8] sm:$0xff]  ;;  %v496_v19 = vld [vmem:[#allocation5 + $0x2c0] sm:$0xff] }
  0x6f   :  { %3419 = vmatpush1.bf16.msra.mxu0 %v5508_v0  ;;  %6678 = vst [vmem:[#allocation40_spill] sm:$0xff] %v5516_v1  ;;  %6681 = vst [vmem:[#allocation43_spill] sm:$0xff] %v5523_v9 }
  0x70   :  { %3483 = vmatpush1.bf16.msra.mxu1 %v5511_v10  ;;  %3421 = vmatprep.subr.bf16.mxu0 %v5516_v1  ;;  %v489_v10 = vld [vmem:[#allocation5 + $0x288] sm:$0xff]  ;;  %6683 = vst [vmem:[#allocation45_spill] sm:$0xff] %v5530_v59  ;;  %v5544_v1 = vpack.c.bf16 %v500_v48, %v496_v19  ;;  %v508_v19 = vld [vmem:[#allocation5 + $0x320] sm:$0xff] }
  0x71   :  { %3485 = vmatprep.subr.bf16.mxu1 %v5518_v63  ;;  %v5528_v0 = vpack.c.bf16 %v493_v21, %v489_v10  ;;  %v5535_v63 = vpack.c.bf16 %v494_v23, %v490_v7  ;;  %v501_v10 = vld [vmem:[#allocation5 + $0x2e8] sm:$0xff]  ;;  %v499_v21 = vld [vmem:[#allocation5 + $0x2d8] sm:$0xff]  ;;  %v498_v7 = vld [vmem:[#allocation5 + $0x2d0] sm:$0xff] }
  0x72   :  { %v5542_v43 = vpack.c.bf16 %v503_v34, %v499_v21  ;;  %6688 = vst [vmem:[#allocation50_spill] sm:$0xff] %v5544_v1  ;;  %v502_v23 = vld [vmem:[#allocation5 + $0x2f0] sm:$0xff]  ;;  %v511_v21 = vld [vmem:[#allocation5 + $0x338] sm:$0xff]  ;;  %v504_v34 = vld [vmem:[#allocation5 + $0x300] sm:$0xff] }
  0x73   :  { %3423 = vmatpush1.bf16.msra.mxu0 %v5520_v44  ;;  %6682 = vst [vmem:[#allocation44_spill] sm:$0xff] %v5528_v0  ;;  %6685 = vst [vmem:[#allocation47_spill] sm:$0xff] %v5535_v63 }
  0x74   :  { %3487 = vmatpush1.bf16.msra.mxu1 %v5523_v9  ;;  %3425 = vmatprep.subr.bf16.mxu0 %v5528_v0  ;;  %v497_v9 = vld [vmem:[#allocation5 + $0x2c8] sm:$0xff]  ;;  %6687 = vst [vmem:[#allocation49_spill] sm:$0xff] %v5542_v43  ;;  %v5556_v0 = vpack.c.bf16 %v508_v19, %v504_v34  ;;  %v516_v34 = vld [vmem:[#allocation5 + $0x360] sm:$0xff] }
  0x75   :  { %3489 = vmatprep.subr.bf16.mxu1 %v5530_v59  ;;  %v5540_v44 = vpack.c.bf16 %v501_v10, %v497_v9  ;;  %v5547_v59 = vpack.c.bf16 %v502_v23, %v498_v7  ;;  %v509_v9 = vld [vmem:[#allocation5 + $0x328] sm:$0xff]  ;;  %v507_v10 = vld [vmem:[#allocation5 + $0x318] sm:$0xff]  ;;  %v506_v7 = vld [vmem:[#allocation5 + $0x310] sm:$0xff] }
  0x76   :  { %v5554_v48 = vpack.c.bf16 %v511_v21, %v507_v10  ;;  %6692 = vst [vmem:[#allocation54_spill] sm:$0xff] %v5556_v0  ;;  %v510_v23 = vld [vmem:[#allocation5 + $0x330] sm:$0xff]  ;;  %v519_v10 = vld [vmem:[#allocation5 + $0x378] sm:$0xff]  ;;  %v512_v21 = vld [vmem:[#allocation5 + $0x340] sm:$0xff] }
  0x77   :  { %3427 = vmatpush1.bf16.msra.mxu0 %v5532_v40  ;;  %6686 = vst [vmem:[#allocation48_spill] sm:$0xff] %v5540_v44  ;;  %6689 = vst [vmem:[#allocation51_spill] sm:$0xff] %v5547_v59 }
  0x78   :  { %3491 = vmatpush1.bf16.msra.mxu1 %v5535_v63  ;;  %3429 = vmatprep.subr.bf16.mxu0 %v5540_v44  ;;  %v505_v63 = vld [vmem:[#allocation5 + $0x308] sm:$0xff]  ;;  %6691 = vst [vmem:[#allocation53_spill] sm:$0xff] %v5554_v48  ;;  %v5568_v44 = vpack.c.bf16 %v516_v34, %v512_v21  ;;  %v522_v21 = vld [vmem:[#allocation5 + $0x390] sm:$0xff] }
  0x79   :  { %3493 = vmatprep.subr.bf16.mxu1 %v5542_v43  ;;  %v5552_v40 = vpack.c.bf16 %v509_v9, %v505_v63  ;;  %v5559_v43 = vpack.c.bf16 %v510_v23, %v506_v7  ;;  %v517_v63 = vld [vmem:[#allocation5 + $0x368] sm:$0xff]  ;;  %v515_v9 = vld [vmem:[#allocation5 + $0x358] sm:$0xff]  ;;  %v514_v7 = vld [vmem:[#allocation5 + $0x350] sm:$0xff] }
  0x7a   :  { %v5566_v19 = vpack.c.bf16 %v519_v10, %v515_v9  ;;  %6696 = vst [vmem:[#allocation58_spill] sm:$0xff] %v5568_v44  ;;  %v518_v23 = vld [vmem:[#allocation5 + $0x370] sm:$0xff]  ;;  %v520_v9 = vld [vmem:[#allocation5 + $0x380] sm:$0xff] }
  0x7b   :  { %3431 = vmatpush1.bf16.msra.mxu0 %v5544_v1  ;;  %6690 = vst [vmem:[#allocation52_spill] sm:$0xff] %v5552_v40  ;;  %6693 = vst [vmem:[#allocation55_spill] sm:$0xff] %v5559_v43  ;;  %v524_v10 = vld [vmem:[#allocation5 + $0x3a0] sm:$0xff] }
  0x7c   :  { %3495 = vmatpush1.bf16.msra.mxu1 %v5547_v59  ;;  %3433 = vmatprep.subr.bf16.mxu0 %v5552_v40  ;;  %v513_v59 = vld [vmem:[#allocation5 + $0x348] sm:$0xff]  ;;  %6695 = vst [vmem:[#allocation57_spill] sm:$0xff] %v5566_v19  ;;  %v5580_v34 = vpack.c.bf16 %v524_v10, %v520_v9  ;;  %v534_v9 = vld [vmem:[#allocation5 + $0x3f0] sm:$0xff] }
  0x7d   :  { %3497 = vmatprep.subr.bf16.mxu1 %v5554_v48  ;;  %v5564_v1 = vpack.c.bf16 %v517_v63, %v513_v59  ;;  %v521_v40 = vld [vmem:[#allocation5 + $0x388] sm:$0xff]  ;;  %v5577_v63 = vpack.c.bf16 %v527_v47, %v523_v55  ;;  %v531_v55 = vld [vmem:[#allocation5 + $0x3d8] sm:$0xff] }
  0x7e   :  { %v525_v48 = vld [vmem:[#allocation5 + $0x3a8] sm:$0xff]  ;;  %6700 = vst [vmem:[#allocation62_spill] sm:$0xff] %v5580_v34  ;;  %v535_v47 = vld [vmem:[#allocation5 + $0x3f8] sm:$0xff] }
  0x7f   :  { %3435 = vmatpush1.bf16.msra.mxu0 %v5556_v0  ;;  %6694 = vst [vmem:[#allocation56_spill] sm:$0xff] %v5564_v1  ;;  %v5571_v0 = vpack.c.bf16 %v518_v23, %v514_v7  ;;  %v5575_v59 = vpack.c.bf16 %v525_v48, %v521_v40  ;;  %6699 = vst [vmem:[#allocation61_spill] sm:$0xff] %v5577_v63  ;;  %v526_v7 = vld [vmem:[#allocation5 + $0x3b0] sm:$0xff]  ;;  %v529_v23 = vld [vmem:[#allocation5 + $0x3c8] sm:$0xff] }
  0x80   :  { %3499 = vmatpush1.bf16.msra.mxu1 %v5559_v43  ;;  %3437 = vmatprep.subr.bf16.mxu0 %v5564_v1  ;;  %v533_v1 = vld [vmem:[#allocation5 + $0x3e8] sm:$0xff]  ;;  %v528_v48 = vld [vmem:[#allocation5 + $0x3c0] sm:$0xff] }
  0x81   :  { %6697 = vst [vmem:[#allocation59_spill] sm:$0xff] %v5571_v0  ;;  %3501 = vmatprep.subr.bf16.mxu1 %v5566_v19  ;;  %6698 = vst [vmem:[#allocation60_spill] sm:$0xff] %v5575_v59  ;;  %v5584_v19 = vpack.c.bf16 %v526_v7, %v522_v21  ;;  %v5586_v40 = vpack.c.bf16 %v533_v1, %v529_v23  ;;  %v532_v43 = vld [vmem:[#allocation5 + $0x3e0] sm:$0xff]  ;;  %v73_v1 = vlaneseq }
  0x82   :  { %v5591_v10 = vpack.c.bf16 %v532_v43, %v528_v48 }
  0x83   :  { %3439 = vmatpush1.bf16.msra.mxu0 %v5568_v44  ;;  %6701 = vst [vmem:[#allocation63_spill] sm:$0xff] %v5584_v19  ;;  %6702 = vst [vmem:[#allocation64_spill] sm:$0xff] %v5586_v40  ;;  %v5588_v44 = vpack.c.bf16 %v535_v47, %v531_v55  ;;  %v5602_v7 = vshrl.u32 %v73_v1, 7 }
  0x84   :  { %3503 = vmatpush1.bf16.msra.mxu1 %v5571_v0  ;;  %3441 = vmatprep.subr.bf16.mxu0 %v5575_v59  ;;  %v530_v0 = vld [vmem:[#allocation5 + $0x3d0] sm:$0xff]  ;;  %6704 = vst [vmem:[#allocation66_spill] sm:$0xff] %v5591_v10 }
  0x85   :  { %3505 = vmatprep.subr.bf16.mxu1 %v5577_v63  ;;  %6703 = vst [vmem:[#allocation65_spill] sm:$0xff] %v5588_v44  ;;  %v5595_v21 = vpack.c.bf16 %v534_v9, %v530_v0  ;;  %v6603_v43 = vsub.s32 0, %v5602_v7  ;;  %v71_v0 = vld [vmem:[%s6505_s3] sm:$0xf]  ;;  %v6610_v23 = vsub.s32 1, %v5602_v7  ;;  %v6613_v47 = vsub.s32 3, %v5602_v7 }
  0x87   :  { %3443 = vmatpush1.bf16.msra.mxu0 %v5580_v34  ;;  %6705 = vst [vmem:[#allocation67_spill] sm:$0xff] %v5595_v21  ;;  %v5611_v55 = vrot.slane %v71_v0, %v6603_v43  ;;  %v5616_v48 = vrot.slane %v71_v0, %v6610_v23 }
  0x88   :  { %3507 = vmatpush1.bf16.msra.mxu1 %v5584_v19  ;;  %3445 = vmatprep.subr.bf16.mxu0 %v5586_v40 }
  0x89   :  { %3509 = vmatprep.subr.bf16.mxu1 %v5588_v44  ;;  %6706 = vst [vmem:[#allocation68_spill] sm:$0xff] %v5611_v55  ;;  %6707 = vst [vmem:[#allocation69_spill] sm:$0xff] %v5616_v48 }
  0x8b   :  { %3447 = vmatpush1.bf16.msra.mxu0 %v5591_v10  ;;  %v6624_v10 = vsub.s32 2, %v5602_v7 }
  0x8c   :  { %3511 = vmatpush1.bf16.msra.mxu1 %v5595_v21  ;;  %3513 = vmatprep.subr.bf16.mxu0 %v5257_v11  ;;  %v5621_v21 = vrot.slane %v71_v0, %v6613_v47 }
  0x8d   :  { %3545 = vmatprep.subr.bf16.mxu1 %v5259_v12  ;;  %v5628_v34 = vrot.slane %v71_v0, %v6624_v10 }
 0x121   :  { %v624_v9 = vpop.f32.mrb[0].mxu0 }
 0x122   :  { %v4880_v1 = vadd.f32 %v624_v9, %v5611_v55  ;;  %v695_v12 = vpop.f32.mrb[0].mxu1  ;;  %v626_v11 = vpop.f32.mrb[1].mxu0 }
 0x123   :  { %v4881_v43 = vadd.f32 %v626_v11, %v5616_v48  ;;  %v697_v44 = vpop.f32.mrb[1].mxu1  ;;  %v4896_v9 = vadd.f32 %v695_v12, %v5628_v34 }
 0x124   :  { %v704_v40 = vmul.f32 0.5, %v4880_v1  ;;  %v4897_v23 = vadd.f32 %v697_v44, %v5621_v21 }
 0x125   :  { %v705_v19 = vmul.f32 0.5, %v4881_v43  ;;  %v706_v47 = vmul.f32 0.5, %v4896_v9  ;;  %v6715_v9 = vld [vmem:[#allocation24_spill] sm:$0xff] }
 0x126   :  { %4951 = vtanh.f32 %v704_v40 }
 0x127   :  { %4953 = vtanh.f32 %v705_v19 }
 0x128   :  { %4955 = vtanh.f32 %v4897_v23 }
 0x129   :  { %4957 = vtanh.f32 %v706_v47  ;;  %v6713_v47 = vld [vmem:[#allocation19_spill] sm:$0xff] }
 0x130   :  { %v4952_v55 = vpop.eup %4951 }
 0x131   :  { %v710_v63 = vmul.f32 0.5, %v4952_v55  ;;  %v4954_v59 = vpop.eup %4953  ;;  %v6712_v55 = vld [vmem:[#allocation18_spill] sm:$0xff] }
 0x132   :  { %v711_v11 = vmul.f32 0.5, %v4954_v59  ;;  %v4956_v1 = vpop.eup %4955  ;;  %v6709_v59 = vld [vmem:[#allocation15_spill] sm:$0xff] }
 0x133   :  { %v713_v35 = vadd.f32 0.5, %v710_v63  ;;  %v4958_v0 = vpop.eup %4957  ;;  %v6710_v63 = vld [vmem:[#allocation16_spill] sm:$0xff] }
 0x134   :  { %v714_v43 = vadd.f32 0.5, %v711_v11  ;;  %v712_v19 = vmul.f32 0.5, %v4958_v0  ;;  %v6716_v11 = vld [vmem:[#allocation25_spill] sm:$0xff] }
 0x135   :  { %v718_v40 = vmul.f32 %v4956_v1, %v713_v35  ;;  %v6708_v35 = vmov 0.0   ;;  %v6717_v1 = vld [vmem:[#allocation26_spill] sm:$0xff]  ;;  %v6720_v0 = vld [vmem:[#allocation29_spill] sm:$0xff] }
 0x136   :  { %v717_v48 = vmul.f32 0.0, %v714_v43  ;;  %v715_v23 = vadd.f32 0.5, %v712_v19  ;;  %v6718_v43 = vld [vmem:[#allocation27_spill] sm:$0xff]  ;;  %v6721_v19 = vld [vmem:[#allocation30_spill] sm:$0xff] }
 0x138   :  { %v5631_v44 = vadd.f32 %v718_v40, %v717_v48  ;;  %v6714_v48 = vld [vmem:[#allocation21_spill] sm:$0xff]  ;;  %v6719_v40 = vld [vmem:[#allocation28_spill] sm:$0xff] }
 0x13a   :  { %4959 = vtanh.f32 %v5631_v44 }
 0x144   :  { %v4960_v10 = vpop.eup %4959 }
 0x145   :  { %v721_v12 = vmul.f32 %v4960_v10, %v715_v23  ;;  %v6711_v10 = vld [vmem:[#allocation17_spill] sm:$0xff]  ;;  %v6722_v23 = vld [vmem:[#allocation31_spill] sm:$0xff] }
 0x147   :  { %787 = vmatmul.mubr.f32.vlgmr.msra.gmra.mrb[16].mxu0 %v721_v12  ;;  %858 = vmatmul.mubr.f32.vlgmr.msra.gmra.mrb[16].mxu1 %v721_v12 }
 0x148   :  { %3515 = vmatpush1.bf16.msra.mxu0 %v5261_v16  ;;  %3547 = vmatpush1.bf16.msra.mxu1 %v5270_v20 }
 0x149   :  { %3517 = vmatprep.subr.bf16.mxu0 %v5273_v24  ;;  %3549 = vmatprep.subr.bf16.mxu1 %v5275_v25 }
 0x14a   :  { %946 = vmatprep.mubr.f32.mxu0 %v6708_v35  ;;  %1017 = vmatprep.mubr.f32.mxu1 %v6708_v35 }
 0x14c   :  { %3519 = vmatpush1.bf16.msra.mxu0 %v5279_v29  ;;  %3551 = vmatpush1.bf16.msra.mxu1 %v5286_v33 }
 0x14d   :  { %3521 = vmatprep.subr.bf16.mxu0 %v5290_v37  ;;  %3553 = vmatprep.subr.bf16.mxu1 %v5292_v38 }
 0x150   :  { %3523 = vmatpush1.bf16.msra.mxu0 %v5296_v42  ;;  %3555 = vmatpush1.bf16.msra.mxu1 %v5303_v46 }
 0x151   :  { %3525 = vmatprep.subr.bf16.mxu0 %v5307_v50  ;;  %3557 = vmatprep.subr.bf16.mxu1 %v5311_v54 }
 0x154   :  { %3527 = vmatpush1.bf16.msra.mxu0 %v5315_v57  ;;  %3559 = vmatpush1.bf16.msra.mxu1 %v5319_v61 }
 0x155   :  { %3529 = vmatprep.subr.bf16.mxu0 %v5326_v2  ;;  %3561 = vmatprep.subr.bf16.mxu1 %v5330_v5 }
 0x158   :  { %3531 = vmatpush1.bf16.msra.mxu0 %v5334_v8  ;;  %3563 = vmatpush1.bf16.msra.mxu1 %v5338_v13 }
 0x159   :  { %3533 = vmatprep.subr.bf16.mxu0 %v5345_v18  ;;  %3565 = vmatprep.subr.bf16.mxu1 %v5349_v22 }
 0x15c   :  { %3535 = vmatpush1.bf16.msra.mxu0 %v5353_v27  ;;  %3567 = vmatpush1.bf16.msra.mxu1 %v5357_v31 }
 0x15d   :  { %3537 = vmatprep.subr.bf16.mxu0 %v5364_v36  ;;  %3569 = vmatprep.subr.bf16.mxu1 %v5368_v41 }
 0x160   :  { %3539 = vmatpush1.bf16.msra.mxu0 %v5372_v45  ;;  %3571 = vmatpush1.bf16.msra.mxu1 %v5379_v51 }
 0x161   :  { %3541 = vmatprep.subr.bf16.mxu0 %v5383_v56  ;;  %3573 = vmatprep.subr.bf16.mxu1 %v5387_v62 }
 0x164   :  { %3543 = vmatpush1.bf16.msra.mxu0 %v5391_v3  ;;  %3575 = vmatpush1.bf16.msra.mxu1 %v5395_v4 }
 0x165   :  { %3577 = vmatprep.subr.bf16.mxu0 %v5397_v6  ;;  %3641 = vmatprep.subr.bf16.mxu1 %v5401_v14 }
 0x167   :  { %947 = vmatmul.mubr.f32.vlgmr.msra.gmra.mrb[2].mxu0 %v721_v12  ;;  %1018 = vmatmul.mubr.f32.vlgmr.msra.gmra.mrb[2].mxu1 %v721_v12  ;;  %v6723_v12 = vld [vmem:[#allocation32_spill] sm:$0xff] }
 0x168   :  { %3579 = vmatpush1.bf16.msra.mxu0 %v5407_v26  ;;  %3643 = vmatpush1.bf16.msra.mxu1 %v5411_v28 }
 0x169   :  { %3581 = vmatprep.subr.bf16.mxu0 %v5413_v30  ;;  %3645 = vmatprep.subr.bf16.mxu1 %v5416_v39 }
 0x16c   :  { %3583 = vmatpush1.bf16.msra.mxu0 %v5421_v49  ;;  %3647 = vmatpush1.bf16.msra.mxu1 %v5425_v52 }
 0x16d   :  { %3585 = vmatprep.subr.bf16.mxu0 %v5427_v53  ;;  %3649 = vmatprep.subr.bf16.mxu1 %v5430_v60 }
 0x170   :  { %3587 = vmatpush1.bf16.msra.mxu0 %v5435_v15  ;;  %3651 = vmatpush1.bf16.msra.mxu1 %v6709_v59 }
 0x171   :  { %3589 = vmatprep.subr.bf16.mxu0 %v6710_v63  ;;  %3653 = vmatprep.subr.bf16.mxu1 %v6711_v10 }
 0x174   :  { %3591 = vmatpush1.bf16.msra.mxu0 %v6712_v55  ;;  %3655 = vmatpush1.bf16.msra.mxu1 %v6713_v47 }
 0x175   :  { %3593 = vmatprep.subr.bf16.mxu0 %v5453_v58  ;;  %3657 = vmatprep.subr.bf16.mxu1 %v6714_v48 }
 0x178   :  { %3595 = vmatpush1.bf16.msra.mxu0 %v5459_v17  ;;  %3659 = vmatpush1.bf16.msra.mxu1 %v5463_v32  ;;  %v6724_v17 = vld [vmem:[#allocation33_spill] sm:$0xff]  ;;  %v6725_v32 = vld [vmem:[#allocation34_spill] sm:$0xff] }
 0x179   :  { %3597 = vmatprep.subr.bf16.mxu0 %v6715_v9  ;;  %3661 = vmatprep.subr.bf16.mxu1 %v6716_v11  ;;  %v6726_v9 = vld [vmem:[#allocation35_spill] sm:$0xff]  ;;  %v6727_v11 = vld [vmem:[#allocation36_spill] sm:$0xff] }
 0x17c   :  { %3599 = vmatpush1.bf16.msra.mxu0 %v6717_v1  ;;  %3663 = vmatpush1.bf16.msra.mxu1 %v6718_v43  ;;  %v6728_v1 = vld [vmem:[#allocation37_spill] sm:$0xff]  ;;  %v6729_v43 = vld [vmem:[#allocation38_spill] sm:$0xff] }
 0x17d   :  { %3601 = vmatprep.subr.bf16.mxu0 %v6719_v40  ;;  %3665 = vmatprep.subr.bf16.mxu1 %v6720_v0  ;;  %v6730_v40 = vld [vmem:[#allocation39_spill] sm:$0xff]  ;;  %v6731_v0 = vld [vmem:[#allocation40_spill] sm:$0xff] }
 0x180   :  { %3603 = vmatpush1.bf16.msra.mxu0 %v6721_v19  ;;  %3667 = vmatpush1.bf16.msra.mxu1 %v6722_v23  ;;  %v6732_v19 = vld [vmem:[#allocation41_spill] sm:$0xff]  ;;  %v6733_v23 = vld [vmem:[#allocation42_spill] sm:$0xff] }
 0x181   :  { %3605 = vmatprep.subr.bf16.mxu0 %v6723_v12  ;;  %3669 = vmatprep.subr.bf16.mxu1 %v6724_v17  ;;  %v6734_v12 = vld [vmem:[#allocation43_spill] sm:$0xff]  ;;  %v6735_v17 = vld [vmem:[#allocation44_spill] sm:$0xff] }
 0x184   :  { %3607 = vmatpush1.bf16.msra.mxu0 %v6725_v32  ;;  %3671 = vmatpush1.bf16.msra.mxu1 %v6726_v9  ;;  %v6736_v32 = vld [vmem:[#allocation45_spill] sm:$0xff]  ;;  %v6737_v9 = vld [vmem:[#allocation46_spill] sm:$0xff] }
 0x185   :  { %3609 = vmatprep.subr.bf16.mxu0 %v6727_v11  ;;  %3673 = vmatprep.subr.bf16.mxu1 %v6728_v1  ;;  %v6738_v11 = vld [vmem:[#allocation47_spill] sm:$0xff]  ;;  %v6739_v1 = vld [vmem:[#allocation48_spill] sm:$0xff] }
 0x188   :  { %3611 = vmatpush1.bf16.msra.mxu0 %v6729_v43  ;;  %3675 = vmatpush1.bf16.msra.mxu1 %v6730_v40  ;;  %v6740_v43 = vld [vmem:[#allocation49_spill] sm:$0xff]  ;;  %v6741_v40 = vld [vmem:[#allocation50_spill] sm:$0xff] }
 0x189   :  { %3613 = vmatprep.subr.bf16.mxu0 %v6731_v0  ;;  %3677 = vmatprep.subr.bf16.mxu1 %v6732_v19  ;;  %v6742_v0 = vld [vmem:[#allocation51_spill] sm:$0xff]  ;;  %v6743_v19 = vld [vmem:[#allocation52_spill] sm:$0xff] }
 0x18c   :  { %3615 = vmatpush1.bf16.msra.mxu0 %v6733_v23  ;;  %3679 = vmatpush1.bf16.msra.mxu1 %v6734_v12  ;;  %v6744_v23 = vld [vmem:[#allocation53_spill] sm:$0xff]  ;;  %v6745_v12 = vld [vmem:[#allocation54_spill] sm:$0xff] }
 0x18d   :  { %3617 = vmatprep.subr.bf16.mxu0 %v6735_v17  ;;  %3681 = vmatprep.subr.bf16.mxu1 %v6736_v32  ;;  %v6746_v17 = vld [vmem:[#allocation55_spill] sm:$0xff]  ;;  %v6747_v32 = vld [vmem:[#allocation56_spill] sm:$0xff] }
 0x190   :  { %3619 = vmatpush1.bf16.msra.mxu0 %v6737_v9  ;;  %3683 = vmatpush1.bf16.msra.mxu1 %v6738_v11  ;;  %v6748_v9 = vld [vmem:[#allocation57_spill] sm:$0xff]  ;;  %v6749_v11 = vld [vmem:[#allocation58_spill] sm:$0xff] }
 0x191   :  { %3621 = vmatprep.subr.bf16.mxu0 %v6739_v1  ;;  %3685 = vmatprep.subr.bf16.mxu1 %v6740_v43  ;;  %v6750_v1 = vld [vmem:[#allocation59_spill] sm:$0xff]  ;;  %v6751_v43 = vld [vmem:[#allocation60_spill] sm:$0xff] }
 0x194   :  { %3623 = vmatpush1.bf16.msra.mxu0 %v6741_v40  ;;  %3687 = vmatpush1.bf16.msra.mxu1 %v6742_v0  ;;  %v6752_v40 = vld [vmem:[#allocation61_spill] sm:$0xff]  ;;  %v6753_v0 = vld [vmem:[#allocation62_spill] sm:$0xff] }
 0x195   :  { %3625 = vmatprep.subr.bf16.mxu0 %v6743_v19  ;;  %3689 = vmatprep.subr.bf16.mxu1 %v6744_v23  ;;  %v6754_v19 = vld [vmem:[#allocation63_spill] sm:$0xff]  ;;  %v6755_v23 = vld [vmem:[#allocation64_spill] sm:$0xff] }
 0x198   :  { %3627 = vmatpush1.bf16.msra.mxu0 %v6745_v12  ;;  %3691 = vmatpush1.bf16.msra.mxu1 %v6746_v17  ;;  %v6756_v12 = vld [vmem:[#allocation65_spill] sm:$0xff]  ;;  %v6757_v17 = vld [vmem:[#allocation66_spill] sm:$0xff] }
 0x199   :  { %3629 = vmatprep.subr.bf16.mxu0 %v6747_v32  ;;  %3693 = vmatprep.subr.bf16.mxu1 %v6748_v9  ;;  %v6758_v32 = vld [vmem:[#allocation67_spill] sm:$0xff]  ;;  %v6759_v9 = vld [vmem:[#allocation9_spill] sm:$0xff] }
 0x19c   :  { %3631 = vmatpush1.bf16.msra.mxu0 %v6749_v11  ;;  %3695 = vmatpush1.bf16.msra.mxu1 %v6750_v1  ;;  %v6760_v11 = vld [vmem:[#allocation10_spill] sm:$0xff] }
 0x19d   :  { %3633 = vmatprep.subr.bf16.mxu0 %v6751_v43  ;;  %3697 = vmatprep.subr.bf16.mxu1 %v6752_v40  ;;  %v536_v40 = vld [vmem:[%s6507_s5] sm:$0xf] }
 0x1a0   :  { %3635 = vmatpush1.bf16.msra.mxu0 %v6753_v0  ;;  %3699 = vmatpush1.bf16.msra.mxu1 %v6754_v19  ;;  %v6761_v0 = vsub.s32 0, %v5602_v7 }
 0x1a1   :  { %3637 = vmatprep.subr.bf16.mxu0 %v6755_v23  ;;  %3701 = vmatprep.subr.bf16.mxu1 %v6756_v12  ;;  %v6763_v23 = vsub.s32 1, %v5602_v7 }
 0x1a2   :  { %v5737_v43 = vrot.slane %v536_v40, %v6761_v0 }
 0x1a3   :  { %v5741_v19 = vrot.slane %v536_v40, %v6763_v23  ;;  %v6767_v23 = vsub.s32 2, %v5602_v7 }
 0x1a4   :  { %3639 = vmatpush1.bf16.msra.mxu0 %v6757_v17  ;;  %3703 = vmatpush1.bf16.msra.mxu1 %v6758_v32  ;;  %6762 = vst [vmem:[#allocation70_spill] sm:$0xff] %v5737_v43 }
 0x1a5   :  { %3705 = vmatprep.subr.bf16.mxu0 %v6759_v9  ;;  %3737 = vmatprep.subr.bf16.mxu1 %v6760_v11  ;;  %6764 = vst [vmem:[#allocation71_spill] sm:$0xff] %v5741_v19  ;;  %v6765_v9 = vsub.s32 3, %v5602_v7  ;;  %v5752_v10 = vrot.slane %v536_v40, %v6767_v23 }
 0x1a7   :  { %v5746_v11 = vrot.slane %v536_v40, %v6765_v9  ;;  %6768 = vst [vmem:[#allocation73_spill] sm:$0xff] %v5752_v10 }
 0x1a9   :  { %6766 = vst [vmem:[#allocation72_spill] sm:$0xff] %v5746_v11 }
 0x21a   :  { %v788_v12 = vpop.f32.mrb[16].mxu0  ;;  %v859_v17 = vpop.f32.mrb[16].mxu1 }
 0x21b   :  { %v789_v32 = vadd.f32 %v788_v12, %v5737_v43  ;;  %v790_v1 = vpop.f32.mrb[17].mxu0  ;;  %v861_v48 = vpop.f32.mrb[17].mxu1  ;;  %v860_v12 = vadd.f32 %v859_v17, %v5752_v10  ;;  %v6769_v17 = vld [vmem:[#allocation68_spill] sm:$0xff]  ;;  %v6770_v10 = vld [vmem:[#allocation69_spill] sm:$0xff] }
 0x21c   :  { %v791_v58 = vadd.f32 %v790_v1, %v5741_v19  ;;  %v862_v0 = vadd.f32 %v861_v48, %v5746_v11 }
 0x21d   :  { %v864_v47 = vmul.f32 0.5, %v789_v32  ;;  %v866_v43 = vmul.f32 0.5, %v860_v12 }
 0x21e   :  { %v865_v55 = vmul.f32 0.5, %v791_v58 }
 0x21f   :  { %4961 = vtanh.f32 %v864_v47 }
 0x220   :  { %4963 = vtanh.f32 %v865_v55 }
 0x221   :  { %4965 = vtanh.f32 %v862_v0 }
 0x222   :  { %4967 = vtanh.f32 %v866_v43 }
 0x229   :  { %v4962_v63 = vpop.eup %4961 }
 0x22a   :  { %v870_v9 = vmul.f32 0.5, %v4962_v63  ;;  %v4964_v59 = vpop.eup %4963 }
 0x22b   :  { %v871_v1 = vmul.f32 0.5, %v4964_v59  ;;  %v4966_v32 = vpop.eup %4965 }
 0x22c   :  { %v873_v15 = vadd.f32 0.5, %v870_v9  ;;  %v4968_v7 = vpop.eup %4967 }
 0x22d   :  { %v874_v58 = vadd.f32 0.5, %v871_v1  ;;  %v872_v55 = vmul.f32 0.5, %v4968_v7 }
 0x22e   :  { %v878_v47 = vmul.f32 %v4966_v32, %v873_v15 }
 0x22f   :  { %v877_v19 = vmul.f32 0.0, %v874_v58  ;;  %v875_v43 = vadd.f32 0.5, %v872_v55 }
 0x231   :  { %v5755_v48 = vadd.f32 %v878_v47, %v877_v19 }
 0x233   :  { %4969 = vtanh.f32 %v5755_v48 }
 0x23a   :  { %v948_v40 = vpop.f32.mrb[2].mxu0  ;;  %v1019_v0 = vpop.f32.mrb[2].mxu1 }
 0x23b   :  { %v4882_v23 = vadd.f32 %v948_v40, %v6769_v17  ;;  %v950_v12 = vpop.f32.mrb[3].mxu0  ;;  %v1021_v63 = vpop.f32.mrb[3].mxu1  ;;  %v4898_v32 = vadd.f32 %v1019_v0, %v5628_v34 }
 0x23c   :  { %v4883_v9 = vadd.f32 %v950_v12, %v6770_v10  ;;  %v4899_v15 = vadd.f32 %v1021_v63, %v5621_v21 }
 0x23d   :  { %v1028_v59 = vmul.f32 0.5, %v4882_v23  ;;  %v4970_v11 = vpop.eup %4969  ;;  %v1030_v58 = vmul.f32 0.5, %v4898_v32  ;;  %v6774_v32 = vld [vmem:[#allocation17_spill] sm:$0xff] }
 0x23e   :  { %v1029_v1 = vmul.f32 0.5, %v4883_v9  ;;  %v881_v19 = vmul.f32 %v4970_v11, %v875_v43 }
 0x23f   :  { %4971 = vtanh.f32 %v1028_v59 }
 0x240   :  { %4973 = vtanh.f32 %v1029_v1  ;;  %1110 = vmatprep.mubr.f32.mxu0 %v881_v19  ;;  %1181 = vmatprep.mubr.f32.mxu1 %v881_v19  ;;  %v6773_v19 = vld [vmem:[#allocation16_spill] sm:$0xff] }
 0x241   :  { %4975 = vtanh.f32 %v4899_v15 }
 0x242   :  { %4977 = vtanh.f32 %v1030_v58  ;;  %v6775_v58 = vld [vmem:[#allocation18_spill] sm:$0xff] }
 0x249   :  { %v4972_v47 = vpop.eup %4971 }
 0x24a   :  { %v1034_v7 = vmul.f32 0.5, %v4972_v47  ;;  %v4974_v40 = vpop.eup %4973  ;;  %v6776_v47 = vld [vmem:[#allocation19_spill] sm:$0xff] }
 0x24b   :  { %v1035_v55 = vmul.f32 0.5, %v4974_v40  ;;  %v4976_v23 = vpop.eup %4975  ;;  %v6778_v40 = vld [vmem:[#allocation21_spill] sm:$0xff] }
 0x24c   :  { %v1037_v17 = vadd.f32 0.5, %v1034_v7  ;;  %v4978_v11 = vpop.eup %4977  ;;  %v6777_v7 = vld [vmem:[#allocation20_spill] sm:$0xff] }
 0x24d   :  { %v1038_v12 = vadd.f32 0.5, %v1035_v55  ;;  %v1036_v43 = vmul.f32 0.5, %v4978_v11  ;;  %v6779_v55 = vld [vmem:[#allocation22_spill] sm:$0xff]  ;;  %v6784_v11 = vld [vmem:[#allocation27_spill] sm:$0xff] }
 0x24e   :  { %v1042_v9 = vmul.f32 %v4976_v23, %v1037_v17  ;;  %v6772_v17 = vld [vmem:[#allocation15_spill] sm:$0xff] }
 0x24f   :  { %v1041_v59 = vmul.f32 %v1038_v12, %v5631_v44  ;;  %v1039_v1 = vadd.f32 0.5, %v1036_v43  ;;  %v6771_v44 = vld [vmem:[#allocation14_spill] sm:$0xff]  ;;  %v6780_v23 = vld [vmem:[#allocation23_spill] sm:$0xff]  ;;  %v6781_v12 = vld [vmem:[#allocation24_spill] sm:$0xff] }
 0x250   :  { %v6785_v43 = vld [vmem:[#allocation28_spill] sm:$0xff] }
 0x251   :  { %v5763_v63 = vadd.f32 %v1042_v9, %v1041_v59  ;;  %v6782_v9 = vld [vmem:[#allocation25_spill] sm:$0xff]  ;;  %v6783_v59 = vld [vmem:[#allocation26_spill] sm:$0xff] }
 0x253   :  { %4979 = vtanh.f32 %v5763_v63 }
 0x25d   :  { %v4980_v0 = vpop.eup %4979 }
 0x25e   :  { %v1045_v15 = vmul.f32 %v4980_v0, %v1039_v1  ;;  %v6786_v1 = vld [vmem:[#allocation29_spill] sm:$0xff]  ;;  %v6787_v0 = vld [vmem:[#allocation30_spill] sm:$0xff] }
 0x260   :  { %1111 = vmatmul.mubr.f32.vlgmr.msra.gmra.mrb[18].mxu0 %v1045_v15  ;;  %1182 = vmatmul.mubr.f32.vlgmr.msra.gmra.mrb[18].mxu1 %v1045_v15 }
 0x261   :  { %3707 = vmatpush1.bf16.msra.mxu0 %v5261_v16  ;;  %3739 = vmatpush1.bf16.msra.mxu1 %v5270_v20 }
 0x262   :  { %3709 = vmatprep.subr.bf16.mxu0 %v5273_v24  ;;  %3741 = vmatprep.subr.bf16.mxu1 %v5275_v25 }
 0x263   :  { %1270 = vmatprep.mubr.f32.mxu0 %v6708_v35  ;;  %1341 = vmatprep.mubr.f32.mxu1 %v6708_v35 }
 0x265   :  { %3711 = vmatpush1.bf16.msra.mxu0 %v5279_v29  ;;  %3743 = vmatpush1.bf16.msra.mxu1 %v5286_v33 }
 0x266   :  { %3713 = vmatprep.subr.bf16.mxu0 %v5290_v37  ;;  %3745 = vmatprep.subr.bf16.mxu1 %v5292_v38 }
 0x269   :  { %3715 = vmatpush1.bf16.msra.mxu0 %v5296_v42  ;;  %3747 = vmatpush1.bf16.msra.mxu1 %v5303_v46 }
 0x26a   :  { %3717 = vmatprep.subr.bf16.mxu0 %v5307_v50  ;;  %3749 = vmatprep.subr.bf16.mxu1 %v5311_v54 }
 0x26d   :  { %3719 = vmatpush1.bf16.msra.mxu0 %v5315_v57  ;;  %3751 = vmatpush1.bf16.msra.mxu1 %v5319_v61 }
 0x26e   :  { %3721 = vmatprep.subr.bf16.mxu0 %v5326_v2  ;;  %3753 = vmatprep.subr.bf16.mxu1 %v5330_v5 }
 0x271   :  { %3723 = vmatpush1.bf16.msra.mxu0 %v5334_v8  ;;  %3755 = vmatpush1.bf16.msra.mxu1 %v5338_v13 }
 0x272   :  { %3725 = vmatprep.subr.bf16.mxu0 %v5345_v18  ;;  %3757 = vmatprep.subr.bf16.mxu1 %v5349_v22 }
 0x275   :  { %3727 = vmatpush1.bf16.msra.mxu0 %v5353_v27  ;;  %3759 = vmatpush1.bf16.msra.mxu1 %v5357_v31 }
 0x276   :  { %3729 = vmatprep.subr.bf16.mxu0 %v5364_v36  ;;  %3761 = vmatprep.subr.bf16.mxu1 %v5368_v41 }
 0x279   :  { %3731 = vmatpush1.bf16.msra.mxu0 %v5372_v45  ;;  %3763 = vmatpush1.bf16.msra.mxu1 %v5379_v51 }
 0x27a   :  { %3733 = vmatprep.subr.bf16.mxu0 %v5383_v56  ;;  %3765 = vmatprep.subr.bf16.mxu1 %v5387_v62 }
 0x27d   :  { %3735 = vmatpush1.bf16.msra.mxu0 %v5391_v3  ;;  %3767 = vmatpush1.bf16.msra.mxu1 %v5395_v4 }
 0x27e   :  { %3769 = vmatprep.subr.bf16.mxu0 %v5397_v6  ;;  %3833 = vmatprep.subr.bf16.mxu1 %v5401_v14 }
 0x280   :  { %1271 = vmatmul.mubr.f32.vlgmr.msra.gmra.mrb[4].mxu0 %v1045_v15  ;;  %1342 = vmatmul.mubr.f32.vlgmr.msra.gmra.mrb[4].mxu1 %v1045_v15  ;;  %v6788_v15 = vld [vmem:[#allocation31_spill] sm:$0xff] }
 0x281   :  { %3771 = vmatpush1.bf16.msra.mxu0 %v5407_v26  ;;  %3835 = vmatpush1.bf16.msra.mxu1 %v5411_v28 }
 0x282   :  { %3773 = vmatprep.subr.bf16.mxu0 %v5413_v30  ;;  %3837 = vmatprep.subr.bf16.mxu1 %v5416_v39 }
 0x285   :  { %3775 = vmatpush1.bf16.msra.mxu0 %v5421_v49  ;;  %3839 = vmatpush1.bf16.msra.mxu1 %v5425_v52 }
 0x286   :  { %3777 = vmatprep.subr.bf16.mxu0 %v5427_v53  ;;  %3841 = vmatprep.subr.bf16.mxu1 %v5430_v60 }
 0x289   :  { %3779 = vmatpush1.bf16.msra.mxu0 %v6771_v44  ;;  %3843 = vmatpush1.bf16.msra.mxu1 %v6772_v17 }
 0x28a   :  { %3781 = vmatprep.subr.bf16.mxu0 %v6773_v19  ;;  %3845 = vmatprep.subr.bf16.mxu1 %v6774_v32 }
 0x28d   :  { %3783 = vmatpush1.bf16.msra.mxu0 %v6775_v58  ;;  %3847 = vmatpush1.bf16.msra.mxu1 %v6776_v47  ;;  %v6828_v58 = vld [vmem:[#allocation71_spill] sm:$0xff] }
 0x28e   :  { %3785 = vmatprep.subr.bf16.mxu0 %v6777_v7  ;;  %3849 = vmatprep.subr.bf16.mxu1 %v6778_v40  ;;  %v6789_v40 = vld [vmem:[#allocation32_spill] sm:$0xff]  ;;  %v6827_v7 = vld [vmem:[#allocation70_spill] sm:$0xff] }
 0x291   :  { %3787 = vmatpush1.bf16.msra.mxu0 %v6779_v55  ;;  %3851 = vmatpush1.bf16.msra.mxu1 %v6780_v23  ;;  %v6790_v55 = vld [vmem:[#allocation33_spill] sm:$0xff]  ;;  %v6791_v23 = vld [vmem:[#allocation34_spill] sm:$0xff] }
 0x292   :  { %3789 = vmatprep.subr.bf16.mxu0 %v6781_v12  ;;  %3853 = vmatprep.subr.bf16.mxu1 %v6782_v9  ;;  %v6792_v12 = vld [vmem:[#allocation35_spill] sm:$0xff]  ;;  %v6793_v9 = vld [vmem:[#allocation36_spill] sm:$0xff] }
 0x295   :  { %3791 = vmatpush1.bf16.msra.mxu0 %v6783_v59  ;;  %3855 = vmatpush1.bf16.msra.mxu1 %v6784_v11  ;;  %v6794_v59 = vld [vmem:[#allocation37_spill] sm:$0xff]  ;;  %v6795_v11 = vld [vmem:[#allocation38_spill] sm:$0xff] }
 0x296   :  { %3793 = vmatprep.subr.bf16.mxu0 %v6785_v43  ;;  %3857 = vmatprep.subr.bf16.mxu1 %v6786_v1  ;;  %v6796_v43 = vld [vmem:[#allocation39_spill] sm:$0xff]  ;;  %v6797_v1 = vld [vmem:[#allocation40_spill] sm:$0xff] }
 0x299   :  { %3795 = vmatpush1.bf16.msra.mxu0 %v6787_v0  ;;  %3859 = vmatpush1.bf16.msra.mxu1 %v6788_v15  ;;  %v6798_v0 = vld [vmem:[#allocation41_spill] sm:$0xff]  ;;  %v6799_v15 = vld [vmem:[#allocation42_spill] sm:$0xff] }
 0x29a   :  { %3797 = vmatprep.subr.bf16.mxu0 %v6789_v40  ;;  %3861 = vmatprep.subr.bf16.mxu1 %v6790_v55  ;;  %v6800_v40 = vld [vmem:[#allocation43_spill] sm:$0xff]  ;;  %v6801_v55 = vld [vmem:[#allocation44_spill] sm:$0xff] }
 0x29d   :  { %3799 = vmatpush1.bf16.msra.mxu0 %v6791_v23  ;;  %3863 = vmatpush1.bf16.msra.mxu1 %v6792_v12  ;;  %v6802_v23 = vld [vmem:[#allocation45_spill] sm:$0xff]  ;;  %v6803_v12 = vld [vmem:[#allocation46_spill] sm:$0xff] }
 0x29e   :  { %3801 = vmatprep.subr.bf16.mxu0 %v6793_v9  ;;  %3865 = vmatprep.subr.bf16.mxu1 %v6794_v59  ;;  %v6804_v9 = vld [vmem:[#allocation47_spill] sm:$0xff]  ;;  %v6805_v59 = vld [vmem:[#allocation48_spill] sm:$0xff] }
 0x2a1   :  { %3803 = vmatpush1.bf16.msra.mxu0 %v6795_v11  ;;  %3867 = vmatpush1.bf16.msra.mxu1 %v6796_v43  ;;  %v6806_v11 = vld [vmem:[#allocation49_spill] sm:$0xff]  ;;  %v6807_v43 = vld [vmem:[#allocation50_spill] sm:$0xff] }
 0x2a2   :  { %3805 = vmatprep.subr.bf16.mxu0 %v6797_v1  ;;  %3869 = vmatprep.subr.bf16.mxu1 %v6798_v0  ;;  %v6808_v1 = vld [vmem:[#allocation51_spill] sm:$0xff]  ;;  %v6809_v0 = vld [vmem:[#allocation52_spill] sm:$0xff] }
 0x2a5   :  { %3807 = vmatpush1.bf16.msra.mxu0 %v6799_v15  ;;  %3871 = vmatpush1.bf16.msra.mxu1 %v6800_v40  ;;  %v6810_v15 = vld [vmem:[#allocation53_spill] sm:$0xff]  ;;  %v6811_v40 = vld [vmem:[#allocation54_spill] sm:$0xff] }
 0x2a6   :  { %3809 = vmatprep.subr.bf16.mxu0 %v6801_v55  ;;  %3873 = vmatprep.subr.bf16.mxu1 %v6802_v23  ;;  %v6812_v55 = vld [vmem:[#allocation55_spill] sm:$0xff]  ;;  %v6813_v23 = vld [vmem:[#allocation56_spill] sm:$0xff] }
 0x2a9   :  { %3811 = vmatpush1.bf16.msra.mxu0 %v6803_v12  ;;  %3875 = vmatpush1.bf16.msra.mxu1 %v6804_v9  ;;  %v6814_v12 = vld [vmem:[#allocation57_spill] sm:$0xff]  ;;  %v6815_v9 = vld [vmem:[#allocation58_spill] sm:$0xff] }
 0x2aa   :  { %3813 = vmatprep.subr.bf16.mxu0 %v6805_v59  ;;  %3877 = vmatprep.subr.bf16.mxu1 %v6806_v11  ;;  %v6816_v59 = vld [vmem:[#allocation59_spill] sm:$0xff]  ;;  %v6817_v11 = vld [vmem:[#allocation60_spill] sm:$0xff] }
 0x2ad   :  { %3815 = vmatpush1.bf16.msra.mxu0 %v6807_v43  ;;  %3879 = vmatpush1.bf16.msra.mxu1 %v6808_v1  ;;  %v6818_v43 = vld [vmem:[#allocation61_spill] sm:$0xff]  ;;  %v6819_v1 = vld [vmem:[#allocation62_spill] sm:$0xff] }
 0x2ae   :  { %3817 = vmatprep.subr.bf16.mxu0 %v6809_v0  ;;  %3881 = vmatprep.subr.bf16.mxu1 %v6810_v15  ;;  %v6820_v0 = vld [vmem:[#allocation63_spill] sm:$0xff]  ;;  %v6821_v15 = vld [vmem:[#allocation64_spill] sm:$0xff] }
 0x2b1   :  { %3819 = vmatpush1.bf16.msra.mxu0 %v6811_v40  ;;  %3883 = vmatpush1.bf16.msra.mxu1 %v6812_v55  ;;  %v6822_v40 = vld [vmem:[#allocation65_spill] sm:$0xff]  ;;  %v6823_v55 = vld [vmem:[#allocation66_spill] sm:$0xff] }
 0x2b2   :  { %3821 = vmatprep.subr.bf16.mxu0 %v6813_v23  ;;  %3885 = vmatprep.subr.bf16.mxu1 %v6814_v12  ;;  %v6824_v23 = vld [vmem:[#allocation67_spill] sm:$0xff]  ;;  %v6825_v12 = vld [vmem:[#allocation9_spill] sm:$0xff] }
 0x2b5   :  { %3823 = vmatpush1.bf16.msra.mxu0 %v6815_v9  ;;  %3887 = vmatpush1.bf16.msra.mxu1 %v6816_v59  ;;  %v6826_v9 = vld [vmem:[#allocation10_spill] sm:$0xff] }
 0x2b6   :  { %3825 = vmatprep.subr.bf16.mxu0 %v6817_v11  ;;  %3889 = vmatprep.subr.bf16.mxu1 %v6818_v43 }
 0x2b9   :  { %3827 = vmatpush1.bf16.msra.mxu0 %v6819_v1  ;;  %3891 = vmatpush1.bf16.msra.mxu1 %v6820_v0 }
 0x2ba   :  { %3829 = vmatprep.subr.bf16.mxu0 %v6821_v15  ;;  %3893 = vmatprep.subr.bf16.mxu1 %v6822_v40  ;;  %v6829_v40 = vld [vmem:[#allocation72_spill] sm:$0xff] }
 0x2bd   :  { %3831 = vmatpush1.bf16.msra.mxu0 %v6823_v55  ;;  %3895 = vmatpush1.bf16.msra.mxu1 %v6824_v23  ;;  %v6830_v23 = vld [vmem:[#allocation73_spill] sm:$0xff] }
 0x2be   :  { %3897 = vmatprep.subr.bf16.mxu0 %v6825_v12  ;;  %3929 = vmatprep.subr.bf16.mxu1 %v6826_v9 }
 0x333   :  { %v1112_v59 = vpop.f32.mrb[18].mxu0  ;;  %v1183_v11 = vpop.f32.mrb[18].mxu1 }
 0x334   :  { %v1113_v43 = vadd.f32 %v1112_v59, %v6827_v7  ;;  %v1114_v47 = vpop.f32.mrb[19].mxu0  ;;  %v1185_v1 = vpop.f32.mrb[19].mxu1  ;;  %v1184_v55 = vadd.f32 %v1183_v11, %v6830_v23 }
 0x335   :  { %v1115_v0 = vadd.f32 %v1114_v47, %v6828_v58  ;;  %v1186_v19 = vadd.f32 %v1185_v1, %v6829_v40 }
 0x336   :  { %v1188_v32 = vmul.f32 0.5, %v1113_v43  ;;  %v1190_v12 = vmul.f32 0.5, %v1184_v55  ;;  %v6831_v55 = vld [vmem:[#allocation68_spill] sm:$0xff] }
 0x337   :  { %v1189_v15 = vmul.f32 0.5, %v1115_v0 }
 0x338   :  { %4981 = vtanh.f32 %v1188_v32 }
 0x339   :  { %4983 = vtanh.f32 %v1189_v15 }
 0x33a   :  { %4985 = vtanh.f32 %v1186_v19 }
 0x33b   :  { %4987 = vtanh.f32 %v1190_v12 }
 0x342   :  { %v4982_v17 = vpop.eup %4981 }
 0x343   :  { %v1194_v9 = vmul.f32 0.5, %v4982_v17  ;;  %v4984_v44 = vpop.eup %4983 }
 0x344   :  { %v1195_v59 = vmul.f32 0.5, %v4984_v44  ;;  %v4986_v7 = vpop.eup %4985 }
 0x345   :  { %v1197_v60 = vadd.f32 0.5, %v1194_v9  ;;  %v4988_v32 = vpop.eup %4987 }
 0x346   :  { %v1198_v53 = vadd.f32 0.5, %v1195_v59  ;;  %v1196_v19 = vmul.f32 0.5, %v4988_v32 }
 0x347   :  { %v1202_v52 = vmul.f32 %v4986_v7, %v1197_v60 }
 0x348   :  { %v1201_v47 = vmul.f32 %v1198_v53, %v5755_v48  ;;  %v1199_v44 = vadd.f32 0.5, %v1196_v19 }
 0x34a   :  { %v5869_v43 = vadd.f32 %v1202_v52, %v1201_v47 }
 0x34c   :  { %4989 = vtanh.f32 %v5869_v43 }
 0x353   :  { %v1272_v1 = vpop.f32.mrb[4].mxu0  ;;  %v1343_v11 = vpop.f32.mrb[4].mxu1 }
 0x354   :  { %v4884_v0 = vadd.f32 %v1272_v1, %v6831_v55  ;;  %v1274_v17 = vpop.f32.mrb[5].mxu0  ;;  %v1345_v15 = vpop.f32.mrb[5].mxu1  ;;  %v4900_v48 = vadd.f32 %v1343_v11, %v5628_v34 }
 0x355   :  { %v4885_v12 = vadd.f32 %v1274_v17, %v6770_v10  ;;  %v4901_v52 = vadd.f32 %v1345_v15, %v5621_v21 }
 0x356   :  { %v1352_v9 = vmul.f32 0.5, %v4884_v0  ;;  %v4990_v59 = vpop.eup %4989  ;;  %v1354_v7 = vmul.f32 0.5, %v4900_v48  ;;  %v6835_v48 = vld [vmem:[#allocation14_spill] sm:$0xff] }
 0x357   :  { %v1353_v60 = vmul.f32 0.5, %v4885_v12  ;;  %v1205_v53 = vmul.f32 %v4990_v59, %v1199_v44 }
 0x358   :  { %4991 = vtanh.f32 %v1352_v9 }
 0x359   :  { %4993 = vtanh.f32 %v1353_v60  ;;  %1434 = vmatprep.mubr.f32.mxu0 %v1205_v53  ;;  %1505 = vmatprep.mubr.f32.mxu1 %v1205_v53  ;;  %v6834_v53 = vld [vmem:[#allocation13_spill] sm:$0xff] }
 0x35a   :  { %4995 = vtanh.f32 %v4901_v52 }
 0x35b   :  { %4997 = vtanh.f32 %v1354_v7  ;;  %v6836_v7 = vld [vmem:[#allocation15_spill] sm:$0xff] }
 0x362   :  { %v4992_v47 = vpop.eup %4991 }
 0x363   :  { %v1358_v32 = vmul.f32 0.5, %v4992_v47  ;;  %v4994_v1 = vpop.eup %4993  ;;  %v6837_v47 = vld [vmem:[#allocation16_spill] sm:$0xff] }
 0x364   :  { %v1359_v19 = vmul.f32 0.5, %v4994_v1  ;;  %v4996_v0 = vpop.eup %4995  ;;  %v6839_v1 = vld [vmem:[#allocation18_spill] sm:$0xff] }
 0x365   :  { %v1361_v55 = vadd.f32 0.5, %v1358_v32  ;;  %v4998_v44 = vpop.eup %4997  ;;  %v6838_v32 = vld [vmem:[#allocation17_spill] sm:$0xff] }
 0x366   :  { %v1362_v17 = vadd.f32 0.5, %v1359_v19  ;;  %v1360_v59 = vmul.f32 0.5, %v4998_v44  ;;  %v6840_v19 = vld [vmem:[#allocation19_spill] sm:$0xff]  ;;  %v6845_v44 = vld [vmem:[#allocation24_spill] sm:$0xff] }
 0x367   :  { %v1366_v12 = vmul.f32 %v4996_v0, %v1361_v55  ;;  %v6833_v55 = vld [vmem:[#allocation12_spill] sm:$0xff] }
 0x368   :  { %v1365_v9 = vmul.f32 %v1362_v17, %v5763_v63  ;;  %v1363_v60 = vadd.f32 0.5, %v1360_v59  ;;  %v6832_v63 = vld [vmem:[#allocation11_spill] sm:$0xff]  ;;  %v6841_v0 = vld [vmem:[#allocation20_spill] sm:$0xff]  ;;  %v6842_v17 = vld [vmem:[#allocation21_spill] sm:$0xff] }
 0x369   :  { %v6846_v59 = vld [vmem:[#allocation25_spill] sm:$0xff] }
 0x36a   :  { %v5877_v15 = vadd.f32 %v1366_v12, %v1365_v9  ;;  %v6843_v12 = vld [vmem:[#allocation22_spill] sm:$0xff]  ;;  %v6844_v9 = vld [vmem:[#allocation23_spill] sm:$0xff] }
 0x36c   :  { %4999 = vtanh.f32 %v5877_v15 }
 0x376   :  { %v5000_v11 = vpop.eup %4999 }
 0x377   :  { %v1369_v52 = vmul.f32 %v5000_v11, %v1363_v60  ;;  %v6847_v60 = vld [vmem:[#allocation26_spill] sm:$0xff]  ;;  %v6848_v11 = vld [vmem:[#allocation27_spill] sm:$0xff] }
 0x379   :  { %1435 = vmatmul.mubr.f32.vlgmr.msra.gmra.mrb[20].mxu0 %v1369_v52  ;;  %1506 = vmatmul.mubr.f32.vlgmr.msra.gmra.mrb[20].mxu1 %v1369_v52 }
 0x37a   :  { %3899 = vmatpush1.bf16.msra.mxu0 %v5261_v16  ;;  %3931 = vmatpush1.bf16.msra.mxu1 %v5270_v20 }
 0x37b   :  { %3901 = vmatprep.subr.bf16.mxu0 %v5273_v24  ;;  %3933 = vmatprep.subr.bf16.mxu1 %v5275_v25 }
 0x37c   :  { %1594 = vmatprep.mubr.f32.mxu0 %v6708_v35  ;;  %1665 = vmatprep.mubr.f32.mxu1 %v6708_v35 }
 0x37e   :  { %3903 = vmatpush1.bf16.msra.mxu0 %v5279_v29  ;;  %3935 = vmatpush1.bf16.msra.mxu1 %v5286_v33 }
 0x37f   :  { %3905 = vmatprep.subr.bf16.mxu0 %v5290_v37  ;;  %3937 = vmatprep.subr.bf16.mxu1 %v5292_v38 }
 0x382   :  { %3907 = vmatpush1.bf16.msra.mxu0 %v5296_v42  ;;  %3939 = vmatpush1.bf16.msra.mxu1 %v5303_v46 }
 0x383   :  { %3909 = vmatprep.subr.bf16.mxu0 %v5307_v50  ;;  %3941 = vmatprep.subr.bf16.mxu1 %v5311_v54 }
 0x386   :  { %3911 = vmatpush1.bf16.msra.mxu0 %v5315_v57  ;;  %3943 = vmatpush1.bf16.msra.mxu1 %v5319_v61 }
 0x387   :  { %3913 = vmatprep.subr.bf16.mxu0 %v5326_v2  ;;  %3945 = vmatprep.subr.bf16.mxu1 %v5330_v5 }
 0x38a   :  { %3915 = vmatpush1.bf16.msra.mxu0 %v5334_v8  ;;  %3947 = vmatpush1.bf16.msra.mxu1 %v5338_v13 }
 0x38b   :  { %3917 = vmatprep.subr.bf16.mxu0 %v5345_v18  ;;  %3949 = vmatprep.subr.bf16.mxu1 %v5349_v22 }
 0x38e   :  { %3919 = vmatpush1.bf16.msra.mxu0 %v5353_v27  ;;  %3951 = vmatpush1.bf16.msra.mxu1 %v5357_v31 }
 0x38f   :  { %3921 = vmatprep.subr.bf16.mxu0 %v5364_v36  ;;  %3953 = vmatprep.subr.bf16.mxu1 %v5368_v41 }
 0x392   :  { %3923 = vmatpush1.bf16.msra.mxu0 %v5372_v45  ;;  %3955 = vmatpush1.bf16.msra.mxu1 %v5379_v51 }
 0x393   :  { %3925 = vmatprep.subr.bf16.mxu0 %v5383_v56  ;;  %3957 = vmatprep.subr.bf16.mxu1 %v5387_v62 }
 0x396   :  { %3927 = vmatpush1.bf16.msra.mxu0 %v5391_v3  ;;  %3959 = vmatpush1.bf16.msra.mxu1 %v5395_v4 }
 0x397   :  { %3961 = vmatprep.subr.bf16.mxu0 %v5397_v6  ;;  %4025 = vmatprep.subr.bf16.mxu1 %v5401_v14 }
 0x399   :  { %1595 = vmatmul.mubr.f32.vlgmr.msra.gmra.mrb[6].mxu0 %v1369_v52  ;;  %1666 = vmatmul.mubr.f32.vlgmr.msra.gmra.mrb[6].mxu1 %v1369_v52  ;;  %v6849_v52 = vld [vmem:[#allocation28_spill] sm:$0xff] }
 0x39a   :  { %3963 = vmatpush1.bf16.msra.mxu0 %v5407_v26  ;;  %4027 = vmatpush1.bf16.msra.mxu1 %v5411_v28 }
 0x39b   :  { %3965 = vmatprep.subr.bf16.mxu0 %v5413_v30  ;;  %4029 = vmatprep.subr.bf16.mxu1 %v5416_v39 }
 0x39e   :  { %3967 = vmatpush1.bf16.msra.mxu0 %v5421_v49  ;;  %4031 = vmatpush1.bf16.msra.mxu1 %v6832_v63 }
 0x39f   :  { %3969 = vmatprep.subr.bf16.mxu0 %v6833_v55  ;;  %4033 = vmatprep.subr.bf16.mxu1 %v6834_v53 }
 0x3a2   :  { %3971 = vmatpush1.bf16.msra.mxu0 %v6835_v48  ;;  %4035 = vmatpush1.bf16.msra.mxu1 %v6836_v7 }
 0x3a3   :  { %3973 = vmatprep.subr.bf16.mxu0 %v6837_v47  ;;  %4037 = vmatprep.subr.bf16.mxu1 %v6838_v32  ;;  %v6891_v32 = vld [vmem:[#allocation70_spill] sm:$0xff] }
 0x3a6   :  { %3975 = vmatpush1.bf16.msra.mxu0 %v6839_v1  ;;  %4039 = vmatpush1.bf16.msra.mxu1 %v6840_v19  ;;  %v6850_v1 = vld [vmem:[#allocation29_spill] sm:$0xff]  ;;  %v6851_v19 = vld [vmem:[#allocation30_spill] sm:$0xff] }
 0x3a7   :  { %3977 = vmatprep.subr.bf16.mxu0 %v6841_v0  ;;  %4041 = vmatprep.subr.bf16.mxu1 %v6842_v17  ;;  %v6852_v0 = vld [vmem:[#allocation31_spill] sm:$0xff]  ;;  %v6853_v17 = vld [vmem:[#allocation32_spill] sm:$0xff] }
 0x3aa   :  { %3979 = vmatpush1.bf16.msra.mxu0 %v6843_v12  ;;  %4043 = vmatpush1.bf16.msra.mxu1 %v6844_v9  ;;  %v6854_v12 = vld [vmem:[#allocation33_spill] sm:$0xff]  ;;  %v6855_v9 = vld [vmem:[#allocation34_spill] sm:$0xff] }
 0x3ab   :  { %3981 = vmatprep.subr.bf16.mxu0 %v6845_v44  ;;  %4045 = vmatprep.subr.bf16.mxu1 %v6846_v59  ;;  %v6856_v44 = vld [vmem:[#allocation35_spill] sm:$0xff]  ;;  %v6857_v59 = vld [vmem:[#allocation36_spill] sm:$0xff] }
 0x3ae   :  { %3983 = vmatpush1.bf16.msra.mxu0 %v6847_v60  ;;  %4047 = vmatpush1.bf16.msra.mxu1 %v6848_v11  ;;  %v6858_v60 = vld [vmem:[#allocation37_spill] sm:$0xff]  ;;  %v6859_v11 = vld [vmem:[#allocation38_spill] sm:$0xff] }
 0x3af   :  { %3985 = vmatprep.subr.bf16.mxu0 %v6849_v52  ;;  %4049 = vmatprep.subr.bf16.mxu1 %v6850_v1  ;;  %v6860_v52 = vld [vmem:[#allocation39_spill] sm:$0xff]  ;;  %v6861_v1 = vld [vmem:[#allocation40_spill] sm:$0xff] }
 0x3b2   :  { %3987 = vmatpush1.bf16.msra.mxu0 %v6851_v19  ;;  %4051 = vmatpush1.bf16.msra.mxu1 %v6852_v0  ;;  %v6862_v19 = vld [vmem:[#allocation41_spill] sm:$0xff]  ;;  %v6863_v0 = vld [vmem:[#allocation42_spill] sm:$0xff] }
 0x3b3   :  { %3989 = vmatprep.subr.bf16.mxu0 %v6853_v17  ;;  %4053 = vmatprep.subr.bf16.mxu1 %v6854_v12  ;;  %v6864_v17 = vld [vmem:[#allocation43_spill] sm:$0xff]  ;;  %v6865_v12 = vld [vmem:[#allocation44_spill] sm:$0xff] }
 0x3b6   :  { %3991 = vmatpush1.bf16.msra.mxu0 %v6855_v9  ;;  %4055 = vmatpush1.bf16.msra.mxu1 %v6856_v44  ;;  %v6866_v9 = vld [vmem:[#allocation45_spill] sm:$0xff]  ;;  %v6867_v44 = vld [vmem:[#allocation46_spill] sm:$0xff] }
 0x3b7   :  { %3993 = vmatprep.subr.bf16.mxu0 %v6857_v59  ;;  %4057 = vmatprep.subr.bf16.mxu1 %v6858_v60  ;;  %v6868_v59 = vld [vmem:[#allocation47_spill] sm:$0xff]  ;;  %v6869_v60 = vld [vmem:[#allocation48_spill] sm:$0xff] }
 0x3ba   :  { %3995 = vmatpush1.bf16.msra.mxu0 %v6859_v11  ;;  %4059 = vmatpush1.bf16.msra.mxu1 %v6860_v52  ;;  %v6870_v11 = vld [vmem:[#allocation49_spill] sm:$0xff]  ;;  %v6871_v52 = vld [vmem:[#allocation50_spill] sm:$0xff] }
 0x3bb   :  { %3997 = vmatprep.subr.bf16.mxu0 %v6861_v1  ;;  %4061 = vmatprep.subr.bf16.mxu1 %v6862_v19  ;;  %v6872_v1 = vld [vmem:[#allocation51_spill] sm:$0xff]  ;;  %v6873_v19 = vld [vmem:[#allocation52_spill] sm:$0xff] }
 0x3be   :  { %3999 = vmatpush1.bf16.msra.mxu0 %v6863_v0  ;;  %4063 = vmatpush1.bf16.msra.mxu1 %v6864_v17  ;;  %v6874_v0 = vld [vmem:[#allocation53_spill] sm:$0xff]  ;;  %v6875_v17 = vld [vmem:[#allocation54_spill] sm:$0xff] }
 0x3bf   :  { %4001 = vmatprep.subr.bf16.mxu0 %v6865_v12  ;;  %4065 = vmatprep.subr.bf16.mxu1 %v6866_v9  ;;  %v6876_v12 = vld [vmem:[#allocation55_spill] sm:$0xff]  ;;  %v6877_v9 = vld [vmem:[#allocation56_spill] sm:$0xff] }
 0x3c2   :  { %4003 = vmatpush1.bf16.msra.mxu0 %v6867_v44  ;;  %4067 = vmatpush1.bf16.msra.mxu1 %v6868_v59  ;;  %v6878_v44 = vld [vmem:[#allocation57_spill] sm:$0xff]  ;;  %v6879_v59 = vld [vmem:[#allocation58_spill] sm:$0xff] }
 0x3c3   :  { %4005 = vmatprep.subr.bf16.mxu0 %v6869_v60  ;;  %4069 = vmatprep.subr.bf16.mxu1 %v6870_v11  ;;  %v6880_v60 = vld [vmem:[#allocation59_spill] sm:$0xff]  ;;  %v6881_v11 = vld [vmem:[#allocation60_spill] sm:$0xff] }
 0x3c6   :  { %4007 = vmatpush1.bf16.msra.mxu0 %v6871_v52  ;;  %4071 = vmatpush1.bf16.msra.mxu1 %v6872_v1  ;;  %v6882_v52 = vld [vmem:[#allocation61_spill] sm:$0xff]  ;;  %v6883_v1 = vld [vmem:[#allocation62_spill] sm:$0xff] }
 0x3c7   :  { %4009 = vmatprep.subr.bf16.mxu0 %v6873_v19  ;;  %4073 = vmatprep.subr.bf16.mxu1 %v6874_v0  ;;  %v6884_v19 = vld [vmem:[#allocation63_spill] sm:$0xff]  ;;  %v6885_v0 = vld [vmem:[#allocation64_spill] sm:$0xff] }
 0x3ca   :  { %4011 = vmatpush1.bf16.msra.mxu0 %v6875_v17  ;;  %4075 = vmatpush1.bf16.msra.mxu1 %v6876_v12  ;;  %v6886_v17 = vld [vmem:[#allocation65_spill] sm:$0xff]  ;;  %v6887_v12 = vld [vmem:[#allocation66_spill] sm:$0xff] }
 0x3cb   :  { %4013 = vmatprep.subr.bf16.mxu0 %v6877_v9  ;;  %4077 = vmatprep.subr.bf16.mxu1 %v6878_v44  ;;  %v6888_v9 = vld [vmem:[#allocation67_spill] sm:$0xff]  ;;  %v6889_v44 = vld [vmem:[#allocation9_spill] sm:$0xff] }
 0x3ce   :  { %4015 = vmatpush1.bf16.msra.mxu0 %v6879_v59  ;;  %4079 = vmatpush1.bf16.msra.mxu1 %v6880_v60  ;;  %v6890_v59 = vld [vmem:[#allocation10_spill] sm:$0xff] }
 0x3cf   :  { %4017 = vmatprep.subr.bf16.mxu0 %v6881_v11  ;;  %4081 = vmatprep.subr.bf16.mxu1 %v6882_v52 }
 0x3d2   :  { %4019 = vmatpush1.bf16.msra.mxu0 %v6883_v1  ;;  %4083 = vmatpush1.bf16.msra.mxu1 %v6884_v19 }
 0x3d3   :  { %4021 = vmatprep.subr.bf16.mxu0 %v6885_v0  ;;  %4085 = vmatprep.subr.bf16.mxu1 %v6886_v17 }
 0x3d6   :  { %4023 = vmatpush1.bf16.msra.mxu0 %v6887_v12  ;;  %4087 = vmatpush1.bf16.msra.mxu1 %v6888_v9 }
 0x3d7   :  { %4089 = vmatprep.subr.bf16.mxu0 %v6889_v44  ;;  %4121 = vmatprep.subr.bf16.mxu1 %v6890_v59 }
 0x44c   :  { %v1436_v60 = vpop.f32.mrb[20].mxu0  ;;  %v1507_v11 = vpop.f32.mrb[20].mxu1 }
 0x44d   :  { %v1437_v52 = vadd.f32 %v1436_v60, %v6891_v32  ;;  %v1438_v47 = vpop.f32.mrb[21].mxu0  ;;  %v1509_v1 = vpop.f32.mrb[21].mxu1  ;;  %v1508_v9 = vadd.f32 %v1507_v11, %v6830_v23 }
 0x44e   :  { %v1439_v19 = vadd.f32 %v1438_v47, %v6828_v58  ;;  %v1510_v17 = vadd.f32 %v1509_v1, %v6829_v40 }
 0x44f   :  { %v1512_v7 = vmul.f32 0.5, %v1437_v52  ;;  %v1514_v44 = vmul.f32 0.5, %v1508_v9  ;;  %v6892_v9 = vld [vmem:[#allocation68_spill] sm:$0xff] }
 0x450   :  { %v1513_v0 = vmul.f32 0.5, %v1439_v19 }
 0x451   :  { %5001 = vtanh.f32 %v1512_v7 }
 0x452   :  { %5003 = vtanh.f32 %v1513_v0 }
 0x453   :  { %5005 = vtanh.f32 %v1510_v17 }
 0x454   :  { %5007 = vtanh.f32 %v1514_v44 }
 0x45b   :  { %v5002_v12 = vpop.eup %5001 }
 0x45c   :  { %v1518_v59 = vmul.f32 0.5, %v5002_v12  ;;  %v5004_v48 = vpop.eup %5003 }
 0x45d   :  { %v1519_v60 = vmul.f32 0.5, %v5004_v48  ;;  %v5006_v32 = vpop.eup %5005 }
 0x45e   :  { %v1521_v53 = vadd.f32 0.5, %v1518_v59  ;;  %v5008_v7 = vpop.eup %5007 }
 0x45f   :  { %v1522_v55 = vadd.f32 0.5, %v1519_v60  ;;  %v1520_v1 = vmul.f32 0.5, %v5008_v7 }
 0x460   :  { %v1526_v63 = vmul.f32 %v5006_v32, %v1521_v53 }
 0x461   :  { %v1525_v47 = vmul.f32 %v1522_v55, %v5869_v43  ;;  %v1523_v48 = vadd.f32 0.5, %v1520_v1 }
 0x463   :  { %v5983_v19 = vadd.f32 %v1526_v63, %v1525_v47 }
 0x465   :  { %5009 = vtanh.f32 %v5983_v19 }
 0x46c   :  { %v1596_v0 = vpop.f32.mrb[6].mxu0  ;;  %v1667_v17 = vpop.f32.mrb[6].mxu1 }
 0x46d   :  { %v4886_v11 = vadd.f32 %v1596_v0, %v6892_v9  ;;  %v1598_v12 = vpop.f32.mrb[7].mxu0  ;;  %v1669_v52 = vpop.f32.mrb[7].mxu1  ;;  %v4902_v55 = vadd.f32 %v1667_v17, %v5628_v34 }
 0x46e   :  { %v4887_v44 = vadd.f32 %v1598_v12, %v6770_v10  ;;  %v4903_v43 = vadd.f32 %v1669_v52, %v5621_v21 }
 0x46f   :  { %v1676_v59 = vmul.f32 0.5, %v4886_v11  ;;  %v5010_v60 = vpop.eup %5009  ;;  %v1678_v32 = vmul.f32 0.5, %v4902_v55  ;;  %v6896_v55 = vld [vmem:[#allocation14_spill] sm:$0xff] }
 0x470   :  { %v1677_v53 = vmul.f32 0.5, %v4887_v44  ;;  %v1529_v63 = vmul.f32 %v5010_v60, %v1523_v48 }
 0x471   :  { %5011 = vtanh.f32 %v1676_v59 }
 0x472   :  { %5013 = vtanh.f32 %v1677_v53  ;;  %1758 = vmatprep.mubr.f32.mxu0 %v1529_v63  ;;  %1829 = vmatprep.mubr.f32.mxu1 %v1529_v63  ;;  %v6895_v63 = vld [vmem:[#allocation13_spill] sm:$0xff] }
 0x473   :  { %5015 = vtanh.f32 %v4903_v43 }
 0x474   :  { %5017 = vtanh.f32 %v1678_v32  ;;  %v6897_v32 = vld [vmem:[#allocation15_spill] sm:$0xff] }
 0x47b   :  { %v5012_v47 = vpop.eup %5011 }
 0x47c   :  { %v1682_v7 = vmul.f32 0.5, %v5012_v47  ;;  %v5014_v0 = vpop.eup %5013  ;;  %v6898_v47 = vld [vmem:[#allocation16_spill] sm:$0xff] }
 0x47d   :  { %v1683_v1 = vmul.f32 0.5, %v5014_v0  ;;  %v5016_v11 = vpop.eup %5015  ;;  %v6900_v0 = vld [vmem:[#allocation18_spill] sm:$0xff] }
 0x47e   :  { %v1685_v9 = vadd.f32 0.5, %v1682_v7  ;;  %v5018_v48 = vpop.eup %5017  ;;  %v6899_v7 = vld [vmem:[#allocation17_spill] sm:$0xff] }
 0x47f   :  { %v1686_v12 = vadd.f32 0.5, %v1683_v1  ;;  %v1684_v60 = vmul.f32 0.5, %v5018_v48  ;;  %v6901_v1 = vld [vmem:[#allocation19_spill] sm:$0xff]  ;;  %v6906_v48 = vld [vmem:[#allocation24_spill] sm:$0xff] }
 0x480   :  { %v1690_v44 = vmul.f32 %v5016_v11, %v1685_v9  ;;  %v6894_v9 = vld [vmem:[#allocation12_spill] sm:$0xff] }
 0x481   :  { %v1689_v59 = vmul.f32 %v1686_v12, %v5877_v15  ;;  %v1687_v53 = vadd.f32 0.5, %v1684_v60  ;;  %v6893_v15 = vld [vmem:[#allocation11_spill] sm:$0xff]  ;;  %v6902_v11 = vld [vmem:[#allocation20_spill] sm:$0xff]  ;;  %v6903_v12 = vld [vmem:[#allocation21_spill] sm:$0xff] }
 0x482   :  { %v6907_v60 = vld [vmem:[#allocation25_spill] sm:$0xff] }
 0x483   :  { %v5991_v52 = vadd.f32 %v1690_v44, %v1689_v59  ;;  %v6904_v44 = vld [vmem:[#allocation22_spill] sm:$0xff]  ;;  %v6905_v59 = vld [vmem:[#allocation23_spill] sm:$0xff] }
 0x485   :  { %5019 = vtanh.f32 %v5991_v52 }
 0x48f   :  { %v5020_v17 = vpop.eup %5019 }
 0x490   :  { %v1693_v43 = vmul.f32 %v5020_v17, %v1687_v53  ;;  %v6908_v53 = vld [vmem:[#allocation26_spill] sm:$0xff]  ;;  %v6909_v17 = vld [vmem:[#allocation27_spill] sm:$0xff] }
 0x492   :  { %1759 = vmatmul.mubr.f32.vlgmr.msra.gmra.mrb[22].mxu0 %v1693_v43  ;;  %1830 = vmatmul.mubr.f32.vlgmr.msra.gmra.mrb[22].mxu1 %v1693_v43 }
 0x493   :  { %4091 = vmatpush1.bf16.msra.mxu0 %v5261_v16  ;;  %4123 = vmatpush1.bf16.msra.mxu1 %v5270_v20 }
 0x494   :  { %4093 = vmatprep.subr.bf16.mxu0 %v5273_v24  ;;  %4125 = vmatprep.subr.bf16.mxu1 %v5275_v25 }
 0x495   :  { %1918 = vmatprep.mubr.f32.mxu0 %v6708_v35  ;;  %1989 = vmatprep.mubr.f32.mxu1 %v6708_v35 }
 0x497   :  { %4095 = vmatpush1.bf16.msra.mxu0 %v5279_v29  ;;  %4127 = vmatpush1.bf16.msra.mxu1 %v5286_v33 }
 0x498   :  { %4097 = vmatprep.subr.bf16.mxu0 %v5290_v37  ;;  %4129 = vmatprep.subr.bf16.mxu1 %v5292_v38 }
 0x49b   :  { %4099 = vmatpush1.bf16.msra.mxu0 %v5296_v42  ;;  %4131 = vmatpush1.bf16.msra.mxu1 %v5303_v46 }
 0x49c   :  { %4101 = vmatprep.subr.bf16.mxu0 %v5307_v50  ;;  %4133 = vmatprep.subr.bf16.mxu1 %v5311_v54 }
 0x49f   :  { %4103 = vmatpush1.bf16.msra.mxu0 %v5315_v57  ;;  %4135 = vmatpush1.bf16.msra.mxu1 %v5319_v61 }
 0x4a0   :  { %4105 = vmatprep.subr.bf16.mxu0 %v5326_v2  ;;  %4137 = vmatprep.subr.bf16.mxu1 %v5330_v5 }
 0x4a3   :  { %4107 = vmatpush1.bf16.msra.mxu0 %v5334_v8  ;;  %4139 = vmatpush1.bf16.msra.mxu1 %v5338_v13 }
 0x4a4   :  { %4109 = vmatprep.subr.bf16.mxu0 %v5345_v18  ;;  %4141 = vmatprep.subr.bf16.mxu1 %v5349_v22 }
 0x4a7   :  { %4111 = vmatpush1.bf16.msra.mxu0 %v5353_v27  ;;  %4143 = vmatpush1.bf16.msra.mxu1 %v5357_v31 }
 0x4a8   :  { %4113 = vmatprep.subr.bf16.mxu0 %v5364_v36  ;;  %4145 = vmatprep.subr.bf16.mxu1 %v5368_v41 }
 0x4ab   :  { %4115 = vmatpush1.bf16.msra.mxu0 %v5372_v45  ;;  %4147 = vmatpush1.bf16.msra.mxu1 %v5379_v51 }
 0x4ac   :  { %4117 = vmatprep.subr.bf16.mxu0 %v5383_v56  ;;  %4149 = vmatprep.subr.bf16.mxu1 %v5387_v62 }
 0x4af   :  { %4119 = vmatpush1.bf16.msra.mxu0 %v5391_v3  ;;  %4151 = vmatpush1.bf16.msra.mxu1 %v5395_v4 }
 0x4b0   :  { %4153 = vmatprep.subr.bf16.mxu0 %v5397_v6  ;;  %4217 = vmatprep.subr.bf16.mxu1 %v5401_v14 }
 0x4b2   :  { %1919 = vmatmul.mubr.f32.vlgmr.msra.gmra.mrb[8].mxu0 %v1693_v43  ;;  %1990 = vmatmul.mubr.f32.vlgmr.msra.gmra.mrb[8].mxu1 %v1693_v43  ;;  %v6910_v43 = vld [vmem:[#allocation28_spill] sm:$0xff] }
 0x4b3   :  { %4155 = vmatpush1.bf16.msra.mxu0 %v5407_v26  ;;  %4219 = vmatpush1.bf16.msra.mxu1 %v5411_v28 }
 0x4b4   :  { %4157 = vmatprep.subr.bf16.mxu0 %v5413_v30  ;;  %4221 = vmatprep.subr.bf16.mxu1 %v5416_v39 }
 0x4b7   :  { %4159 = vmatpush1.bf16.msra.mxu0 %v5421_v49  ;;  %4223 = vmatpush1.bf16.msra.mxu1 %v6893_v15 }
 0x4b8   :  { %4161 = vmatprep.subr.bf16.mxu0 %v6894_v9  ;;  %4225 = vmatprep.subr.bf16.mxu1 %v6895_v63 }
 0x4bb   :  { %4163 = vmatpush1.bf16.msra.mxu0 %v6896_v55  ;;  %4227 = vmatpush1.bf16.msra.mxu1 %v6897_v32 }
 0x4bc   :  { %4165 = vmatprep.subr.bf16.mxu0 %v6898_v47  ;;  %4229 = vmatprep.subr.bf16.mxu1 %v6899_v7  ;;  %v6952_v7 = vld [vmem:[#allocation70_spill] sm:$0xff] }
 0x4bf   :  { %4167 = vmatpush1.bf16.msra.mxu0 %v6900_v0  ;;  %4231 = vmatpush1.bf16.msra.mxu1 %v6901_v1  ;;  %v6911_v0 = vld [vmem:[#allocation29_spill] sm:$0xff]  ;;  %v6912_v1 = vld [vmem:[#allocation30_spill] sm:$0xff] }
 0x4c0   :  { %4169 = vmatprep.subr.bf16.mxu0 %v6902_v11  ;;  %4233 = vmatprep.subr.bf16.mxu1 %v6903_v12  ;;  %v6913_v11 = vld [vmem:[#allocation31_spill] sm:$0xff]  ;;  %v6914_v12 = vld [vmem:[#allocation32_spill] sm:$0xff] }
 0x4c3   :  { %4171 = vmatpush1.bf16.msra.mxu0 %v6904_v44  ;;  %4235 = vmatpush1.bf16.msra.mxu1 %v6905_v59  ;;  %v6915_v44 = vld [vmem:[#allocation33_spill] sm:$0xff]  ;;  %v6916_v59 = vld [vmem:[#allocation34_spill] sm:$0xff] }
 0x4c4   :  { %4173 = vmatprep.subr.bf16.mxu0 %v6906_v48  ;;  %4237 = vmatprep.subr.bf16.mxu1 %v6907_v60  ;;  %v6917_v48 = vld [vmem:[#allocation35_spill] sm:$0xff]  ;;  %v6918_v60 = vld [vmem:[#allocation36_spill] sm:$0xff] }
 0x4c7   :  { %4175 = vmatpush1.bf16.msra.mxu0 %v6908_v53  ;;  %4239 = vmatpush1.bf16.msra.mxu1 %v6909_v17  ;;  %v6919_v53 = vld [vmem:[#allocation37_spill] sm:$0xff]  ;;  %v6920_v17 = vld [vmem:[#allocation38_spill] sm:$0xff] }
 0x4c8   :  { %4177 = vmatprep.subr.bf16.mxu0 %v6910_v43  ;;  %4241 = vmatprep.subr.bf16.mxu1 %v6911_v0  ;;  %v6921_v43 = vld [vmem:[#allocation39_spill] sm:$0xff]  ;;  %v6922_v0 = vld [vmem:[#allocation40_spill] sm:$0xff] }
 0x4cb   :  { %4179 = vmatpush1.bf16.msra.mxu0 %v6912_v1  ;;  %4243 = vmatpush1.bf16.msra.mxu1 %v6913_v11  ;;  %v6923_v1 = vld [vmem:[#allocation41_spill] sm:$0xff]  ;;  %v6924_v11 = vld [vmem:[#allocation42_spill] sm:$0xff] }
 0x4cc   :  { %4181 = vmatprep.subr.bf16.mxu0 %v6914_v12  ;;  %4245 = vmatprep.subr.bf16.mxu1 %v6915_v44  ;;  %v6925_v12 = vld [vmem:[#allocation43_spill] sm:$0xff]  ;;  %v6926_v44 = vld [vmem:[#allocation44_spill] sm:$0xff] }
 0x4cf   :  { %4183 = vmatpush1.bf16.msra.mxu0 %v6916_v59  ;;  %4247 = vmatpush1.bf16.msra.mxu1 %v6917_v48  ;;  %v6927_v59 = vld [vmem:[#allocation45_spill] sm:$0xff]  ;;  %v6928_v48 = vld [vmem:[#allocation46_spill] sm:$0xff] }
 0x4d0   :  { %4185 = vmatprep.subr.bf16.mxu0 %v6918_v60  ;;  %4249 = vmatprep.subr.bf16.mxu1 %v6919_v53  ;;  %v6929_v60 = vld [vmem:[#allocation47_spill] sm:$0xff]  ;;  %v6930_v53 = vld [vmem:[#allocation48_spill] sm:$0xff] }
 0x4d3   :  { %4187 = vmatpush1.bf16.msra.mxu0 %v6920_v17  ;;  %4251 = vmatpush1.bf16.msra.mxu1 %v6921_v43  ;;  %v6931_v17 = vld [vmem:[#allocation49_spill] sm:$0xff]  ;;  %v6932_v43 = vld [vmem:[#allocation50_spill] sm:$0xff] }
 0x4d4   :  { %4189 = vmatprep.subr.bf16.mxu0 %v6922_v0  ;;  %4253 = vmatprep.subr.bf16.mxu1 %v6923_v1  ;;  %v6933_v0 = vld [vmem:[#allocation51_spill] sm:$0xff]  ;;  %v6934_v1 = vld [vmem:[#allocation52_spill] sm:$0xff] }
 0x4d7   :  { %4191 = vmatpush1.bf16.msra.mxu0 %v6924_v11  ;;  %4255 = vmatpush1.bf16.msra.mxu1 %v6925_v12  ;;  %v6935_v11 = vld [vmem:[#allocation53_spill] sm:$0xff]  ;;  %v6936_v12 = vld [vmem:[#allocation54_spill] sm:$0xff] }
 0x4d8   :  { %4193 = vmatprep.subr.bf16.mxu0 %v6926_v44  ;;  %4257 = vmatprep.subr.bf16.mxu1 %v6927_v59  ;;  %v6937_v44 = vld [vmem:[#allocation55_spill] sm:$0xff]  ;;  %v6938_v59 = vld [vmem:[#allocation56_spill] sm:$0xff] }
 0x4db   :  { %4195 = vmatpush1.bf16.msra.mxu0 %v6928_v48  ;;  %4259 = vmatpush1.bf16.msra.mxu1 %v6929_v60  ;;  %v6939_v48 = vld [vmem:[#allocation57_spill] sm:$0xff]  ;;  %v6940_v60 = vld [vmem:[#allocation58_spill] sm:$0xff] }
 0x4dc   :  { %4197 = vmatprep.subr.bf16.mxu0 %v6930_v53  ;;  %4261 = vmatprep.subr.bf16.mxu1 %v6931_v17  ;;  %v6941_v53 = vld [vmem:[#allocation59_spill] sm:$0xff]  ;;  %v6942_v17 = vld [vmem:[#allocation60_spill] sm:$0xff] }
 0x4df   :  { %4199 = vmatpush1.bf16.msra.mxu0 %v6932_v43  ;;  %4263 = vmatpush1.bf16.msra.mxu1 %v6933_v0  ;;  %v6943_v43 = vld [vmem:[#allocation61_spill] sm:$0xff]  ;;  %v6944_v0 = vld [vmem:[#allocation62_spill] sm:$0xff] }
 0x4e0   :  { %4201 = vmatprep.subr.bf16.mxu0 %v6934_v1  ;;  %4265 = vmatprep.subr.bf16.mxu1 %v6935_v11  ;;  %v6945_v1 = vld [vmem:[#allocation63_spill] sm:$0xff]  ;;  %v6946_v11 = vld [vmem:[#allocation64_spill] sm:$0xff] }
 0x4e3   :  { %4203 = vmatpush1.bf16.msra.mxu0 %v6936_v12  ;;  %4267 = vmatpush1.bf16.msra.mxu1 %v6937_v44  ;;  %v6947_v12 = vld [vmem:[#allocation65_spill] sm:$0xff]  ;;  %v6948_v44 = vld [vmem:[#allocation66_spill] sm:$0xff] }
 0x4e4   :  { %4205 = vmatprep.subr.bf16.mxu0 %v6938_v59  ;;  %4269 = vmatprep.subr.bf16.mxu1 %v6939_v48  ;;  %v6949_v59 = vld [vmem:[#allocation67_spill] sm:$0xff]  ;;  %v6950_v48 = vld [vmem:[#allocation9_spill] sm:$0xff] }
 0x4e7   :  { %4207 = vmatpush1.bf16.msra.mxu0 %v6940_v60  ;;  %4271 = vmatpush1.bf16.msra.mxu1 %v6941_v53  ;;  %v6951_v60 = vld [vmem:[#allocation10_spill] sm:$0xff] }
 0x4e8   :  { %4209 = vmatprep.subr.bf16.mxu0 %v6942_v17  ;;  %4273 = vmatprep.subr.bf16.mxu1 %v6943_v43 }
 0x4eb   :  { %4211 = vmatpush1.bf16.msra.mxu0 %v6944_v0  ;;  %4275 = vmatpush1.bf16.msra.mxu1 %v6945_v1 }
 0x4ec   :  { %4213 = vmatprep.subr.bf16.mxu0 %v6946_v11  ;;  %4277 = vmatprep.subr.bf16.mxu1 %v6947_v12 }
 0x4ef   :  { %4215 = vmatpush1.bf16.msra.mxu0 %v6948_v44  ;;  %4279 = vmatpush1.bf16.msra.mxu1 %v6949_v59 }
 0x4f0   :  { %4281 = vmatprep.subr.bf16.mxu0 %v6950_v48  ;;  %4313 = vmatprep.subr.bf16.mxu1 %v6951_v60 }
 0x565   :  { %v1760_v53 = vpop.f32.mrb[22].mxu0  ;;  %v1831_v17 = vpop.f32.mrb[22].mxu1 }
 0x566   :  { %v1761_v43 = vadd.f32 %v1760_v53, %v6952_v7  ;;  %v1762_v47 = vpop.f32.mrb[23].mxu0  ;;  %v1833_v0 = vpop.f32.mrb[23].mxu1  ;;  %v1832_v59 = vadd.f32 %v1831_v17, %v6830_v23 }
 0x567   :  { %v1763_v1 = vadd.f32 %v1762_v47, %v6828_v58  ;;  %v1834_v12 = vadd.f32 %v1833_v0, %v6829_v40 }
 0x568   :  { %v1836_v32 = vmul.f32 0.5, %v1761_v43  ;;  %v1838_v48 = vmul.f32 0.5, %v1832_v59  ;;  %v6953_v59 = vld [vmem:[#allocation68_spill] sm:$0xff] }
 0x569   :  { %v1837_v11 = vmul.f32 0.5, %v1763_v1 }
 0x56a   :  { %5021 = vtanh.f32 %v1836_v32 }
 0x56b   :  { %5023 = vtanh.f32 %v1837_v11 }
 0x56c   :  { %5025 = vtanh.f32 %v1834_v12 }
 0x56d   :  { %5027 = vtanh.f32 %v1838_v48 }
 0x574   :  { %v5022_v44 = vpop.eup %5021 }
 0x575   :  { %v1842_v60 = vmul.f32 0.5, %v5022_v44  ;;  %v5024_v55 = vpop.eup %5023 }
 0x576   :  { %v1843_v53 = vmul.f32 0.5, %v5024_v55  ;;  %v5026_v7 = vpop.eup %5025 }
 0x577   :  { %v1845_v63 = vadd.f32 0.5, %v1842_v60  ;;  %v5028_v32 = vpop.eup %5027 }
 0x578   :  { %v1846_v9 = vadd.f32 0.5, %v1843_v53  ;;  %v1844_v0 = vmul.f32 0.5, %v5028_v32 }
 0x579   :  { %v1850_v15 = vmul.f32 %v5026_v7, %v1845_v63 }
 0x57a   :  { %v1849_v47 = vmul.f32 %v1846_v9, %v5983_v19  ;;  %v1847_v55 = vadd.f32 0.5, %v1844_v0 }
 0x57c   :  { %v6097_v1 = vadd.f32 %v1850_v15, %v1849_v47 }
 0x57e   :  { %5029 = vtanh.f32 %v6097_v1 }
 0x585   :  { %v1920_v11 = vpop.f32.mrb[8].mxu0  ;;  %v1991_v12 = vpop.f32.mrb[8].mxu1 }
 0x586   :  { %v4888_v17 = vadd.f32 %v1920_v11, %v6953_v59  ;;  %v1922_v44 = vpop.f32.mrb[9].mxu0  ;;  %v1993_v43 = vpop.f32.mrb[9].mxu1  ;;  %v4904_v9 = vadd.f32 %v1991_v12, %v5628_v34 }
 0x587   :  { %v4889_v48 = vadd.f32 %v1922_v44, %v6770_v10  ;;  %v4905_v19 = vadd.f32 %v1993_v43, %v5621_v21 }
 0x588   :  { %v2000_v60 = vmul.f32 0.5, %v4888_v17  ;;  %v5030_v53 = vpop.eup %5029  ;;  %v2002_v7 = vmul.f32 0.5, %v4904_v9  ;;  %v6957_v9 = vld [vmem:[#allocation14_spill] sm:$0xff] }
 0x589   :  { %v2001_v63 = vmul.f32 0.5, %v4889_v48  ;;  %v1853_v15 = vmul.f32 %v5030_v53, %v1847_v55 }
 0x58a   :  { %5031 = vtanh.f32 %v2000_v60 }
 0x58b   :  { %5033 = vtanh.f32 %v2001_v63  ;;  %2082 = vmatprep.mubr.f32.mxu0 %v1853_v15  ;;  %2153 = vmatprep.mubr.f32.mxu1 %v1853_v15  ;;  %v6956_v15 = vld [vmem:[#allocation13_spill] sm:$0xff] }
 0x58c   :  { %5035 = vtanh.f32 %v4905_v19 }
 0x58d   :  { %5037 = vtanh.f32 %v2002_v7  ;;  %v6958_v7 = vld [vmem:[#allocation15_spill] sm:$0xff] }
 0x594   :  { %v5032_v47 = vpop.eup %5031 }
 0x595   :  { %v2006_v32 = vmul.f32 0.5, %v5032_v47  ;;  %v5034_v11 = vpop.eup %5033  ;;  %v6959_v47 = vld [vmem:[#allocation16_spill] sm:$0xff] }
 0x596   :  { %v2007_v0 = vmul.f32 0.5, %v5034_v11  ;;  %v5036_v17 = vpop.eup %5035  ;;  %v6961_v11 = vld [vmem:[#allocation18_spill] sm:$0xff] }
 0x597   :  { %v2009_v59 = vadd.f32 0.5, %v2006_v32  ;;  %v5038_v55 = vpop.eup %5037  ;;  %v6960_v32 = vld [vmem:[#allocation17_spill] sm:$0xff] }
 0x598   :  { %v2010_v44 = vadd.f32 0.5, %v2007_v0  ;;  %v2008_v53 = vmul.f32 0.5, %v5038_v55  ;;  %v6962_v0 = vld [vmem:[#allocation19_spill] sm:$0xff]  ;;  %v6967_v55 = vld [vmem:[#allocation24_spill] sm:$0xff] }
 0x599   :  { %v2014_v48 = vmul.f32 %v5036_v17, %v2009_v59  ;;  %v6955_v59 = vld [vmem:[#allocation12_spill] sm:$0xff] }
 0x59a   :  { %v2013_v60 = vmul.f32 %v2010_v44, %v5991_v52  ;;  %v2011_v63 = vadd.f32 0.5, %v2008_v53  ;;  %v6954_v52 = vld [vmem:[#allocation11_spill] sm:$0xff]  ;;  %v6963_v17 = vld [vmem:[#allocation20_spill] sm:$0xff]  ;;  %v6964_v44 = vld [vmem:[#allocation21_spill] sm:$0xff] }
 0x59b   :  { %v6968_v53 = vld [vmem:[#allocation25_spill] sm:$0xff] }
 0x59c   :  { %v6105_v43 = vadd.f32 %v2014_v48, %v2013_v60  ;;  %v6965_v48 = vld [vmem:[#allocation22_spill] sm:$0xff]  ;;  %v6966_v60 = vld [vmem:[#allocation23_spill] sm:$0xff] }
 0x59e   :  { %5039 = vtanh.f32 %v6105_v43 }
 0x5a8   :  { %v5040_v12 = vpop.eup %5039 }
 0x5a9   :  { %v2017_v19 = vmul.f32 %v5040_v12, %v2011_v63  ;;  %v6969_v63 = vld [vmem:[#allocation26_spill] sm:$0xff]  ;;  %v6970_v12 = vld [vmem:[#allocation27_spill] sm:$0xff] }
 0x5ab   :  { %2083 = vmatmul.mubr.f32.vlgmr.msra.gmra.mrb[24].mxu0 %v2017_v19  ;;  %2154 = vmatmul.mubr.f32.vlgmr.msra.gmra.mrb[24].mxu1 %v2017_v19 }
 0x5ac   :  { %4283 = vmatpush1.bf16.msra.mxu0 %v5261_v16  ;;  %4315 = vmatpush1.bf16.msra.mxu1 %v5270_v20 }
 0x5ad   :  { %4285 = vmatprep.subr.bf16.mxu0 %v5273_v24  ;;  %4317 = vmatprep.subr.bf16.mxu1 %v5275_v25 }
 0x5ae   :  { %2242 = vmatprep.mubr.f32.mxu0 %v6708_v35  ;;  %2313 = vmatprep.mubr.f32.mxu1 %v6708_v35 }
 0x5b0   :  { %4287 = vmatpush1.bf16.msra.mxu0 %v5279_v29  ;;  %4319 = vmatpush1.bf16.msra.mxu1 %v5286_v33 }
 0x5b1   :  { %4289 = vmatprep.subr.bf16.mxu0 %v5290_v37  ;;  %4321 = vmatprep.subr.bf16.mxu1 %v5292_v38 }
 0x5b4   :  { %4291 = vmatpush1.bf16.msra.mxu0 %v5296_v42  ;;  %4323 = vmatpush1.bf16.msra.mxu1 %v5303_v46 }
 0x5b5   :  { %4293 = vmatprep.subr.bf16.mxu0 %v5307_v50  ;;  %4325 = vmatprep.subr.bf16.mxu1 %v5311_v54 }
 0x5b8   :  { %4295 = vmatpush1.bf16.msra.mxu0 %v5315_v57  ;;  %4327 = vmatpush1.bf16.msra.mxu1 %v5319_v61 }
 0x5b9   :  { %4297 = vmatprep.subr.bf16.mxu0 %v5326_v2  ;;  %4329 = vmatprep.subr.bf16.mxu1 %v5330_v5 }
 0x5bc   :  { %4299 = vmatpush1.bf16.msra.mxu0 %v5334_v8  ;;  %4331 = vmatpush1.bf16.msra.mxu1 %v5338_v13 }
 0x5bd   :  { %4301 = vmatprep.subr.bf16.mxu0 %v5345_v18  ;;  %4333 = vmatprep.subr.bf16.mxu1 %v5349_v22 }
 0x5c0   :  { %4303 = vmatpush1.bf16.msra.mxu0 %v5353_v27  ;;  %4335 = vmatpush1.bf16.msra.mxu1 %v5357_v31 }
 0x5c1   :  { %4305 = vmatprep.subr.bf16.mxu0 %v5364_v36  ;;  %4337 = vmatprep.subr.bf16.mxu1 %v5368_v41 }
 0x5c4   :  { %4307 = vmatpush1.bf16.msra.mxu0 %v5372_v45  ;;  %4339 = vmatpush1.bf16.msra.mxu1 %v5379_v51 }
 0x5c5   :  { %4309 = vmatprep.subr.bf16.mxu0 %v5383_v56  ;;  %4341 = vmatprep.subr.bf16.mxu1 %v5387_v62 }
 0x5c8   :  { %4311 = vmatpush1.bf16.msra.mxu0 %v5391_v3  ;;  %4343 = vmatpush1.bf16.msra.mxu1 %v5395_v4 }
 0x5c9   :  { %4345 = vmatprep.subr.bf16.mxu0 %v5397_v6  ;;  %4409 = vmatprep.subr.bf16.mxu1 %v5401_v14 }
 0x5cb   :  { %2243 = vmatmul.mubr.f32.vlgmr.msra.gmra.mrb[10].mxu0 %v2017_v19  ;;  %2314 = vmatmul.mubr.f32.vlgmr.msra.gmra.mrb[10].mxu1 %v2017_v19  ;;  %v6971_v19 = vld [vmem:[#allocation28_spill] sm:$0xff] }
 0x5cc   :  { %4347 = vmatpush1.bf16.msra.mxu0 %v5407_v26  ;;  %4411 = vmatpush1.bf16.msra.mxu1 %v5411_v28 }
 0x5cd   :  { %4349 = vmatprep.subr.bf16.mxu0 %v5413_v30  ;;  %4413 = vmatprep.subr.bf16.mxu1 %v5416_v39 }
 0x5d0   :  { %4351 = vmatpush1.bf16.msra.mxu0 %v5421_v49  ;;  %4415 = vmatpush1.bf16.msra.mxu1 %v6954_v52 }
 0x5d1   :  { %4353 = vmatprep.subr.bf16.mxu0 %v6955_v59  ;;  %4417 = vmatprep.subr.bf16.mxu1 %v6956_v15 }
 0x5d4   :  { %4355 = vmatpush1.bf16.msra.mxu0 %v6957_v9  ;;  %4419 = vmatpush1.bf16.msra.mxu1 %v6958_v7 }
 0x5d5   :  { %4357 = vmatprep.subr.bf16.mxu0 %v6959_v47  ;;  %4421 = vmatprep.subr.bf16.mxu1 %v6960_v32  ;;  %v7013_v32 = vld [vmem:[#allocation70_spill] sm:$0xff] }
 0x5d8   :  { %4359 = vmatpush1.bf16.msra.mxu0 %v6961_v11  ;;  %4423 = vmatpush1.bf16.msra.mxu1 %v6962_v0  ;;  %v6972_v11 = vld [vmem:[#allocation29_spill] sm:$0xff]  ;;  %v6973_v0 = vld [vmem:[#allocation30_spill] sm:$0xff] }
 0x5d9   :  { %4361 = vmatprep.subr.bf16.mxu0 %v6963_v17  ;;  %4425 = vmatprep.subr.bf16.mxu1 %v6964_v44  ;;  %v6974_v17 = vld [vmem:[#allocation31_spill] sm:$0xff]  ;;  %v6975_v44 = vld [vmem:[#allocation32_spill] sm:$0xff] }
 0x5dc   :  { %4363 = vmatpush1.bf16.msra.mxu0 %v6965_v48  ;;  %4427 = vmatpush1.bf16.msra.mxu1 %v6966_v60  ;;  %v6976_v48 = vld [vmem:[#allocation33_spill] sm:$0xff]  ;;  %v6977_v60 = vld [vmem:[#allocation34_spill] sm:$0xff] }
 0x5dd   :  { %4365 = vmatprep.subr.bf16.mxu0 %v6967_v55  ;;  %4429 = vmatprep.subr.bf16.mxu1 %v6968_v53  ;;  %v6978_v55 = vld [vmem:[#allocation35_spill] sm:$0xff]  ;;  %v6979_v53 = vld [vmem:[#allocation36_spill] sm:$0xff] }
 0x5e0   :  { %4367 = vmatpush1.bf16.msra.mxu0 %v6969_v63  ;;  %4431 = vmatpush1.bf16.msra.mxu1 %v6970_v12  ;;  %v6980_v63 = vld [vmem:[#allocation37_spill] sm:$0xff]  ;;  %v6981_v12 = vld [vmem:[#allocation38_spill] sm:$0xff] }
 0x5e1   :  { %4369 = vmatprep.subr.bf16.mxu0 %v6971_v19  ;;  %4433 = vmatprep.subr.bf16.mxu1 %v6972_v11  ;;  %v6982_v19 = vld [vmem:[#allocation39_spill] sm:$0xff]  ;;  %v6983_v11 = vld [vmem:[#allocation40_spill] sm:$0xff] }
 0x5e4   :  { %4371 = vmatpush1.bf16.msra.mxu0 %v6973_v0  ;;  %4435 = vmatpush1.bf16.msra.mxu1 %v6974_v17  ;;  %v6984_v0 = vld [vmem:[#allocation41_spill] sm:$0xff]  ;;  %v6985_v17 = vld [vmem:[#allocation42_spill] sm:$0xff] }
 0x5e5   :  { %4373 = vmatprep.subr.bf16.mxu0 %v6975_v44  ;;  %4437 = vmatprep.subr.bf16.mxu1 %v6976_v48  ;;  %v6986_v44 = vld [vmem:[#allocation43_spill] sm:$0xff]  ;;  %v6987_v48 = vld [vmem:[#allocation44_spill] sm:$0xff] }
 0x5e8   :  { %4375 = vmatpush1.bf16.msra.mxu0 %v6977_v60  ;;  %4439 = vmatpush1.bf16.msra.mxu1 %v6978_v55  ;;  %v6988_v60 = vld [vmem:[#allocation45_spill] sm:$0xff]  ;;  %v6989_v55 = vld [vmem:[#allocation46_spill] sm:$0xff] }
 0x5e9   :  { %4377 = vmatprep.subr.bf16.mxu0 %v6979_v53  ;;  %4441 = vmatprep.subr.bf16.mxu1 %v6980_v63  ;;  %v6990_v53 = vld [vmem:[#allocation47_spill] sm:$0xff]  ;;  %v6991_v63 = vld [vmem:[#allocation48_spill] sm:$0xff] }
 0x5ec   :  { %4379 = vmatpush1.bf16.msra.mxu0 %v6981_v12  ;;  %4443 = vmatpush1.bf16.msra.mxu1 %v6982_v19  ;;  %v6992_v12 = vld [vmem:[#allocation49_spill] sm:$0xff]  ;;  %v6993_v19 = vld [vmem:[#allocation50_spill] sm:$0xff] }
 0x5ed   :  { %4381 = vmatprep.subr.bf16.mxu0 %v6983_v11  ;;  %4445 = vmatprep.subr.bf16.mxu1 %v6984_v0  ;;  %v6994_v11 = vld [vmem:[#allocation51_spill] sm:$0xff]  ;;  %v6995_v0 = vld [vmem:[#allocation52_spill] sm:$0xff] }
 0x5f0   :  { %4383 = vmatpush1.bf16.msra.mxu0 %v6985_v17  ;;  %4447 = vmatpush1.bf16.msra.mxu1 %v6986_v44  ;;  %v6996_v17 = vld [vmem:[#allocation53_spill] sm:$0xff]  ;;  %v6997_v44 = vld [vmem:[#allocation54_spill] sm:$0xff] }
 0x5f1   :  { %4385 = vmatprep.subr.bf16.mxu0 %v6987_v48  ;;  %4449 = vmatprep.subr.bf16.mxu1 %v6988_v60  ;;  %v6998_v48 = vld [vmem:[#allocation55_spill] sm:$0xff]  ;;  %v6999_v60 = vld [vmem:[#allocation56_spill] sm:$0xff] }
 0x5f4   :  { %4387 = vmatpush1.bf16.msra.mxu0 %v6989_v55  ;;  %4451 = vmatpush1.bf16.msra.mxu1 %v6990_v53  ;;  %v7000_v55 = vld [vmem:[#allocation57_spill] sm:$0xff]  ;;  %v7001_v53 = vld [vmem:[#allocation58_spill] sm:$0xff] }
 0x5f5   :  { %4389 = vmatprep.subr.bf16.mxu0 %v6991_v63  ;;  %4453 = vmatprep.subr.bf16.mxu1 %v6992_v12  ;;  %v7002_v63 = vld [vmem:[#allocation59_spill] sm:$0xff]  ;;  %v7003_v12 = vld [vmem:[#allocation60_spill] sm:$0xff] }
 0x5f8   :  { %4391 = vmatpush1.bf16.msra.mxu0 %v6993_v19  ;;  %4455 = vmatpush1.bf16.msra.mxu1 %v6994_v11  ;;  %v7004_v19 = vld [vmem:[#allocation61_spill] sm:$0xff]  ;;  %v7005_v11 = vld [vmem:[#allocation62_spill] sm:$0xff] }
 0x5f9   :  { %4393 = vmatprep.subr.bf16.mxu0 %v6995_v0  ;;  %4457 = vmatprep.subr.bf16.mxu1 %v6996_v17  ;;  %v7006_v0 = vld [vmem:[#allocation63_spill] sm:$0xff]  ;;  %v7007_v17 = vld [vmem:[#allocation64_spill] sm:$0xff] }
 0x5fc   :  { %4395 = vmatpush1.bf16.msra.mxu0 %v6997_v44  ;;  %4459 = vmatpush1.bf16.msra.mxu1 %v6998_v48  ;;  %v7008_v44 = vld [vmem:[#allocation65_spill] sm:$0xff]  ;;  %v7009_v48 = vld [vmem:[#allocation66_spill] sm:$0xff] }
 0x5fd   :  { %4397 = vmatprep.subr.bf16.mxu0 %v6999_v60  ;;  %4461 = vmatprep.subr.bf16.mxu1 %v7000_v55  ;;  %v7010_v60 = vld [vmem:[#allocation67_spill] sm:$0xff]  ;;  %v7011_v55 = vld [vmem:[#allocation9_spill] sm:$0xff] }
 0x600   :  { %4399 = vmatpush1.bf16.msra.mxu0 %v7001_v53  ;;  %4463 = vmatpush1.bf16.msra.mxu1 %v7002_v63  ;;  %v7012_v53 = vld [vmem:[#allocation10_spill] sm:$0xff] }
 0x601   :  { %4401 = vmatprep.subr.bf16.mxu0 %v7003_v12  ;;  %4465 = vmatprep.subr.bf16.mxu1 %v7004_v19 }
 0x604   :  { %4403 = vmatpush1.bf16.msra.mxu0 %v7005_v11  ;;  %4467 = vmatpush1.bf16.msra.mxu1 %v7006_v0 }
 0x605   :  { %4405 = vmatprep.subr.bf16.mxu0 %v7007_v17  ;;  %4469 = vmatprep.subr.bf16.mxu1 %v7008_v44 }
 0x608   :  { %4407 = vmatpush1.bf16.msra.mxu0 %v7009_v48  ;;  %4471 = vmatpush1.bf16.msra.mxu1 %v7010_v60 }
 0x609   :  { %4473 = vmatprep.subr.bf16.mxu0 %v7011_v55  ;;  %4505 = vmatprep.subr.bf16.mxu1 %v7012_v53 }
 0x67e   :  { %v2084_v63 = vpop.f32.mrb[24].mxu0  ;;  %v2155_v12 = vpop.f32.mrb[24].mxu1 }
 0x67f   :  { %v2085_v19 = vadd.f32 %v2084_v63, %v7013_v32  ;;  %v2086_v47 = vpop.f32.mrb[25].mxu0  ;;  %v2157_v11 = vpop.f32.mrb[25].mxu1  ;;  %v2156_v60 = vadd.f32 %v2155_v12, %v6830_v23 }
 0x680   :  { %v2087_v0 = vadd.f32 %v2086_v47, %v6828_v58  ;;  %v2158_v44 = vadd.f32 %v2157_v11, %v6829_v40 }
 0x681   :  { %v2160_v7 = vmul.f32 0.5, %v2085_v19  ;;  %v2162_v55 = vmul.f32 0.5, %v2156_v60  ;;  %v7014_v60 = vld [vmem:[#allocation68_spill] sm:$0xff] }
 0x682   :  { %v2161_v17 = vmul.f32 0.5, %v2087_v0 }
 0x683   :  { %5041 = vtanh.f32 %v2160_v7 }
 0x684   :  { %5043 = vtanh.f32 %v2161_v17 }
 0x685   :  { %5045 = vtanh.f32 %v2158_v44 }
 0x686   :  { %5047 = vtanh.f32 %v2162_v55 }
 0x68d   :  { %v5042_v48 = vpop.eup %5041 }
 0x68e   :  { %v2166_v53 = vmul.f32 0.5, %v5042_v48  ;;  %v5044_v9 = vpop.eup %5043 }
 0x68f   :  { %v2167_v63 = vmul.f32 0.5, %v5044_v9  ;;  %v5046_v32 = vpop.eup %5045 }
 0x690   :  { %v2169_v15 = vadd.f32 0.5, %v2166_v53  ;;  %v5048_v7 = vpop.eup %5047 }
 0x691   :  { %v2170_v59 = vadd.f32 0.5, %v2167_v63  ;;  %v2168_v11 = vmul.f32 0.5, %v5048_v7 }
 0x692   :  { %v2174_v52 = vmul.f32 %v5046_v32, %v2169_v15 }
 0x693   :  { %v2173_v47 = vmul.f32 %v2170_v59, %v6097_v1  ;;  %v2171_v9 = vadd.f32 0.5, %v2168_v11 }
 0x695   :  { %v6211_v0 = vadd.f32 %v2174_v52, %v2173_v47 }
 0x697   :  { %5049 = vtanh.f32 %v6211_v0 }
 0x69e   :  { %v2244_v17 = vpop.f32.mrb[10].mxu0  ;;  %v2315_v44 = vpop.f32.mrb[10].mxu1 }
 0x69f   :  { %v4890_v12 = vadd.f32 %v2244_v17, %v7014_v60  ;;  %v2246_v48 = vpop.f32.mrb[11].mxu0  ;;  %v2317_v19 = vpop.f32.mrb[11].mxu1  ;;  %v4906_v59 = vadd.f32 %v2315_v44, %v5628_v34 }
 0x6a0   :  { %v4891_v55 = vadd.f32 %v2246_v48, %v6770_v10  ;;  %v4907_v1 = vadd.f32 %v2317_v19, %v5621_v21 }
 0x6a1   :  { %v2324_v53 = vmul.f32 0.5, %v4890_v12  ;;  %v5050_v63 = vpop.eup %5049  ;;  %v2326_v32 = vmul.f32 0.5, %v4906_v59  ;;  %v7018_v59 = vld [vmem:[#allocation14_spill] sm:$0xff] }
 0x6a2   :  { %v2325_v15 = vmul.f32 0.5, %v4891_v55  ;;  %v2177_v52 = vmul.f32 %v5050_v63, %v2171_v9 }
 0x6a3   :  { %5051 = vtanh.f32 %v2324_v53 }
 0x6a4   :  { %5053 = vtanh.f32 %v2325_v15  ;;  %2406 = vmatprep.mubr.f32.mxu0 %v2177_v52  ;;  %2477 = vmatprep.mubr.f32.mxu1 %v2177_v52  ;;  %v7017_v52 = vld [vmem:[#allocation13_spill] sm:$0xff] }
 0x6a5   :  { %5055 = vtanh.f32 %v4907_v1 }
 0x6a6   :  { %5057 = vtanh.f32 %v2326_v32  ;;  %v7019_v32 = vld [vmem:[#allocation15_spill] sm:$0xff] }
 0x6ad   :  { %v5052_v47 = vpop.eup %5051 }
 0x6ae   :  { %v2330_v7 = vmul.f32 0.5, %v5052_v47  ;;  %v5054_v17 = vpop.eup %5053  ;;  %v7020_v47 = vld [vmem:[#allocation16_spill] sm:$0xff] }
 0x6af   :  { %v2331_v11 = vmul.f32 0.5, %v5054_v17  ;;  %v5056_v12 = vpop.eup %5055  ;;  %v7022_v17 = vld [vmem:[#allocation18_spill] sm:$0xff] }
 0x6b0   :  { %v2333_v60 = vadd.f32 0.5, %v2330_v7  ;;  %v5058_v9 = vpop.eup %5057  ;;  %v7021_v7 = vld [vmem:[#allocation17_spill] sm:$0xff] }
 0x6b1   :  { %v2334_v48 = vadd.f32 0.5, %v2331_v11  ;;  %v2332_v63 = vmul.f32 0.5, %v5058_v9  ;;  %v7023_v11 = vld [vmem:[#allocation19_spill] sm:$0xff]  ;;  %v7028_v9 = vld [vmem:[#allocation24_spill] sm:$0xff] }
 0x6b2   :  { %v2338_v55 = vmul.f32 %v5056_v12, %v2333_v60  ;;  %v7016_v60 = vld [vmem:[#allocation12_spill] sm:$0xff] }
 0x6b3   :  { %v2337_v53 = vmul.f32 %v2334_v48, %v6105_v43  ;;  %v2335_v15 = vadd.f32 0.5, %v2332_v63  ;;  %v7015_v43 = vld [vmem:[#allocation11_spill] sm:$0xff]  ;;  %v7024_v12 = vld [vmem:[#allocation20_spill] sm:$0xff]  ;;  %v7025_v48 = vld [vmem:[#allocation21_spill] sm:$0xff] }
 0x6b4   :  { %v7029_v63 = vld [vmem:[#allocation25_spill] sm:$0xff] }
 0x6b5   :  { %v6219_v19 = vadd.f32 %v2338_v55, %v2337_v53  ;;  %v7026_v55 = vld [vmem:[#allocation22_spill] sm:$0xff]  ;;  %v7027_v53 = vld [vmem:[#allocation23_spill] sm:$0xff] }
 0x6b7   :  { %5059 = vtanh.f32 %v6219_v19 }
 0x6c1   :  { %v5060_v44 = vpop.eup %5059 }
 0x6c2   :  { %v2341_v1 = vmul.f32 %v5060_v44, %v2335_v15  ;;  %v7030_v15 = vld [vmem:[#allocation26_spill] sm:$0xff]  ;;  %v7031_v44 = vld [vmem:[#allocation27_spill] sm:$0xff] }
 0x6c4   :  { %2407 = vmatmul.mubr.f32.vlgmr.msra.gmra.mrb[26].mxu0 %v2341_v1  ;;  %2478 = vmatmul.mubr.f32.vlgmr.msra.gmra.mrb[26].mxu1 %v2341_v1 }
 0x6c5   :  { %4475 = vmatpush1.bf16.msra.mxu0 %v5261_v16  ;;  %4507 = vmatpush1.bf16.msra.mxu1 %v5270_v20 }
 0x6c6   :  { %4477 = vmatprep.subr.bf16.mxu0 %v5273_v24  ;;  %4509 = vmatprep.subr.bf16.mxu1 %v5275_v25 }
 0x6c7   :  { %2566 = vmatprep.mubr.f32.mxu0 %v6708_v35  ;;  %2637 = vmatprep.mubr.f32.mxu1 %v6708_v35 }
 0x6c9   :  { %4479 = vmatpush1.bf16.msra.mxu0 %v5279_v29  ;;  %4511 = vmatpush1.bf16.msra.mxu1 %v5286_v33 }
 0x6ca   :  { %4481 = vmatprep.subr.bf16.mxu0 %v5290_v37  ;;  %4513 = vmatprep.subr.bf16.mxu1 %v5292_v38 }
 0x6cd   :  { %4483 = vmatpush1.bf16.msra.mxu0 %v5296_v42  ;;  %4515 = vmatpush1.bf16.msra.mxu1 %v5303_v46 }
 0x6ce   :  { %4485 = vmatprep.subr.bf16.mxu0 %v5307_v50  ;;  %4517 = vmatprep.subr.bf16.mxu1 %v5311_v54 }
 0x6d1   :  { %4487 = vmatpush1.bf16.msra.mxu0 %v5315_v57  ;;  %4519 = vmatpush1.bf16.msra.mxu1 %v5319_v61 }
 0x6d2   :  { %4489 = vmatprep.subr.bf16.mxu0 %v5326_v2  ;;  %4521 = vmatprep.subr.bf16.mxu1 %v5330_v5 }
 0x6d5   :  { %4491 = vmatpush1.bf16.msra.mxu0 %v5334_v8  ;;  %4523 = vmatpush1.bf16.msra.mxu1 %v5338_v13 }
 0x6d6   :  { %4493 = vmatprep.subr.bf16.mxu0 %v5345_v18  ;;  %4525 = vmatprep.subr.bf16.mxu1 %v5349_v22 }
 0x6d9   :  { %4495 = vmatpush1.bf16.msra.mxu0 %v5353_v27  ;;  %4527 = vmatpush1.bf16.msra.mxu1 %v5357_v31 }
 0x6da   :  { %4497 = vmatprep.subr.bf16.mxu0 %v5364_v36  ;;  %4529 = vmatprep.subr.bf16.mxu1 %v5368_v41 }
 0x6dd   :  { %4499 = vmatpush1.bf16.msra.mxu0 %v5372_v45  ;;  %4531 = vmatpush1.bf16.msra.mxu1 %v5379_v51 }
 0x6de   :  { %4501 = vmatprep.subr.bf16.mxu0 %v5383_v56  ;;  %4533 = vmatprep.subr.bf16.mxu1 %v5387_v62 }
 0x6e1   :  { %4503 = vmatpush1.bf16.msra.mxu0 %v5391_v3  ;;  %4535 = vmatpush1.bf16.msra.mxu1 %v5395_v4 }
 0x6e2   :  { %4537 = vmatprep.subr.bf16.mxu0 %v5397_v6  ;;  %4601 = vmatprep.subr.bf16.mxu1 %v5401_v14 }
 0x6e4   :  { %2567 = vmatmul.mubr.f32.vlgmr.msra.gmra.mrb[12].mxu0 %v2341_v1  ;;  %2638 = vmatmul.mubr.f32.vlgmr.msra.gmra.mrb[12].mxu1 %v2341_v1  ;;  %v7032_v1 = vld [vmem:[#allocation28_spill] sm:$0xff] }
 0x6e5   :  { %4539 = vmatpush1.bf16.msra.mxu0 %v5407_v26  ;;  %4603 = vmatpush1.bf16.msra.mxu1 %v5411_v28 }
 0x6e6   :  { %4541 = vmatprep.subr.bf16.mxu0 %v5413_v30  ;;  %4605 = vmatprep.subr.bf16.mxu1 %v5416_v39 }
 0x6e9   :  { %4543 = vmatpush1.bf16.msra.mxu0 %v5421_v49  ;;  %4607 = vmatpush1.bf16.msra.mxu1 %v7015_v43 }
 0x6ea   :  { %4545 = vmatprep.subr.bf16.mxu0 %v7016_v60  ;;  %4609 = vmatprep.subr.bf16.mxu1 %v7017_v52 }
 0x6ed   :  { %4547 = vmatpush1.bf16.msra.mxu0 %v7018_v59  ;;  %4611 = vmatpush1.bf16.msra.mxu1 %v7019_v32 }
 0x6ee   :  { %4549 = vmatprep.subr.bf16.mxu0 %v7020_v47  ;;  %4613 = vmatprep.subr.bf16.mxu1 %v7021_v7  ;;  %v7074_v7 = vld [vmem:[#allocation70_spill] sm:$0xff] }
 0x6f1   :  { %4551 = vmatpush1.bf16.msra.mxu0 %v7022_v17  ;;  %4615 = vmatpush1.bf16.msra.mxu1 %v7023_v11  ;;  %v7033_v17 = vld [vmem:[#allocation29_spill] sm:$0xff]  ;;  %v7034_v11 = vld [vmem:[#allocation30_spill] sm:$0xff] }
 0x6f2   :  { %4553 = vmatprep.subr.bf16.mxu0 %v7024_v12  ;;  %4617 = vmatprep.subr.bf16.mxu1 %v7025_v48  ;;  %v7035_v12 = vld [vmem:[#allocation31_spill] sm:$0xff]  ;;  %v7036_v48 = vld [vmem:[#allocation32_spill] sm:$0xff] }
 0x6f5   :  { %4555 = vmatpush1.bf16.msra.mxu0 %v7026_v55  ;;  %4619 = vmatpush1.bf16.msra.mxu1 %v7027_v53  ;;  %v7037_v55 = vld [vmem:[#allocation33_spill] sm:$0xff]  ;;  %v7038_v53 = vld [vmem:[#allocation34_spill] sm:$0xff] }
 0x6f6   :  { %4557 = vmatprep.subr.bf16.mxu0 %v7028_v9  ;;  %4621 = vmatprep.subr.bf16.mxu1 %v7029_v63  ;;  %v7039_v9 = vld [vmem:[#allocation35_spill] sm:$0xff]  ;;  %v7040_v63 = vld [vmem:[#allocation36_spill] sm:$0xff] }
 0x6f9   :  { %4559 = vmatpush1.bf16.msra.mxu0 %v7030_v15  ;;  %4623 = vmatpush1.bf16.msra.mxu1 %v7031_v44  ;;  %v7041_v15 = vld [vmem:[#allocation37_spill] sm:$0xff]  ;;  %v7042_v44 = vld [vmem:[#allocation38_spill] sm:$0xff] }
 0x6fa   :  { %4561 = vmatprep.subr.bf16.mxu0 %v7032_v1  ;;  %4625 = vmatprep.subr.bf16.mxu1 %v7033_v17  ;;  %v7043_v1 = vld [vmem:[#allocation39_spill] sm:$0xff]  ;;  %v7044_v17 = vld [vmem:[#allocation40_spill] sm:$0xff] }
 0x6fd   :  { %4563 = vmatpush1.bf16.msra.mxu0 %v7034_v11  ;;  %4627 = vmatpush1.bf16.msra.mxu1 %v7035_v12  ;;  %v7045_v11 = vld [vmem:[#allocation41_spill] sm:$0xff]  ;;  %v7046_v12 = vld [vmem:[#allocation42_spill] sm:$0xff] }
 0x6fe   :  { %4565 = vmatprep.subr.bf16.mxu0 %v7036_v48  ;;  %4629 = vmatprep.subr.bf16.mxu1 %v7037_v55  ;;  %v7047_v48 = vld [vmem:[#allocation43_spill] sm:$0xff]  ;;  %v7048_v55 = vld [vmem:[#allocation44_spill] sm:$0xff] }
 0x701   :  { %4567 = vmatpush1.bf16.msra.mxu0 %v7038_v53  ;;  %4631 = vmatpush1.bf16.msra.mxu1 %v7039_v9  ;;  %v7049_v53 = vld [vmem:[#allocation45_spill] sm:$0xff]  ;;  %v7050_v9 = vld [vmem:[#allocation46_spill] sm:$0xff] }
 0x702   :  { %4569 = vmatprep.subr.bf16.mxu0 %v7040_v63  ;;  %4633 = vmatprep.subr.bf16.mxu1 %v7041_v15  ;;  %v7051_v63 = vld [vmem:[#allocation47_spill] sm:$0xff]  ;;  %v7052_v15 = vld [vmem:[#allocation48_spill] sm:$0xff] }
 0x705   :  { %4571 = vmatpush1.bf16.msra.mxu0 %v7042_v44  ;;  %4635 = vmatpush1.bf16.msra.mxu1 %v7043_v1  ;;  %v7053_v44 = vld [vmem:[#allocation49_spill] sm:$0xff]  ;;  %v7054_v1 = vld [vmem:[#allocation50_spill] sm:$0xff] }
 0x706   :  { %4573 = vmatprep.subr.bf16.mxu0 %v7044_v17  ;;  %4637 = vmatprep.subr.bf16.mxu1 %v7045_v11  ;;  %v7055_v17 = vld [vmem:[#allocation51_spill] sm:$0xff]  ;;  %v7056_v11 = vld [vmem:[#allocation52_spill] sm:$0xff] }
 0x709   :  { %4575 = vmatpush1.bf16.msra.mxu0 %v7046_v12  ;;  %4639 = vmatpush1.bf16.msra.mxu1 %v7047_v48  ;;  %v7057_v12 = vld [vmem:[#allocation53_spill] sm:$0xff]  ;;  %v7058_v48 = vld [vmem:[#allocation54_spill] sm:$0xff] }
 0x70a   :  { %4577 = vmatprep.subr.bf16.mxu0 %v7048_v55  ;;  %4641 = vmatprep.subr.bf16.mxu1 %v7049_v53  ;;  %v7059_v55 = vld [vmem:[#allocation55_spill] sm:$0xff]  ;;  %v7060_v53 = vld [vmem:[#allocation56_spill] sm:$0xff] }
 0x70d   :  { %4579 = vmatpush1.bf16.msra.mxu0 %v7050_v9  ;;  %4643 = vmatpush1.bf16.msra.mxu1 %v7051_v63  ;;  %v7061_v9 = vld [vmem:[#allocation57_spill] sm:$0xff]  ;;  %v7062_v63 = vld [vmem:[#allocation58_spill] sm:$0xff] }
 0x70e   :  { %4581 = vmatprep.subr.bf16.mxu0 %v7052_v15  ;;  %4645 = vmatprep.subr.bf16.mxu1 %v7053_v44  ;;  %v7063_v15 = vld [vmem:[#allocation59_spill] sm:$0xff]  ;;  %v7064_v44 = vld [vmem:[#allocation60_spill] sm:$0xff] }
 0x711   :  { %4583 = vmatpush1.bf16.msra.mxu0 %v7054_v1  ;;  %4647 = vmatpush1.bf16.msra.mxu1 %v7055_v17  ;;  %v7065_v1 = vld [vmem:[#allocation61_spill] sm:$0xff]  ;;  %v7066_v17 = vld [vmem:[#allocation62_spill] sm:$0xff] }
 0x712   :  { %4585 = vmatprep.subr.bf16.mxu0 %v7056_v11  ;;  %4649 = vmatprep.subr.bf16.mxu1 %v7057_v12  ;;  %v7067_v11 = vld [vmem:[#allocation63_spill] sm:$0xff]  ;;  %v7068_v12 = vld [vmem:[#allocation64_spill] sm:$0xff] }
 0x715   :  { %4587 = vmatpush1.bf16.msra.mxu0 %v7058_v48  ;;  %4651 = vmatpush1.bf16.msra.mxu1 %v7059_v55  ;;  %v7069_v48 = vld [vmem:[#allocation65_spill] sm:$0xff]  ;;  %v7070_v55 = vld [vmem:[#allocation66_spill] sm:$0xff] }
 0x716   :  { %4589 = vmatprep.subr.bf16.mxu0 %v7060_v53  ;;  %4653 = vmatprep.subr.bf16.mxu1 %v7061_v9  ;;  %v7071_v53 = vld [vmem:[#allocation67_spill] sm:$0xff]  ;;  %v7072_v9 = vld [vmem:[#allocation9_spill] sm:$0xff] }
 0x719   :  { %4591 = vmatpush1.bf16.msra.mxu0 %v7062_v63  ;;  %4655 = vmatpush1.bf16.msra.mxu1 %v7063_v15  ;;  %v7073_v63 = vld [vmem:[#allocation10_spill] sm:$0xff] }
 0x71a   :  { %4593 = vmatprep.subr.bf16.mxu0 %v7064_v44  ;;  %4657 = vmatprep.subr.bf16.mxu1 %v7065_v1 }
 0x71d   :  { %4595 = vmatpush1.bf16.msra.mxu0 %v7066_v17  ;;  %4659 = vmatpush1.bf16.msra.mxu1 %v7067_v11 }
 0x71e   :  { %4597 = vmatprep.subr.bf16.mxu0 %v7068_v12  ;;  %4661 = vmatprep.subr.bf16.mxu1 %v7069_v48 }
 0x721   :  { %4599 = vmatpush1.bf16.msra.mxu0 %v7070_v55  ;;  %4663 = vmatpush1.bf16.msra.mxu1 %v7071_v53 }
 0x722   :  { %4665 = vmatprep.subr.bf16.mxu0 %v7072_v9  ;;  %4697 = vmatprep.subr.bf16.mxu1 %v7073_v63 }
 0x797   :  { %v2408_v15 = vpop.f32.mrb[26].mxu0  ;;  %v2479_v44 = vpop.f32.mrb[26].mxu1 }
 0x798   :  { %v2409_v1 = vadd.f32 %v2408_v15, %v7074_v7  ;;  %v2410_v47 = vpop.f32.mrb[27].mxu0  ;;  %v2481_v17 = vpop.f32.mrb[27].mxu1  ;;  %v2480_v53 = vadd.f32 %v2479_v44, %v6830_v23 }
 0x799   :  { %v2411_v11 = vadd.f32 %v2410_v47, %v6828_v58  ;;  %v2482_v48 = vadd.f32 %v2481_v17, %v6829_v40 }
 0x79a   :  { %v2484_v32 = vmul.f32 0.5, %v2409_v1  ;;  %v2486_v9 = vmul.f32 0.5, %v2480_v53  ;;  %v7075_v53 = vld [vmem:[#allocation68_spill] sm:$0xff] }
 0x79b   :  { %v2485_v12 = vmul.f32 0.5, %v2411_v11 }
 0x79c   :  { %5061 = vtanh.f32 %v2484_v32 }
 0x79d   :  { %5063 = vtanh.f32 %v2485_v12 }
 0x79e   :  { %5065 = vtanh.f32 %v2482_v48 }
 0x79f   :  { %5067 = vtanh.f32 %v2486_v9 }
 0x7a6   :  { %v5062_v55 = vpop.eup %5061 }
 0x7a7   :  { %v2490_v63 = vmul.f32 0.5, %v5062_v55  ;;  %v5064_v59 = vpop.eup %5063 }
 0x7a8   :  { %v2491_v15 = vmul.f32 0.5, %v5064_v59  ;;  %v5066_v7 = vpop.eup %5065 }
 0x7a9   :  { %v2493_v52 = vadd.f32 0.5, %v2490_v63  ;;  %v5068_v32 = vpop.eup %5067 }
 0x7aa   :  { %v2494_v60 = vadd.f32 0.5, %v2491_v15  ;;  %v2492_v17 = vmul.f32 0.5, %v5068_v32 }
 0x7ab   :  { %v2498_v43 = vmul.f32 %v5066_v7, %v2493_v52 }
 0x7ac   :  { %v2497_v47 = vmul.f32 %v2494_v60, %v6211_v0  ;;  %v2495_v59 = vadd.f32 0.5, %v2492_v17 }
 0x7ae   :  { %v6325_v11 = vadd.f32 %v2498_v43, %v2497_v47 }
 0x7b0   :  { %5069 = vtanh.f32 %v6325_v11 }
 0x7b7   :  { %v2568_v12 = vpop.f32.mrb[12].mxu0  ;;  %v2639_v48 = vpop.f32.mrb[12].mxu1 }
 0x7b8   :  { %v4892_v44 = vadd.f32 %v2568_v12, %v7075_v53  ;;  %v2570_v55 = vpop.f32.mrb[13].mxu0  ;;  %v2641_v1 = vpop.f32.mrb[13].mxu1  ;;  %v4908_v60 = vadd.f32 %v2639_v48, %v5628_v34 }
 0x7b9   :  { %v4893_v9 = vadd.f32 %v2570_v55, %v6770_v10  ;;  %v4909_v0 = vadd.f32 %v2641_v1, %v5621_v21 }
 0x7ba   :  { %v2648_v63 = vmul.f32 0.5, %v4892_v44  ;;  %v5070_v15 = vpop.eup %5069  ;;  %v2650_v7 = vmul.f32 0.5, %v4908_v60  ;;  %v7116_v60 = vld [vmem:[#allocation51_spill] sm:$0xff] }
 0x7bb   :  { %v2649_v52 = vmul.f32 0.5, %v4893_v9  ;;  %v2501_v43 = vmul.f32 %v5070_v15, %v2495_v59 }
 0x7bc   :  { %5071 = vtanh.f32 %v2648_v63 }
 0x7bd   :  { %5073 = vtanh.f32 %v2649_v52  ;;  %2730 = vmatprep.mubr.f32.mxu0 %v2501_v43  ;;  %2801 = vmatprep.mubr.f32.mxu1 %v2501_v43  ;;  %v7115_v43 = vld [vmem:[#allocation50_spill] sm:$0xff] }
 0x7be   :  { %5075 = vtanh.f32 %v4909_v0 }
 0x7bf   :  { %5077 = vtanh.f32 %v2650_v7  ;;  %v7117_v7 = vld [vmem:[#allocation52_spill] sm:$0xff] }
 0x7c6   :  { %v5072_v47 = vpop.eup %5071 }
 0x7c7   :  { %v2654_v32 = vmul.f32 0.5, %v5072_v47  ;;  %v5074_v12 = vpop.eup %5073  ;;  %v7118_v47 = vld [vmem:[#allocation53_spill] sm:$0xff] }
 0x7c8   :  { %v2655_v17 = vmul.f32 0.5, %v5074_v12  ;;  %v5076_v44 = vpop.eup %5075  ;;  %v7120_v12 = vld [vmem:[#allocation55_spill] sm:$0xff] }
 0x7c9   :  { %v2657_v53 = vadd.f32 0.5, %v2654_v32  ;;  %v5078_v59 = vpop.eup %5077  ;;  %v7119_v32 = vld [vmem:[#allocation54_spill] sm:$0xff] }
 0x7ca   :  { %v2658_v55 = vadd.f32 0.5, %v2655_v17  ;;  %v2656_v15 = vmul.f32 0.5, %v5078_v59  ;;  %v7121_v17 = vld [vmem:[#allocation56_spill] sm:$0xff]  ;;  %v7126_v59 = vld [vmem:[#allocation61_spill] sm:$0xff] }
 0x7cb   :  { %v2662_v9 = vmul.f32 %v5076_v44, %v2657_v53  ;;  %v7114_v53 = vld [vmem:[#allocation49_spill] sm:$0xff] }
 0x7cc   :  { %v2661_v63 = vmul.f32 %v2658_v55, %v6219_v19  ;;  %v2659_v52 = vadd.f32 0.5, %v2656_v15  ;;  %v7113_v19 = vld [vmem:[#allocation48_spill] sm:$0xff]  ;;  %v7122_v44 = vld [vmem:[#allocation57_spill] sm:$0xff]  ;;  %v7123_v55 = vld [vmem:[#allocation58_spill] sm:$0xff] }
 0x7cd   :  { %v7127_v15 = vld [vmem:[#allocation62_spill] sm:$0xff] }
 0x7ce   :  { %v6333_v1 = vadd.f32 %v2662_v9, %v2661_v63  ;;  %v7124_v9 = vld [vmem:[#allocation59_spill] sm:$0xff]  ;;  %v7125_v63 = vld [vmem:[#allocation60_spill] sm:$0xff] }
 0x7d0   :  { %5079 = vtanh.f32 %v6333_v1 }
 0x7da   :  { %v5080_v48 = vpop.eup %5079 }
 0x7db   :  { %v2665_v0 = vmul.f32 %v5080_v48, %v2659_v52  ;;  %v7128_v52 = vld [vmem:[#allocation63_spill] sm:$0xff]  ;;  %v7129_v48 = vld [vmem:[#allocation64_spill] sm:$0xff] }
 0x7dd   :  { %2731 = vmatmul.mubr.f32.vlgmr.msra.gmra.mrb[28].mxu0 %v2665_v0  ;;  %2802 = vmatmul.mubr.f32.vlgmr.msra.gmra.mrb[28].mxu1 %v2665_v0 }
 0x7de   :  { %4667 = vmatpush1.bf16.msra.mxu0 %v5261_v16  ;;  %4699 = vmatpush1.bf16.msra.mxu1 %v5270_v20  ;;  %v7076_v16 = vld [vmem:[#allocation11_spill] sm:$0xff]  ;;  %v7077_v20 = vld [vmem:[#allocation12_spill] sm:$0xff] }
 0x7df   :  { %4669 = vmatprep.subr.bf16.mxu0 %v5273_v24  ;;  %4701 = vmatprep.subr.bf16.mxu1 %v5275_v25  ;;  %v7078_v24 = vld [vmem:[#allocation13_spill] sm:$0xff]  ;;  %v7079_v25 = vld [vmem:[#allocation14_spill] sm:$0xff] }
 0x7e0   :  { %2890 = vmatprep.mubr.f32.mxu0 %v6708_v35  ;;  %2961 = vmatprep.mubr.f32.mxu1 %v6708_v35 }
 0x7e2   :  { %4671 = vmatpush1.bf16.msra.mxu0 %v5279_v29  ;;  %4703 = vmatpush1.bf16.msra.mxu1 %v5286_v33  ;;  %v7080_v29 = vld [vmem:[#allocation15_spill] sm:$0xff]  ;;  %v7081_v33 = vld [vmem:[#allocation16_spill] sm:$0xff] }
 0x7e3   :  { %4673 = vmatprep.subr.bf16.mxu0 %v5290_v37  ;;  %4705 = vmatprep.subr.bf16.mxu1 %v5292_v38  ;;  %v7082_v37 = vld [vmem:[#allocation17_spill] sm:$0xff]  ;;  %v7083_v38 = vld [vmem:[#allocation18_spill] sm:$0xff] }
 0x7e6   :  { %4675 = vmatpush1.bf16.msra.mxu0 %v5296_v42  ;;  %4707 = vmatpush1.bf16.msra.mxu1 %v5303_v46  ;;  %v7084_v42 = vld [vmem:[#allocation19_spill] sm:$0xff]  ;;  %v7085_v46 = vld [vmem:[#allocation20_spill] sm:$0xff] }
 0x7e7   :  { %4677 = vmatprep.subr.bf16.mxu0 %v5307_v50  ;;  %4709 = vmatprep.subr.bf16.mxu1 %v5311_v54  ;;  %v7086_v50 = vld [vmem:[#allocation21_spill] sm:$0xff]  ;;  %v7087_v54 = vld [vmem:[#allocation22_spill] sm:$0xff] }
 0x7ea   :  { %4679 = vmatpush1.bf16.msra.mxu0 %v5315_v57  ;;  %4711 = vmatpush1.bf16.msra.mxu1 %v5319_v61  ;;  %v7088_v57 = vld [vmem:[#allocation23_spill] sm:$0xff]  ;;  %v7089_v61 = vld [vmem:[#allocation24_spill] sm:$0xff] }
 0x7eb   :  { %4681 = vmatprep.subr.bf16.mxu0 %v5326_v2  ;;  %4713 = vmatprep.subr.bf16.mxu1 %v5330_v5  ;;  %v7090_v2 = vld [vmem:[#allocation25_spill] sm:$0xff]  ;;  %v7091_v5 = vld [vmem:[#allocation26_spill] sm:$0xff] }
 0x7ee   :  { %4683 = vmatpush1.bf16.msra.mxu0 %v5334_v8  ;;  %4715 = vmatpush1.bf16.msra.mxu1 %v5338_v13  ;;  %v7092_v8 = vld [vmem:[#allocation27_spill] sm:$0xff]  ;;  %v7093_v13 = vld [vmem:[#allocation28_spill] sm:$0xff] }
 0x7ef   :  { %4685 = vmatprep.subr.bf16.mxu0 %v5345_v18  ;;  %4717 = vmatprep.subr.bf16.mxu1 %v5349_v22  ;;  %v7094_v18 = vld [vmem:[#allocation29_spill] sm:$0xff]  ;;  %v7095_v22 = vld [vmem:[#allocation30_spill] sm:$0xff] }
 0x7f2   :  { %4687 = vmatpush1.bf16.msra.mxu0 %v5353_v27  ;;  %4719 = vmatpush1.bf16.msra.mxu1 %v5357_v31  ;;  %v7096_v27 = vld [vmem:[#allocation31_spill] sm:$0xff]  ;;  %v7097_v31 = vld [vmem:[#allocation32_spill] sm:$0xff] }
 0x7f3   :  { %4689 = vmatprep.subr.bf16.mxu0 %v5364_v36  ;;  %4721 = vmatprep.subr.bf16.mxu1 %v5368_v41  ;;  %v7098_v36 = vld [vmem:[#allocation33_spill] sm:$0xff]  ;;  %v7099_v41 = vld [vmem:[#allocation34_spill] sm:$0xff] }
 0x7f6   :  { %4691 = vmatpush1.bf16.msra.mxu0 %v5372_v45  ;;  %4723 = vmatpush1.bf16.msra.mxu1 %v5379_v51  ;;  %v7100_v45 = vld [vmem:[#allocation35_spill] sm:$0xff]  ;;  %v7101_v51 = vld [vmem:[#allocation36_spill] sm:$0xff] }
 0x7f7   :  { %4693 = vmatprep.subr.bf16.mxu0 %v5383_v56  ;;  %4725 = vmatprep.subr.bf16.mxu1 %v5387_v62  ;;  %v7102_v56 = vld [vmem:[#allocation37_spill] sm:$0xff]  ;;  %v7103_v62 = vld [vmem:[#allocation38_spill] sm:$0xff] }
 0x7fa   :  { %4695 = vmatpush1.bf16.msra.mxu0 %v5391_v3  ;;  %4727 = vmatpush1.bf16.msra.mxu1 %v5395_v4  ;;  %v7104_v3 = vld [vmem:[#allocation39_spill] sm:$0xff]  ;;  %v7105_v4 = vld [vmem:[#allocation40_spill] sm:$0xff] }
 0x7fb   :  { %4729 = vmatprep.subr.bf16.mxu0 %v5397_v6  ;;  %4793 = vmatprep.subr.bf16.mxu1 %v5401_v14  ;;  %v7106_v6 = vld [vmem:[#allocation41_spill] sm:$0xff]  ;;  %v7107_v14 = vld [vmem:[#allocation42_spill] sm:$0xff] }
 0x7fd   :  { %2891 = vmatmul.mubr.f32.vlgmr.msra.gmra.mrb[14].mxu0 %v2665_v0  ;;  %2962 = vmatmul.mubr.f32.vlgmr.msra.gmra.mrb[14].mxu1 %v2665_v0  ;;  %v7130_v0 = vld [vmem:[#allocation65_spill] sm:$0xff] }
 0x7fe   :  { %4731 = vmatpush1.bf16.msra.mxu0 %v5407_v26  ;;  %4795 = vmatpush1.bf16.msra.mxu1 %v5411_v28  ;;  %v7108_v26 = vld [vmem:[#allocation43_spill] sm:$0xff]  ;;  %v7109_v28 = vld [vmem:[#allocation44_spill] sm:$0xff] }
 0x7ff   :  { %4733 = vmatprep.subr.bf16.mxu0 %v5413_v30  ;;  %4797 = vmatprep.subr.bf16.mxu1 %v5416_v39  ;;  %v7110_v30 = vld [vmem:[#allocation45_spill] sm:$0xff]  ;;  %v7111_v39 = vld [vmem:[#allocation46_spill] sm:$0xff] }
 0x802   :  { %4735 = vmatpush1.bf16.msra.mxu0 %v5421_v49  ;;  %4799 = vmatpush1.bf16.msra.mxu1 %v7076_v16  ;;  %v7112_v49 = vld [vmem:[#allocation47_spill] sm:$0xff]  ;;  %v7131_v16 = vld [vmem:[#allocation66_spill] sm:$0xff] }
 0x803   :  { %4737 = vmatprep.subr.bf16.mxu0 %v7077_v20  ;;  %4801 = vmatprep.subr.bf16.mxu1 %v7078_v24  ;;  %v7132_v20 = vld [vmem:[#allocation67_spill] sm:$0xff] }
 0x806   :  { %4739 = vmatpush1.bf16.msra.mxu0 %v7079_v25  ;;  %4803 = vmatpush1.bf16.msra.mxu1 %v7080_v29  ;;  %v7133_v29 = vld [vmem:[#allocation70_spill] sm:$0xff] }
 0x807   :  { %4741 = vmatprep.subr.bf16.mxu0 %v7081_v33  ;;  %4805 = vmatprep.subr.bf16.mxu1 %v7082_v37 }
 0x80a   :  { %4743 = vmatpush1.bf16.msra.mxu0 %v7083_v38  ;;  %4807 = vmatpush1.bf16.msra.mxu1 %v7084_v42 }
 0x80b   :  { %4745 = vmatprep.subr.bf16.mxu0 %v7085_v46  ;;  %4809 = vmatprep.subr.bf16.mxu1 %v7086_v50 }
 0x80e   :  { %4747 = vmatpush1.bf16.msra.mxu0 %v7087_v54  ;;  %4811 = vmatpush1.bf16.msra.mxu1 %v7088_v57 }
 0x80f   :  { %4749 = vmatprep.subr.bf16.mxu0 %v7089_v61  ;;  %4813 = vmatprep.subr.bf16.mxu1 %v7090_v2 }
 0x812   :  { %4751 = vmatpush1.bf16.msra.mxu0 %v7091_v5  ;;  %4815 = vmatpush1.bf16.msra.mxu1 %v7092_v8 }
 0x813   :  { %4753 = vmatprep.subr.bf16.mxu0 %v7093_v13  ;;  %4817 = vmatprep.subr.bf16.mxu1 %v7094_v18 }
 0x816   :  { %4755 = vmatpush1.bf16.msra.mxu0 %v7095_v22  ;;  %4819 = vmatpush1.bf16.msra.mxu1 %v7096_v27 }
 0x817   :  { %4757 = vmatprep.subr.bf16.mxu0 %v7097_v31  ;;  %4821 = vmatprep.subr.bf16.mxu1 %v7098_v36 }
 0x81a   :  { %4759 = vmatpush1.bf16.msra.mxu0 %v7099_v41  ;;  %4823 = vmatpush1.bf16.msra.mxu1 %v7100_v45 }
 0x81b   :  { %4761 = vmatprep.subr.bf16.mxu0 %v7101_v51  ;;  %4825 = vmatprep.subr.bf16.mxu1 %v7102_v56 }
 0x81e   :  { %4763 = vmatpush1.bf16.msra.mxu0 %v7103_v62  ;;  %4827 = vmatpush1.bf16.msra.mxu1 %v7104_v3  ;;  %v7134_v3 = vld [vmem:[#allocation68_spill] sm:$0xff] }
 0x81f   :  { %4765 = vmatprep.subr.bf16.mxu0 %v7105_v4  ;;  %4829 = vmatprep.subr.bf16.mxu1 %v7106_v6 }
 0x822   :  { %4767 = vmatpush1.bf16.msra.mxu0 %v7107_v14  ;;  %4831 = vmatpush1.bf16.msra.mxu1 %v7108_v26 }
 0x823   :  { %4769 = vmatprep.subr.bf16.mxu0 %v7109_v28  ;;  %4833 = vmatprep.subr.bf16.mxu1 %v7110_v30 }
 0x826   :  { %4771 = vmatpush1.bf16.msra.mxu0 %v7111_v39  ;;  %4835 = vmatpush1.bf16.msra.mxu1 %v7112_v49 }
 0x827   :  { %4773 = vmatprep.subr.bf16.mxu0 %v7113_v19  ;;  %4837 = vmatprep.subr.bf16.mxu1 %v7114_v53 }
 0x82a   :  { %4775 = vmatpush1.bf16.msra.mxu0 %v7115_v43  ;;  %4839 = vmatpush1.bf16.msra.mxu1 %v7116_v60 }
 0x82b   :  { %4777 = vmatprep.subr.bf16.mxu0 %v7117_v7  ;;  %4841 = vmatprep.subr.bf16.mxu1 %v7118_v47 }
 0x82e   :  { %4779 = vmatpush1.bf16.msra.mxu0 %v7119_v32  ;;  %4843 = vmatpush1.bf16.msra.mxu1 %v7120_v12 }
 0x82f   :  { %4781 = vmatprep.subr.bf16.mxu0 %v7121_v17  ;;  %4845 = vmatprep.subr.bf16.mxu1 %v7122_v44 }
 0x832   :  { %4783 = vmatpush1.bf16.msra.mxu0 %v7123_v55  ;;  %4847 = vmatpush1.bf16.msra.mxu1 %v7124_v9 }
 0x833   :  { %4785 = vmatprep.subr.bf16.mxu0 %v7125_v63  ;;  %4849 = vmatprep.subr.bf16.mxu1 %v7126_v59 }
 0x836   :  { %4787 = vmatpush1.bf16.msra.mxu0 %v7127_v15  ;;  %4851 = vmatpush1.bf16.msra.mxu1 %v7128_v52 }
 0x837   :  { %4789 = vmatprep.subr.bf16.mxu0 %v7129_v48  ;;  %4853 = vmatprep.subr.bf16.mxu1 %v7130_v0  ;;  %v3151_v48 = vld [vmem:[%s6508_s6 + $0x8] sm:$0xff] }
 0x83a   :  { %4791 = vmatpush1.bf16.msra.mxu0 %v7131_v16  ;;  %4855 = vmatpush1.bf16.msra.mxu1 %v7132_v20  ;;  %v5164_v16 = vmov 0.0|0.0   ;;  %v3153_v20 = vld [vmem:[%s6508_s6 + $0x18] sm:$0xff] }
 0x83b   :  { %4856 = vmatprep.subr.bf16.mxu0 %v5164_v16 }
 0x8b0   :  { %v2732_v24 = vpop.f32.mrb[28].mxu0  ;;  %v2803_v25 = vpop.f32.mrb[28].mxu1 }
 0x8b1   :  { %v2733_v33 = vadd.f32 %v2732_v24, %v7133_v29  ;;  %v2734_v37 = vpop.f32.mrb[29].mxu0  ;;  %v2805_v38 = vpop.f32.mrb[29].mxu1  ;;  %v2804_v57 = vadd.f32 %v2803_v25, %v6830_v23  ;;  %v3154_v25 = vld [vmem:[%s6508_s6 + $0x20] sm:$0xff] }
 0x8b2   :  { %v2735_v42 = vadd.f32 %v2734_v37, %v6828_v58  ;;  %v2806_v54 = vadd.f32 %v2805_v38, %v6829_v40  ;;  %v3156_v38 = vld [vmem:[%s6508_s6 + $0x30] sm:$0xff] }
 0x8b3   :  { %v2808_v46 = vmul.f32 0.5, %v2733_v33  ;;  %v2810_v61 = vmul.f32 0.5, %v2804_v57  ;;  %v3155_v33 = vld [vmem:[%s6508_s6 + $0x28] sm:$0xff] }
 0x8b4   :  { %v2809_v50 = vmul.f32 0.5, %v2735_v42  ;;  %v4863_v37 = vpack.c.bf16 %v3155_v33, %v3154_v25  ;;  %v3157_v42 = vld [vmem:[%s6508_s6 + $0x38] sm:$0xff] }
 0x8b5   :  { %5081 = vtanh.f32 %v2808_v46  ;;  %v4866_v46 = vpack.c.bf16 %v3157_v42, %v3156_v38 }
 0x8b6   :  { %5083 = vtanh.f32 %v2809_v50  ;;  %v3158_v50 = vld [vmem:[%s6508_s6 + $0x40] sm:$0xff] }
 0x8b7   :  { %5085 = vtanh.f32 %v2806_v54  ;;  %v3159_v54 = vld [vmem:[%s6508_s6 + $0x48] sm:$0xff] }
 0x8b8   :  { %5087 = vtanh.f32 %v2810_v61  ;;  %v4869_v57 = vpack.c.bf16 %v3159_v54, %v3158_v50  ;;  %v3160_v61 = vld [vmem:[%s6508_s6 + $0x50] sm:$0xff] }
 0x8bf   :  { %v5082_v2 = vpop.eup %5081 }
 0x8c0   :  { %v2814_v5 = vmul.f32 0.5, %v5082_v2  ;;  %v5084_v8 = vpop.eup %5083  ;;  %v3161_v2 = vld [vmem:[%s6508_s6 + $0x58] sm:$0xff] }
 0x8c1   :  { %v2815_v18 = vmul.f32 0.5, %v5084_v8  ;;  %v5086_v22 = vpop.eup %5085  ;;  %v3162_v8 = vld [vmem:[%s6508_s6 + $0x60] sm:$0xff] }
 0x8c2   :  { %v2817_v13 = vadd.f32 0.5, %v2814_v5  ;;  %v5088_v45 = vpop.eup %5087  ;;  %v4872_v5 = vpack.c.bf16 %v3161_v2, %v3160_v61 }
 0x8c3   :  { %v2818_v27 = vadd.f32 0.5, %v2815_v18  ;;  %v2816_v51 = vmul.f32 0.5, %v5088_v45 }
 0x8c4   :  { %v2822_v31 = vmul.f32 %v5086_v22, %v2817_v13  ;;  %v3163_v13 = vld [vmem:[%s6508_s6 + $0x68] sm:$0xff]  ;;  %v3164_v22 = vld [vmem:[%s6508_s6 + $0x70] sm:$0xff] }
 0x8c5   :  { %v2821_v36 = vmul.f32 %v2818_v27, %v6325_v11  ;;  %v2819_v28 = vadd.f32 0.5, %v2816_v51  ;;  %v4875_v18 = vpack.c.bf16 %v3163_v13, %v3162_v8  ;;  %v3165_v27 = vld [vmem:[%s6508_s6 + $0x78] sm:$0xff] }
 0x8c7   :  { %v6437_v41 = vadd.f32 %v2822_v31, %v2821_v36  ;;  %v4878_v31 = vpack.c.bf16 %v3165_v27, %v3164_v22 }
 0x8c9   :  { %5089 = vtanh.f32 %v6437_v41 }
 0x8d0   :  { %v2892_v56 = vpop.f32.mrb[14].mxu0  ;;  %v2963_v62 = vpop.f32.mrb[14].mxu1 }
 0x8d1   :  { %v4894_v4 = vadd.f32 %v2892_v56, %v7134_v3  ;;  %v2894_v6 = vpop.f32.mrb[15].mxu0  ;;  %v2965_v14 = vpop.f32.mrb[15].mxu1  ;;  %v4910_v53 = vadd.f32 %v2963_v62, %v5628_v34  ;;  %v3150_v34 = vld [vmem:[%s6508_s6] sm:$0xff] }
 0x8d2   :  { %v4895_v26 = vadd.f32 %v2894_v6, %v6770_v10  ;;  %v4911_v11 = vadd.f32 %v2965_v14, %v5621_v21  ;;  %v4857_v0 = vpack.c.bf16 %v3151_v48, %v3150_v34 }
 0x8d3   :  { %v2972_v30 = vmul.f32 0.5, %v4894_v4  ;;  %v5090_v39 = vpop.eup %5089  ;;  %v2974_v43 = vmul.f32 0.5, %v4910_v53 }
 0x8d4   :  { %v2973_v49 = vmul.f32 0.5, %v4895_v26  ;;  %v2825_v19 = vmul.f32 %v5090_v39, %v2819_v28 }
 0x8d5   :  { %5091 = vtanh.f32 %v2972_v30 }
 0x8d6   :  { %5093 = vtanh.f32 %v2973_v49  ;;  %3054 = vmatprep.mubr.f32.mxu0 %v2825_v19  ;;  %3125 = vmatprep.mubr.f32.mxu1 %v2825_v19 }
 0x8d7   :  { %5095 = vtanh.f32 %v4911_v11 }
 0x8d8   :  { %5097 = vtanh.f32 %v2974_v43 }
 0x8df   :  { %v5092_v60 = vpop.eup %5091 }
 0x8e0   :  { %v2978_v7 = vmul.f32 0.5, %v5092_v60  ;;  %v5094_v47 = vpop.eup %5093 }
 0x8e1   :  { %v2979_v10 = vmul.f32 0.5, %v5094_v47  ;;  %v5096_v12 = vpop.eup %5095 }
 0x8e2   :  { %v2981_v32 = vadd.f32 0.5, %v2978_v7  ;;  %v5098_v9 = vpop.eup %5097 }
 0x8e3   :  { %v2982_v17 = vadd.f32 0.5, %v2979_v10  ;;  %v2980_v63 = vmul.f32 0.5, %v5098_v9 }
 0x8e4   :  { %v2986_v44 = vmul.f32 %v5096_v12, %v2981_v32 }
 0x8e5   :  { %v2985_v55 = vmul.f32 %v2982_v17, %v6333_v1  ;;  %v2983_v59 = vadd.f32 0.5, %v2980_v63  ;;  %v3152_v1 = vld [vmem:[%s6508_s6 + $0x10] sm:$0xff] }
 0x8e6   :  { %v4860_v24 = vpack.c.bf16 %v3153_v20, %v3152_v1 }
 0x8e7   :  { %v2987_v21 = vadd.f32 %v2986_v44, %v2985_v55 }
 0x8e9   :  { %5099 = vtanh.f32 %v2987_v21 }
 0x8f3   :  { %v5100_v15 = vpop.eup %5099 }
 0x8f4   :  { %v2989_v52 = vmul.f32 %v5100_v15, %v2983_v59 }
 0x8f6   :  { %3055 = vmatmul.mubr.f32.vlgmr.msra.gmra.mrb[30].mxu0 %v2989_v52  ;;  %3126 = vmatmul.mubr.f32.vlgmr.msra.gmra.mrb[30].mxu1 %v2989_v52 }
 0x8f7   :  { %4858 = vmatpush3.bf16.msra.mxu0 %v4857_v0  ;;  %3317 = vmatprep.mubr.msk.f32.mxu0 %vm5165_vm1, %v6708_v35 }
 0x8f8   :  { %4859 = vmatprep.subr.bf16.mxu0 %v5164_v16 }
 0x8fb   :  { %4861 = vmatpush3.bf16.msra.mxu0 %v4860_v24 }
 0x8fc   :  { %4862 = vmatprep.subr.bf16.mxu0 %v5164_v16 }
 0x8ff   :  { %4864 = vmatpush3.bf16.msra.mxu0 %v4863_v37 }
 0x900   :  { %4865 = vmatprep.subr.bf16.mxu0 %v5164_v16 }
 0x903   :  { %4867 = vmatpush3.bf16.msra.mxu0 %v4866_v46 }
 0x904   :  { %4868 = vmatprep.subr.bf16.mxu0 %v5164_v16 }
 0x907   :  { %4870 = vmatpush3.bf16.msra.mxu0 %v4869_v57 }
 0x908   :  { %4871 = vmatprep.subr.bf16.mxu0 %v5164_v16 }
 0x90b   :  { %4873 = vmatpush3.bf16.msra.mxu0 %v4872_v5 }
 0x90c   :  { %4874 = vmatprep.subr.bf16.mxu0 %v5164_v16 }
 0x90f   :  { %4876 = vmatpush3.bf16.msra.mxu0 %v4875_v18 }
 0x910   :  { %4877 = vmatprep.subr.bf16.mxu0 %v5164_v16 }
 0x913   :  { %4879 = vmatpush3.bf16.msra.mxu0 %v4878_v31 }
 0x9c9   :  { %v3056_v36 = vpop.f32.mrb[30].mxu0  ;;  %v3127_v45 = vpop.f32.mrb[30].mxu1 }
 0x9ca   :  { %v3057_v51 = vadd.f32 %v3056_v36, %v7133_v29  ;;  %v3058_v35 = vpop.f32.mrb[31].mxu0  ;;  %v3129_v56 = vpop.f32.mrb[31].mxu1  ;;  %v3128_v14 = vadd.f32 %v3127_v45, %v6830_v23  ;;  %v3267_v23 = vld [vmem:[#allocation2] ss:$0 sm:$0xff] }
 0x9cb   :  { %v3059_v62 = vadd.f32 %v3058_v35, %v6828_v58  ;;  %v3130_v6 = vadd.f32 %v3129_v56, %v6829_v40 }
 0x9cc   :  { %v3132_v3 = vmul.f32 0.5, %v3057_v51  ;;  %v3134_v26 = vmul.f32 0.5, %v3128_v14 }
 0x9cd   :  { %v3133_v4 = vmul.f32 0.5, %v3059_v62 }
 0x9ce   :  { %5101 = vtanh.f32 %v3132_v3 }
 0x9cf   :  { %5103 = vtanh.f32 %v3133_v4 }
 0x9d0   :  { %5105 = vtanh.f32 %v3130_v6 }
 0x9d1   :  { %5107 = vtanh.f32 %v3134_v26 }
 0x9d8   :  { %v5102_v28 = vpop.eup %5101 }
 0x9d9   :  { %v3138_v30 = vmul.f32 0.5, %v5102_v28  ;;  %v5104_v39 = vpop.eup %5103 }
 0x9da   :  { %v3139_v29 = vmul.f32 0.5, %v5104_v39  ;;  %v5106_v11 = vpop.eup %5105 }
 0x9db   :  { %v3141_v49 = vadd.f32 0.5, %v3138_v30  ;;  %v5108_v60 = vpop.eup %5107 }
 0x9dc   :  { %v3142_v19 = vadd.f32 0.5, %v3139_v29  ;;  %v3140_v40 = vmul.f32 0.5, %v5108_v60 }
 0x9dd   :  { %v3146_v53 = vmul.f32 %v5106_v11, %v3141_v49 }
 0x9de   :  { %v3145_v58 = vmul.f32 %v3142_v19, %v6437_v41  ;;  %v3143_v7 = vadd.f32 0.5, %v3140_v40 }
 0x9e0   :  { %v3147_v43 = vadd.f32 %v3146_v53, %v3145_v58 }
 0x9e2   :  { %5109 = vtanh.f32 %v3147_v43 }
 0x9ec   :  { %v5110_v47 = vpop.eup %5109 }
 0x9ed   :  { %v3149_v32 = vmul.f32 %v5110_v47, %v3143_v7 }
 0x9ef   :  { %3318 = vmatmul.mubr.f32.vlgmr.msra.gmra.mrb[32].mxu0 %v3149_v32 }
 0xac2   :  { %v3239_v10 = vpop.f32.mrb[32].mxu0 }
 0xac3   :  { %v3240_v12 = vadd.f32 %v3267_v23, %v3239_v10  ;;  %v3319_v17 = vpop.f32.mrb[33].mxu0 }
 0xac5   :  { %3244 = vst.msk [vmem:[%s6510_s8] sm:$0xff] %vm3243_vm2, %v3240_v12 }
 0xac6   :  { %3249 = vsyncpa [#allocation4], 1 }
 0xac7   :  { %3250 = vsyncpa [#allocation6], 1 }

</bundles_post_ra>
